<compile_context>
chip_gen: v7x
topology: tpu7x:2x2x1
jax: 0.10.0
libtpu: 0.0.40
codegen_flags: <defaults>
</compile_context>

<pallas_src>
import functools

import jax
import jax.numpy as jnp
from jax import lax
from jax.experimental import pallas as pl
from jax.experimental.pallas import tpu as pltpu


# ----------------------------- Pallas kernels ------------------------------ #

def _matmul_bias_kernel(p_ref, w_ref, b_ref, o_ref, acc_ref, *, negative_slope):
    """Tiled out = patches @ w + b with optional fused LeakyReLU.

    p_ref: (tm, tk) bf16, w_ref: (tk, tn) bf16, b_ref: (1, tn) f32,
    o_ref: (tm, tn) f32, acc_ref: (tm, tn) f32 VMEM scratch.
    Grid = (M/tm, OC/tn, K/tk); K (axis 2) is the reduction axis.
    """
    @pl.when(pl.program_id(2) == 0)
    def _():
        acc_ref[...] = jnp.zeros_like(acc_ref)

    acc_ref[...] += jnp.dot(p_ref[...], w_ref[...],
                            preferred_element_type=jnp.float32)

    @pl.when(pl.program_id(2) == pl.num_programs(2) - 1)
    def _():
        out = acc_ref[...] + b_ref[...]
        if negative_slope is not None:
            out = jnp.where(out >= 0.0, out, negative_slope * out)
        o_ref[...] = out.astype(o_ref.dtype)


def _inorm_lrelu_kernel(x_ref, o_ref, *, eps, negative_slope):
    """InstanceNorm2d(affine=False, biased var) + LeakyReLU on one
    (sample, channel-tile) block of shape (1, H*W, tc)."""
    x = x_ref[...]
    mean = jnp.mean(x, axis=1, keepdims=True)
    var = jnp.mean(jnp.square(x - mean), axis=1, keepdims=True)
    y = (x - mean) * lax.rsqrt(var + eps)
    o_ref[...] = jnp.where(y >= 0.0, y, negative_slope * y)


# ------------------------------- JAX glue ---------------------------------- #

def _round_up(x, m):
    return ((x + m - 1) // m) * m


def _im2col(x, kh, kw, stride, pad):
    """x: (N,H,W,C) -> patches (N*OH*OW, kh*kw*C) with (kh, kw, C) ordering."""
    n, h, w, c = x.shape
    xp = jnp.pad(x, ((0, 0), (pad, pad), (pad, pad), (0, 0)))
    oh = (h + 2 * pad - kh) // stride + 1
    ow = (w + 2 * pad - kw) // stride + 1
    cols = []
    for i in range(kh):
        for j in range(kw):
            cols.append(xp[:, i:i + stride * (oh - 1) + 1:stride,
                           j:j + stride * (ow - 1) + 1:stride, :])
    p = jnp.stack(cols, axis=3)                  # (N, OH, OW, kh*kw, C)
    return p.reshape(n * oh * ow, kh * kw * c), oh, ow


def conv2d_pallas(x, w_hwio, b, stride, pad=1, negative_slope=None):
    """x: (N,H,W,C) NHWC f32, w_hwio: (KH,KW,IC,OC), b: (OC,). Returns f32."""
    kh, kw, ic, oc = w_hwio.shape
    n = x.shape[0]

    # bf16 im2col (halves the materialized patch buffer; MXU-native dtype).
    patches, oh, ow = _im2col(x.astype(jnp.bfloat16), kh, kw, stride, pad)
    m, k = patches.shape

    # Tile sizes (multiples of (8,128); capped for v7x VMEM headroom).
    tm = min(512, _round_up(m, 8))
    tk = min(512, _round_up(k, 128))
    tn = min(256, _round_up(oc, 128))
    mp = _round_up(m, tm)
    kp = _round_up(k, tk)
    ocp = _round_up(oc, tn)          # e.g. last layer OC=1 -> 128 (lane-dense)

    patches = jnp.pad(patches, ((0, mp - m), (0, kp - k)))
    w2d = jnp.pad(w_hwio.reshape(kh * kw * ic, oc).astype(jnp.bfloat16),
                  ((0, kp - k), (0, ocp - oc)))
    b2d = jnp.pad(b.astype(jnp.float32).reshape(1, oc), ((0, 0), (0, ocp - oc)))

    grid = (mp // tm, ocp // tn, kp // tk)
    out = pl.pallas_call(
        functools.partial(_matmul_bias_kernel, negative_slope=negative_slope),
        out_shape=jax.ShapeDtypeStruct((mp, ocp), jnp.float32),
        grid_spec=pltpu.PrefetchScalarGridSpec(
            num_scalar_prefetch=0,
            grid=grid,
            in_specs=[pl.BlockSpec((tm, tk), lambda i, j, kk: (i, kk)),
                      pl.BlockSpec((tk, tn), lambda i, j, kk: (kk, j)),
                      pl.BlockSpec((1, tn), lambda i, j, kk: (0, j))],
            out_specs=pl.BlockSpec((tm, tn), lambda i, j, kk: (i, j)),
            scratch_shapes=[pltpu.VMEM((tm, tn), jnp.float32)]),
        compiler_params=pltpu.CompilerParams(
            dimension_semantics=("parallel", "parallel", "arbitrary"),
            vmem_limit_bytes=64 * 1024 * 1024),
        cost_estimate=pl.CostEstimate(
            flops=2 * mp * kp * ocp,
            transcendentals=0,
            bytes_accessed=(mp * kp + kp * ocp) * 2 + mp * ocp * 4),
    )(patches, w2d, b2d)

    out = out[:m, :oc]
    return out.reshape(n, oh, ow, oc)


def instance_norm_lrelu_pallas(x, eps=1e-5, negative_slope=0.2):
    """x: (N,H,W,C) f32. Per-(sample, channel) normalization over H*W."""
    n, h, w, c = x.shape
    hw = h * w
    tc = 128 if c % 128 == 0 else c
    xr = x.reshape(n, hw, c)
    out = pl.pallas_call(
        functools.partial(_inorm_lrelu_kernel, eps=eps,
                          negative_slope=negative_slope),
        grid=(n, c // tc),
        out_shape=jax.ShapeDtypeStruct((n, hw, c), jnp.float32),
        in_specs=[pl.BlockSpec((1, hw, tc), lambda i, j: (i, 0, j))],
        out_specs=pl.BlockSpec((1, hw, tc), lambda i, j: (i, 0, j)),
        compiler_params=pltpu.CompilerParams(
            dimension_semantics=("parallel", "parallel")),
    )(xr)
    return out.reshape(n, h, w, c)


# ---------------------------- model definition ----------------------------- #

def init_params(key):
    def conv_init(k, kh, kw, ic, oc, scale=0.05):
        kw_, kb_ = jax.random.split(k)
        w = scale * jax.random.normal(kw_, (kh, kw, ic, oc), jnp.float32)
        b = scale * jax.random.normal(kb_, (oc,), jnp.float32)
        return w, b
    keys = jax.random.split(key, 5)
    return {
        "c64":  conv_init(keys[0], 4, 4, 3, 64),
        "c128": conv_init(keys[1], 4, 4, 64, 128),
        "c256": conv_init(keys[2], 4, 4, 128, 256),
        "c512": conv_init(keys[3], 4, 4, 256, 512),
        "last": conv_init(keys[4], 4, 4, 512, 1),
    }


def discriminator_forward(params, x_nchw):
    x = jnp.transpose(x_nchw, (0, 2, 3, 1))                     # NCHW -> NHWC
    w, b = params["c64"]
    x = conv2d_pallas(x, w, b, stride=2, negative_slope=0.2)    # conv + LReLU
    w, b = params["c128"]
    x = instance_norm_lrelu_pallas(conv2d_pallas(x, w, b, stride=2))
    w, b = params["c256"]
    x = instance_norm_lrelu_pallas(conv2d_pallas(x, w, b, stride=2))
    w, b = params["c512"]
    x = instance_norm_lrelu_pallas(conv2d_pallas(x, w, b, stride=1))
    w, b = params["last"]
    y = conv2d_pallas(x, w, b, stride=1)                        # no activation
    return jnp.transpose(y, (0, 3, 1, 2))                       # NHWC -> NCHW


# --------------------------- pure-JAX reference ----------------------------- #
# Same mixed-precision policy as the kernels (bf16 operands, f32 accumulation),
# so the comparison isolates kernel/tiling correctness.

def _conv_ref(x, w, b, stride, pad=1):
    y = lax.conv_general_dilated(
        x.astype(jnp.bfloat16), w.astype(jnp.bfloat16),
        (stride, stride), [(pad, pad), (pad, pad)],
        dimension_numbers=("NHWC", "HWIO", "NHWC"),
        preferred_element_type=jnp.float32)
    return y + b.astype(jnp.float32)


def discriminator_ref(params, x_nchw):
    x = jnp.transpose(x_nchw, (0, 2, 3, 1))
    lrelu = lambda v: jnp.where(v >= 0.0, v, 0.2 * v)

    def inorm(v, eps=1e-5):
        mean = jnp.mean(v, axis=(1, 2), keepdims=True)
        var = jnp.mean(jnp.square(v - mean), axis=(1, 2), keepdims=True)
        return (v - mean) * lax.rsqrt(var + eps)

    w, b = params["c64"];  x = lrelu(_conv_ref(x, w, b, 2))
    w, b = params["c128"]; x = lrelu(inorm(_conv_ref(x, w, b, 2)))
    w, b = params["c256"]; x = lrelu(inorm(_conv_ref(x, w, b, 2)))
    w, b = params["c512"]; x = lrelu(inorm(_conv_ref(x, w, b, 1)))
    w, b = params["last"]; y = _conv_ref(x, w, b, 1)
    return jnp.transpose(y, (0, 3, 1, 2))


# ---------------------------------- main ------------------------------------ #

if __name__ == "__main__":
    key = jax.random.PRNGKey(0)
    kp, kx = jax.random.split(key)
    params = init_params(kp)

    # NCHW input, as in PyTorch.  32x32 -> 16 -> 8 -> 4 -> 3 -> output 2x2.
    x = jax.random.normal(kx, (2, 3, 32, 32), jnp.float32)

    y = jax.jit(discriminator_forward)(params, x)
    y = jax.block_until_ready(y)
    assert y.shape == (2, 1, 2, 2), y.shape

    y_ref = jax.block_until_ready(jax.jit(discriminator_ref)(params, x))
    max_err = float(jnp.max(jnp.abs(y - y_ref)))
    assert jnp.allclose(y, y_ref, atol=2e-3, rtol=2e-3), max_err

    print("KERNEL_OK")
</pallas_src>

<mosaic_0001>
module attributes {stable_mosaic.version = 11 : i64} {
  func.func @_matmul_bias_kernel(%arg0: i32, %arg1: i32, %arg2: i32, %arg3: memref<512x128xbf16, #tpu.memory_space<vmem>>, %arg4: memref<128x128xbf16, #tpu.memory_space<vmem>>, %arg5: memref<1x128xf32, #tpu.memory_space<vmem>>, %arg6: memref<512x128xf32, #tpu.memory_space<vmem>>, %arg7: memref<512x128xf32, #tpu.memory_space<vmem>>) attributes {dimension_semantics = [#tpu.dimension_semantics<parallel>, #tpu.dimension_semantics<parallel>, #tpu.dimension_semantics<arbitrary>], iteration_bounds = array<i64: 1, 1, 1>, scalar_prefetch = 0 : i64, scratch_operands = 1 : i64, tpu.core_type = #tpu.core_type<tc>, window_params = [{transform_indices = @transform_0, window_bounds = array<i64: 512, 128>}, {transform_indices = @transform_1, window_bounds = array<i64: 128, 128>}, {transform_indices = @transform_2, window_bounds = array<i64: 1, 128>}, {transform_indices = @transform_3, window_bounds = array<i64: 512, 128>}]} {
    %c0_i32 = arith.constant 0 : i32
    %0 = arith.cmpi eq, %arg2, %c0_i32 : i32
    %1 = arith.extui %0 : i1 to i32
    %c0_i32_0 = arith.constant 0 : i32
    %2 = arith.cmpi ne, %1, %c0_i32_0 : i32
    scf.if %2 {
      %cst_10 = arith.constant 0.000000e+00 : f32
      %12 = vector.broadcast %cst_10 : f32 to vector<512x128xf32>
      %c0_11 = arith.constant 0 : index
      %c0_12 = arith.constant 0 : index
      %13 = vector.load %arg7[%c0_11, %c0_12] : memref<512x128xf32, #tpu.memory_space<vmem>>, vector<512x128xf32>
      tpu.vector_store %arg7[%c0_11, %c0_12], %12 {strides = array<i32>} : memref<512x128xf32, #tpu.memory_space<vmem>>, vector<512x128xf32>,
    } else {
    }
    %c0 = arith.constant 0 : index
    %c0_1 = arith.constant 0 : index
    %3 = vector.load %arg7[%c0, %c0_1] : memref<512x128xf32, #tpu.memory_space<vmem>>, vector<512x128xf32>
    %c0_2 = arith.constant 0 : index
    %c0_3 = arith.constant 0 : index
    %4 = vector.load %arg3[%c0_2, %c0_3] : memref<512x128xbf16, #tpu.memory_space<vmem>>, vector<512x128xbf16>
    %c0_4 = arith.constant 0 : index
    %c0_5 = arith.constant 0 : index
    %5 = vector.load %arg4[%c0_4, %c0_5] : memref<128x128xbf16, #tpu.memory_space<vmem>>, vector<128x128xbf16>
    %cst = arith.constant dense<0.000000e+00> : vector<512x128xf32>
    %6 = tpu.matmul %4, %5, %cst {dimension_numbers = #tpu.dot_dimension_numbers<[1], [0], [0], [1], [0, 0, 1, 1], [], []>} : vector<512x128xbf16>, vector<128x128xbf16>, vector<512x128xf32> -> vector<512x128xf32>
    %7 = arith.addf %3, %6 : vector<512x128xf32>
    %c0_6 = arith.constant 0 : index
    %c0_7 = arith.constant 0 : index
    %8 = vector.load %arg7[%c0_6, %c0_7] : memref<512x128xf32, #tpu.memory_space<vmem>>, vector<512x128xf32>
    tpu.vector_store %arg7[%c0_6, %c0_7], %7 {strides = array<i32>} : memref<512x128xf32, #tpu.memory_space<vmem>>, vector<512x128xf32>,
    %c0_i32_8 = arith.constant 0 : i32
    %9 = arith.cmpi eq, %arg2, %c0_i32_8 : i32
    %10 = arith.extui %9 : i1 to i32
    %c0_i32_9 = arith.constant 0 : i32
    %11 = arith.cmpi ne, %10, %c0_i32_9 : i32
    scf.if %11 {
      %c0_10 = arith.constant 0 : index
      %c0_11 = arith.constant 0 : index
      %12 = vector.load %arg7[%c0_10, %c0_11] : memref<512x128xf32, #tpu.memory_space<vmem>>, vector<512x128xf32>
      %c0_12 = arith.constant 0 : index
      %c0_13 = arith.constant 0 : index
      %13 = vector.load %arg5[%c0_12, %c0_13] : memref<1x128xf32, #tpu.memory_space<vmem>>, vector<1x128xf32>
      %14 = vector.broadcast %13 : vector<1x128xf32> to vector<512x128xf32>
      %15 = arith.addf %12, %14 : vector<512x128xf32>
      %cst_14 = arith.constant 0.000000e+00 : f32
      %16 = vector.broadcast %cst_14 : f32 to vector<512x128xf32>
      %17 = arith.cmpf oge, %15, %16 : vector<512x128xf32>
      %cst_15 = arith.constant 2.000000e-01 : f32
      %18 = vector.broadcast %cst_15 : f32 to vector<512x128xf32>
      %19 = arith.mulf %18, %15 : vector<512x128xf32>
      %20 = arith.select %17, %15, %19 : vector<512x128xi1>, vector<512x128xf32>
      %c0_16 = arith.constant 0 : index
      %c0_17 = arith.constant 0 : index
      %21 = vector.load %arg6[%c0_16, %c0_17] : memref<512x128xf32, #tpu.memory_space<vmem>>, vector<512x128xf32>
      tpu.vector_store %arg6[%c0_16, %c0_17], %20 {strides = array<i32>} : memref<512x128xf32, #tpu.memory_space<vmem>>, vector<512x128xf32>,
    } else {
    }
    return
  }
  func.func @transform_0(%arg0: i32, %arg1: i32, %arg2: i32) -> (i32, i32) {
    %c0_i32 = arith.constant 0 : i32
    return %arg0, %arg2 : i32, i32
  }
  func.func @transform_1(%arg0: i32, %arg1: i32, %arg2: i32) -> (i32, i32) {
    %c0_i32 = arith.constant 0 : i32
    return %arg2, %arg1 : i32, i32
  }
  func.func @transform_2(%arg0: i32, %arg1: i32, %arg2: i32) -> (i32, i32) {
    %c0_i32 = arith.constant 0 : i32
    %c0_i32_0 = arith.constant 0 : i32
    return %c0_i32, %arg1 : i32, i32
  }
  func.func @transform_3(%arg0: i32, %arg1: i32, %arg2: i32) -> (i32, i32) {
    %c0_i32 = arith.constant 0 : i32
    return %arg0, %arg1 : i32, i32
  }
}

module attributes {stable_mosaic.version = 11 : i64} {
  func.func @_matmul_bias_kernel(%arg0: i32, %arg1: i32, %arg2: i32, %arg3: memref<128x512xbf16, #tpu.memory_space<vmem>>, %arg4: memref<512x128xbf16, #tpu.memory_space<vmem>>, %arg5: memref<1x128xf32, #tpu.memory_space<vmem>>, %arg6: memref<128x128xf32, #tpu.memory_space<vmem>>, %arg7: memref<128x128xf32, #tpu.memory_space<vmem>>) attributes {dimension_semantics = [#tpu.dimension_semantics<parallel>, #tpu.dimension_semantics<parallel>, #tpu.dimension_semantics<arbitrary>], iteration_bounds = array<i64: 1, 1, 2>, scalar_prefetch = 0 : i64, scratch_operands = 1 : i64, tpu.core_type = #tpu.core_type<tc>, window_params = [{transform_indices = @transform_0, window_bounds = array<i64: 128, 512>}, {transform_indices = @transform_1, window_bounds = array<i64: 512, 128>}, {transform_indices = @transform_2, window_bounds = array<i64: 1, 128>}, {transform_indices = @transform_3, window_bounds = array<i64: 128, 128>}]} {
    %c0_i32 = arith.constant 0 : i32
    %0 = arith.cmpi eq, %arg2, %c0_i32 : i32
    %1 = arith.extui %0 : i1 to i32
    %c0_i32_0 = arith.constant 0 : i32
    %2 = arith.cmpi ne, %1, %c0_i32_0 : i32
    scf.if %2 {
      %cst_9 = arith.constant 0.000000e+00 : f32
      %12 = vector.broadcast %cst_9 : f32 to vector<128x128xf32>
      %c0_10 = arith.constant 0 : index
      %c0_11 = arith.constant 0 : index
      %13 = vector.load %arg7[%c0_10, %c0_11] : memref<128x128xf32, #tpu.memory_space<vmem>>, vector<128x128xf32>
      tpu.vector_store %arg7[%c0_10, %c0_11], %12 {strides = array<i32>} : memref<128x128xf32, #tpu.memory_space<vmem>>, vector<128x128xf32>,
    } else {
    }
    %c0 = arith.constant 0 : index
    %c0_1 = arith.constant 0 : index
    %3 = vector.load %arg7[%c0, %c0_1] : memref<128x128xf32, #tpu.memory_space<vmem>>, vector<128x128xf32>
    %c0_2 = arith.constant 0 : index
    %c0_3 = arith.constant 0 : index
    %4 = vector.load %arg3[%c0_2, %c0_3] : memref<128x512xbf16, #tpu.memory_space<vmem>>, vector<128x512xbf16>
    %c0_4 = arith.constant 0 : index
    %c0_5 = arith.constant 0 : index
    %5 = vector.load %arg4[%c0_4, %c0_5] : memref<512x128xbf16, #tpu.memory_space<vmem>>, vector<512x128xbf16>
    %cst = arith.constant dense<0.000000e+00> : vector<128x128xf32>
    %6 = tpu.matmul %4, %5, %cst {dimension_numbers = #tpu.dot_dimension_numbers<[1], [0], [0], [1], [0, 0, 1, 1], [], []>} : vector<128x512xbf16>, vector<512x128xbf16>, vector<128x128xf32> -> vector<128x128xf32>
    %7 = arith.addf %3, %6 : vector<128x128xf32>
    %c0_6 = arith.constant 0 : index
    %c0_7 = arith.constant 0 : index
    %8 = vector.load %arg7[%c0_6, %c0_7] : memref<128x128xf32, #tpu.memory_space<vmem>>, vector<128x128xf32>
    tpu.vector_store %arg7[%c0_6, %c0_7], %7 {strides = array<i32>} : memref<128x128xf32, #tpu.memory_space<vmem>>, vector<128x128xf32>,
    %c1_i32 = arith.constant 1 : i32
    %9 = arith.cmpi eq, %arg2, %c1_i32 : i32
    %10 = arith.extui %9 : i1 to i32
    %c0_i32_8 = arith.constant 0 : i32
    %11 = arith.cmpi ne, %10, %c0_i32_8 : i32
    scf.if %11 {
      %c0_9 = arith.constant 0 : index
      %c0_10 = arith.constant 0 : index
      %12 = vector.load %arg7[%c0_9, %c0_10] : memref<128x128xf32, #tpu.memory_space<vmem>>, vector<128x128xf32>
      %c0_11 = arith.constant 0 : index
      %c0_12 = arith.constant 0 : index
      %13 = vector.load %arg5[%c0_11, %c0_12] : memref<1x128xf32, #tpu.memory_space<vmem>>, vector<1x128xf32>
      %14 = vector.broadcast %13 : vector<1x128xf32> to vector<128x128xf32>
      %15 = arith.addf %12, %14 : vector<128x128xf32>
      %c0_13 = arith.constant 0 : index
      %c0_14 = arith.constant 0 : index
      %16 = vector.load %arg6[%c0_13, %c0_14] : memref<128x128xf32, #tpu.memory_space<vmem>>, vector<128x128xf32>
      tpu.vector_store %arg6[%c0_13, %c0_14], %15 {strides = array<i32>} : memref<128x128xf32, #tpu.memory_space<vmem>>, vector<128x128xf32>,
    } else {
    }
    return
  }
  func.func @transform_0(%arg0: i32, %arg1: i32, %arg2: i32) -> (i32, i32) {
    %c0_i32 = arith.constant 0 : i32
    return %arg0, %arg2 : i32, i32
  }
  func.func @transform_1(%arg0: i32, %arg1: i32, %arg2: i32) -> (i32, i32) {
    %c0_i32 = arith.constant 0 : i32
    return %arg2, %arg1 : i32, i32
  }
  func.func @transform_2(%arg0: i32, %arg1: i32, %arg2: i32) -> (i32, i32) {
    %c0_i32 = arith.constant 0 : i32
    %c0_i32_0 = arith.constant 0 : i32
    return %c0_i32, %arg1 : i32, i32
  }
  func.func @transform_3(%arg0: i32, %arg1: i32, %arg2: i32) -> (i32, i32) {
    %c0_i32 = arith.constant 0 : i32
    return %arg0, %arg1 : i32, i32
  }
}

module attributes {stable_mosaic.version = 11 : i64} {
  func.func @_inorm_lrelu_kernel(%arg0: i32, %arg1: i32, %arg2: memref<1x64x128xf32, #tpu.memory_space<vmem>>, %arg3: memref<1x64x128xf32, #tpu.memory_space<vmem>>) attributes {dimension_semantics = [#tpu.dimension_semantics<parallel>, #tpu.dimension_semantics<parallel>], iteration_bounds = array<i64: 2, 1>, scalar_prefetch = 0 : i64, scratch_operands = 0 : i64, tpu.core_type = #tpu.core_type<tc>, window_params = [{transform_indices = @transform_0, window_bounds = array<i64: 1, 64, 128>}, {transform_indices = @transform_1, window_bounds = array<i64: 1, 64, 128>}]} {
    %c0 = arith.constant 0 : index
    %c0_0 = arith.constant 0 : index
    %c0_1 = arith.constant 0 : index
    %0 = vector.load %arg2[%c0, %c0_0, %c0_1] : memref<1x64x128xf32, #tpu.memory_space<vmem>>, vector<1x64x128xf32>
    %cst = arith.constant dense<0.000000e+00> : vector<1x128xf32>
    %1 = vector.multi_reduction <add>, %0, %cst [1] : vector<1x64x128xf32> to vector<1x128xf32>
    %2 = vector.shape_cast %1 : vector<1x128xf32> to vector<1x1x128xf32>
    %cst_2 = arith.constant 6.400000e+01 : f32
    %3 = vector.broadcast %cst_2 : f32 to vector<1x1x128xf32>
    %4 = arith.divf %2, %3 : vector<1x1x128xf32>
    %5 = vector.broadcast %4 : vector<1x1x128xf32> to vector<1x64x128xf32>
    %6 = arith.subf %0, %5 : vector<1x64x128xf32>
    %7 = arith.mulf %6, %6 : vector<1x64x128xf32>
    %cst_3 = arith.constant dense<0.000000e+00> : vector<1x128xf32>
    %8 = vector.multi_reduction <add>, %7, %cst_3 [1] : vector<1x64x128xf32> to vector<1x128xf32>
    %9 = vector.shape_cast %8 : vector<1x128xf32> to vector<1x1x128xf32>
    %cst_4 = arith.constant 6.400000e+01 : f32
    %10 = vector.broadcast %cst_4 : f32 to vector<1x1x128xf32>
    %11 = arith.divf %9, %10 : vector<1x1x128xf32>
    %12 = vector.broadcast %4 : vector<1x1x128xf32> to vector<1x64x128xf32>
    %13 = arith.subf %0, %12 : vector<1x64x128xf32>
    %cst_5 = arith.constant 9.99999974E-6 : f32
    %14 = vector.broadcast %cst_5 : f32 to vector<1x1x128xf32>
    %15 = arith.addf %11, %14 : vector<1x1x128xf32>
    %16 = math.rsqrt %15 : vector<1x1x128xf32>
    %17 = vector.broadcast %16 : vector<1x1x128xf32> to vector<1x64x128xf32>
    %18 = arith.mulf %13, %17 : vector<1x64x128xf32>
    %cst_6 = arith.constant 0.000000e+00 : f32
    %19 = vector.broadcast %cst_6 : f32 to vector<1x64x128xf32>
    %20 = arith.cmpf oge, %18, %19 : vector<1x64x128xf32>
    %cst_7 = arith.constant 2.000000e-01 : f32
    %21 = vector.broadcast %cst_7 : f32 to vector<1x64x128xf32>
    %22 = arith.mulf %21, %18 : vector<1x64x128xf32>
    %23 = arith.select %20, %18, %22 : vector<1x64x128xi1>, vector<1x64x128xf32>
    %c0_8 = arith.constant 0 : index
    %c0_9 = arith.constant 0 : index
    %c0_10 = arith.constant 0 : index
    %24 = vector.load %arg3[%c0_8, %c0_9, %c0_10] : memref<1x64x128xf32, #tpu.memory_space<vmem>>, vector<1x64x128xf32>
    tpu.vector_store %arg3[%c0_8, %c0_9, %c0_10], %23 {strides = array<i32>} : memref<1x64x128xf32, #tpu.memory_space<vmem>>, vector<1x64x128xf32>,
    return
  }
  func.func @transform_0(%arg0: i32, %arg1: i32) -> (i32, i32, i32) {
    %c0_i32 = arith.constant 0 : i32
    %c0_i32_0 = arith.constant 0 : i32
    return %arg0, %c0_i32, %arg1 : i32, i32, i32
  }
  func.func @transform_1(%arg0: i32, %arg1: i32) -> (i32, i32, i32) {
    %c0_i32 = arith.constant 0 : i32
    %c0_i32_0 = arith.constant 0 : i32
    return %arg0, %c0_i32, %arg1 : i32, i32, i32
  }
}

module attributes {stable_mosaic.version = 11 : i64} {
  func.func @_matmul_bias_kernel(%arg0: i32, %arg1: i32, %arg2: i32, %arg3: memref<32x512xbf16, #tpu.memory_space<vmem>>, %arg4: memref<512x256xbf16, #tpu.memory_space<vmem>>, %arg5: memref<1x256xf32, #tpu.memory_space<vmem>>, %arg6: memref<32x256xf32, #tpu.memory_space<vmem>>, %arg7: memref<32x256xf32, #tpu.memory_space<vmem>>) attributes {dimension_semantics = [#tpu.dimension_semantics<parallel>, #tpu.dimension_semantics<parallel>, #tpu.dimension_semantics<arbitrary>], iteration_bounds = array<i64: 1, 1, 4>, scalar_prefetch = 0 : i64, scratch_operands = 1 : i64, tpu.core_type = #tpu.core_type<tc>, window_params = [{transform_indices = @transform_0, window_bounds = array<i64: 32, 512>}, {transform_indices = @transform_1, window_bounds = array<i64: 512, 256>}, {transform_indices = @transform_2, window_bounds = array<i64: 1, 256>}, {transform_indices = @transform_3, window_bounds = array<i64: 32, 256>}]} {
    %c0_i32 = arith.constant 0 : i32
    %0 = arith.cmpi eq, %arg2, %c0_i32 : i32
    %1 = arith.extui %0 : i1 to i32
    %c0_i32_0 = arith.constant 0 : i32
    %2 = arith.cmpi ne, %1, %c0_i32_0 : i32
    scf.if %2 {
      %cst_9 = arith.constant 0.000000e+00 : f32
      %12 = vector.broadcast %cst_9 : f32 to vector<32x256xf32>
      %c0_10 = arith.constant 0 : index
      %c0_11 = arith.constant 0 : index
      %13 = vector.load %arg7[%c0_10, %c0_11] : memref<32x256xf32, #tpu.memory_space<vmem>>, vector<32x256xf32>
      tpu.vector_store %arg7[%c0_10, %c0_11], %12 {strides = array<i32>} : memref<32x256xf32, #tpu.memory_space<vmem>>, vector<32x256xf32>,
    } else {
    }
    %c0 = arith.constant 0 : index
    %c0_1 = arith.constant 0 : index
    %3 = vector.load %arg7[%c0, %c0_1] : memref<32x256xf32, #tpu.memory_space<vmem>>, vector<32x256xf32>
    %c0_2 = arith.constant 0 : index
    %c0_3 = arith.constant 0 : index
    %4 = vector.load %arg3[%c0_2, %c0_3] : memref<32x512xbf16, #tpu.memory_space<vmem>>, vector<32x512xbf16>
    %c0_4 = arith.constant 0 : index
    %c0_5 = arith.constant 0 : index
    %5 = vector.load %arg4[%c0_4, %c0_5] : memref<512x256xbf16, #tpu.memory_space<vmem>>, vector<512x256xbf16>
    %cst = arith.constant dense<0.000000e+00> : vector<32x256xf32>
    %6 = tpu.matmul %4, %5, %cst {dimension_numbers = #tpu.dot_dimension_numbers<[1], [0], [0], [1], [0, 0, 1, 1], [], []>} : vector<32x512xbf16>, vector<512x256xbf16>, vector<32x256xf32> -> vector<32x256xf32>
    %7 = arith.addf %3, %6 : vector<32x256xf32>
    %c0_6 = arith.constant 0 : index
    %c0_7 = arith.constant 0 : index
    %8 = vector.load %arg7[%c0_6, %c0_7] : memref<32x256xf32, #tpu.memory_space<vmem>>, vector<32x256xf32>
    tpu.vector_store %arg7[%c0_6, %c0_7], %7 {strides = array<i32>} : memref<32x256xf32, #tpu.memory_space<vmem>>, vector<32x256xf32>,
    %c3_i32 = arith.constant 3 : i32
    %9 = arith.cmpi eq, %arg2, %c3_i32 : i32
    %10 = arith.extui %9 : i1 to i32
    %c0_i32_8 = arith.constant 0 : i32
    %11 = arith.cmpi ne, %10, %c0_i32_8 : i32
    scf.if %11 {
      %c0_9 = arith.constant 0 : index
      %c0_10 = arith.constant 0 : index
      %12 = vector.load %arg7[%c0_9, %c0_10] : memref<32x256xf32, #tpu.memory_space<vmem>>, vector<32x256xf32>
      %c0_11 = arith.constant 0 : index
      %c0_12 = arith.constant 0 : index
      %13 = vector.load %arg5[%c0_11, %c0_12] : memref<1x256xf32, #tpu.memory_space<vmem>>, vector<1x256xf32>
      %14 = vector.broadcast %13 : vector<1x256xf32> to vector<32x256xf32>
      %15 = arith.addf %12, %14 : vector<32x256xf32>
      %c0_13 = arith.constant 0 : index
      %c0_14 = arith.constant 0 : index
      %16 = vector.load %arg6[%c0_13, %c0_14] : memref<32x256xf32, #tpu.memory_space<vmem>>, vector<32x256xf32>
      tpu.vector_store %arg6[%c0_13, %c0_14], %15 {strides = array<i32>} : memref<32x256xf32, #tpu.memory_space<vmem>>, vector<32x256xf32>,
    } else {
    }
    return
  }
  func.func @transform_0(%arg0: i32, %arg1: i32, %arg2: i32) -> (i32, i32) {
    %c0_i32 = arith.constant 0 : i32
    return %arg0, %arg2 : i32, i32
  }
  func.func @transform_1(%arg0: i32, %arg1: i32, %arg2: i32) -> (i32, i32) {
    %c0_i32 = arith.constant 0 : i32
    return %arg2, %arg1 : i32, i32
  }
  func.func @transform_2(%arg0: i32, %arg1: i32, %arg2: i32) -> (i32, i32) {
    %c0_i32 = arith.constant 0 : i32
    %c0_i32_0 = arith.constant 0 : i32
    return %c0_i32, %arg1 : i32, i32
  }
  func.func @transform_3(%arg0: i32, %arg1: i32, %arg2: i32) -> (i32, i32) {
    %c0_i32 = arith.constant 0 : i32
    return %arg0, %arg1 : i32, i32
  }
}

module attributes {stable_mosaic.version = 11 : i64} {
  func.func @_inorm_lrelu_kernel(%arg0: i32, %arg1: i32, %arg2: memref<1x16x128xf32, #tpu.memory_space<vmem>>, %arg3: memref<1x16x128xf32, #tpu.memory_space<vmem>>) attributes {dimension_semantics = [#tpu.dimension_semantics<parallel>, #tpu.dimension_semantics<parallel>], iteration_bounds = array<i64: 2, 2>, scalar_prefetch = 0 : i64, scratch_operands = 0 : i64, tpu.core_type = #tpu.core_type<tc>, window_params = [{transform_indices = @transform_0, window_bounds = array<i64: 1, 16, 128>}, {transform_indices = @transform_1, window_bounds = array<i64: 1, 16, 128>}]} {
    %c0 = arith.constant 0 : index
    %c0_0 = arith.constant 0 : index
    %c0_1 = arith.constant 0 : index
    %0 = vector.load %arg2[%c0, %c0_0, %c0_1] : memref<1x16x128xf32, #tpu.memory_space<vmem>>, vector<1x16x128xf32>
    %cst = arith.constant dense<0.000000e+00> : vector<1x128xf32>
    %1 = vector.multi_reduction <add>, %0, %cst [1] : vector<1x16x128xf32> to vector<1x128xf32>
    %2 = vector.shape_cast %1 : vector<1x128xf32> to vector<1x1x128xf32>
    %cst_2 = arith.constant 1.600000e+01 : f32
    %3 = vector.broadcast %cst_2 : f32 to vector<1x1x128xf32>
    %4 = arith.divf %2, %3 : vector<1x1x128xf32>
    %5 = vector.broadcast %4 : vector<1x1x128xf32> to vector<1x16x128xf32>
    %6 = arith.subf %0, %5 : vector<1x16x128xf32>
    %7 = arith.mulf %6, %6 : vector<1x16x128xf32>
    %cst_3 = arith.constant dense<0.000000e+00> : vector<1x128xf32>
    %8 = vector.multi_reduction <add>, %7, %cst_3 [1] : vector<1x16x128xf32> to vector<1x128xf32>
    %9 = vector.shape_cast %8 : vector<1x128xf32> to vector<1x1x128xf32>
    %cst_4 = arith.constant 1.600000e+01 : f32
    %10 = vector.broadcast %cst_4 : f32 to vector<1x1x128xf32>
    %11 = arith.divf %9, %10 : vector<1x1x128xf32>
    %12 = vector.broadcast %4 : vector<1x1x128xf32> to vector<1x16x128xf32>
    %13 = arith.subf %0, %12 : vector<1x16x128xf32>
    %cst_5 = arith.constant 9.99999974E-6 : f32
    %14 = vector.broadcast %cst_5 : f32 to vector<1x1x128xf32>
    %15 = arith.addf %11, %14 : vector<1x1x128xf32>
    %16 = math.rsqrt %15 : vector<1x1x128xf32>
    %17 = vector.broadcast %16 : vector<1x1x128xf32> to vector<1x16x128xf32>
    %18 = arith.mulf %13, %17 : vector<1x16x128xf32>
    %cst_6 = arith.constant 0.000000e+00 : f32
    %19 = vector.broadcast %cst_6 : f32 to vector<1x16x128xf32>
    %20 = arith.cmpf oge, %18, %19 : vector<1x16x128xf32>
    %cst_7 = arith.constant 2.000000e-01 : f32
    %21 = vector.broadcast %cst_7 : f32 to vector<1x16x128xf32>
    %22 = arith.mulf %21, %18 : vector<1x16x128xf32>
    %23 = arith.select %20, %18, %22 : vector<1x16x128xi1>, vector<1x16x128xf32>
    %c0_8 = arith.constant 0 : index
    %c0_9 = arith.constant 0 : index
    %c0_10 = arith.constant 0 : index
    %24 = vector.load %arg3[%c0_8, %c0_9, %c0_10] : memref<1x16x128xf32, #tpu.memory_space<vmem>>, vector<1x16x128xf32>
    tpu.vector_store %arg3[%c0_8, %c0_9, %c0_10], %23 {strides = array<i32>} : memref<1x16x128xf32, #tpu.memory_space<vmem>>, vector<1x16x128xf32>,
    return
  }
  func.func @transform_0(%arg0: i32, %arg1: i32) -> (i32, i32, i32) {
    %c0_i32 = arith.constant 0 : i32
    %c0_i32_0 = arith.constant 0 : i32
    return %arg0, %c0_i32, %arg1 : i32, i32, i32
  }
  func.func @transform_1(%arg0: i32, %arg1: i32) -> (i32, i32, i32) {
    %c0_i32 = arith.constant 0 : i32
    %c0_i32_0 = arith.constant 0 : i32
    return %arg0, %c0_i32, %arg1 : i32, i32, i32
  }
}

module attributes {stable_mosaic.version = 11 : i64} {
  func.func @_matmul_bias_kernel(%arg0: i32, %arg1: i32, %arg2: i32, %arg3: memref<24x512xbf16, #tpu.memory_space<vmem>>, %arg4: memref<512x256xbf16, #tpu.memory_space<vmem>>, %arg5: memref<1x256xf32, #tpu.memory_space<vmem>>, %arg6: memref<24x256xf32, #tpu.memory_space<vmem>>, %arg7: memref<24x256xf32, #tpu.memory_space<vmem>>) attributes {dimension_semantics = [#tpu.dimension_semantics<parallel>, #tpu.dimension_semantics<parallel>, #tpu.dimension_semantics<arbitrary>], iteration_bounds = array<i64: 1, 2, 8>, scalar_prefetch = 0 : i64, scratch_operands = 1 : i64, tpu.core_type = #tpu.core_type<tc>, window_params = [{transform_indices = @transform_0, window_bounds = array<i64: 24, 512>}, {transform_indices = @transform_1, window_bounds = array<i64: 512, 256>}, {transform_indices = @transform_2, window_bounds = array<i64: 1, 256>}, {transform_indices = @transform_3, window_bounds = array<i64: 24, 256>}]} {
    %c0_i32 = arith.constant 0 : i32
    %0 = arith.cmpi eq, %arg2, %c0_i32 : i32
    %1 = arith.extui %0 : i1 to i32
    %c0_i32_0 = arith.constant 0 : i32
    %2 = arith.cmpi ne, %1, %c0_i32_0 : i32
    scf.if %2 {
      %cst_9 = arith.constant 0.000000e+00 : f32
      %12 = vector.broadcast %cst_9 : f32 to vector<24x256xf32>
      %c0_10 = arith.constant 0 : index
      %c0_11 = arith.constant 0 : index
      %13 = vector.load %arg7[%c0_10, %c0_11] : memref<24x256xf32, #tpu.memory_space<vmem>>, vector<24x256xf32>
      tpu.vector_store %arg7[%c0_10, %c0_11], %12 {strides = array<i32>} : memref<24x256xf32, #tpu.memory_space<vmem>>, vector<24x256xf32>,
    } else {
    }
    %c0 = arith.constant 0 : index
    %c0_1 = arith.constant 0 : index
    %3 = vector.load %arg7[%c0, %c0_1] : memref<24x256xf32, #tpu.memory_space<vmem>>, vector<24x256xf32>
    %c0_2 = arith.constant 0 : index
    %c0_3 = arith.constant 0 : index
    %4 = vector.load %arg3[%c0_2, %c0_3] : memref<24x512xbf16, #tpu.memory_space<vmem>>, vector<24x512xbf16>
    %c0_4 = arith.constant 0 : index
    %c0_5 = arith.constant 0 : index
    %5 = vector.load %arg4[%c0_4, %c0_5] : memref<512x256xbf16, #tpu.memory_space<vmem>>, vector<512x256xbf16>
    %cst = arith.constant dense<0.000000e+00> : vector<24x256xf32>
    %6 = tpu.matmul %4, %5, %cst {dimension_numbers = #tpu.dot_dimension_numbers<[1], [0], [0], [1], [0, 0, 1, 1], [], []>} : vector<24x512xbf16>, vector<512x256xbf16>, vector<24x256xf32> -> vector<24x256xf32>
    %7 = arith.addf %3, %6 : vector<24x256xf32>
    %c0_6 = arith.constant 0 : index
    %c0_7 = arith.constant 0 : index
    %8 = vector.load %arg7[%c0_6, %c0_7] : memref<24x256xf32, #tpu.memory_space<vmem>>, vector<24x256xf32>
    tpu.vector_store %arg7[%c0_6, %c0_7], %7 {strides = array<i32>} : memref<24x256xf32, #tpu.memory_space<vmem>>, vector<24x256xf32>,
    %c7_i32 = arith.constant 7 : i32
    %9 = arith.cmpi eq, %arg2, %c7_i32 : i32
    %10 = arith.extui %9 : i1 to i32
    %c0_i32_8 = arith.constant 0 : i32
    %11 = arith.cmpi ne, %10, %c0_i32_8 : i32
    scf.if %11 {
      %c0_9 = arith.constant 0 : index
      %c0_10 = arith.constant 0 : index
      %12 = vector.load %arg7[%c0_9, %c0_10] : memref<24x256xf32, #tpu.memory_space<vmem>>, vector<24x256xf32>
      %c0_11 = arith.constant 0 : index
      %c0_12 = arith.constant 0 : index
      %13 = vector.load %arg5[%c0_11, %c0_12] : memref<1x256xf32, #tpu.memory_space<vmem>>, vector<1x256xf32>
      %14 = vector.broadcast %13 : vector<1x256xf32> to vector<24x256xf32>
      %15 = arith.addf %12, %14 : vector<24x256xf32>
      %c0_13 = arith.constant 0 : index
      %c0_14 = arith.constant 0 : index
      %16 = vector.load %arg6[%c0_13, %c0_14] : memref<24x256xf32, #tpu.memory_space<vmem>>, vector<24x256xf32>
      tpu.vector_store %arg6[%c0_13, %c0_14], %15 {strides = array<i32>} : memref<24x256xf32, #tpu.memory_space<vmem>>, vector<24x256xf32>,
    } else {
    }
    return
  }
  func.func @transform_0(%arg0: i32, %arg1: i32, %arg2: i32) -> (i32, i32) {
    %c0_i32 = arith.constant 0 : i32
    return %arg0, %arg2 : i32, i32
  }
  func.func @transform_1(%arg0: i32, %arg1: i32, %arg2: i32) -> (i32, i32) {
    %c0_i32 = arith.constant 0 : i32
    return %arg2, %arg1 : i32, i32
  }
  func.func @transform_2(%arg0: i32, %arg1: i32, %arg2: i32) -> (i32, i32) {
    %c0_i32 = arith.constant 0 : i32
    %c0_i32_0 = arith.constant 0 : i32
    return %c0_i32, %arg1 : i32, i32
  }
  func.func @transform_3(%arg0: i32, %arg1: i32, %arg2: i32) -> (i32, i32) {
    %c0_i32 = arith.constant 0 : i32
    return %arg0, %arg1 : i32, i32
  }
}

module attributes {stable_mosaic.version = 11 : i64} {
  func.func @_inorm_lrelu_kernel(%arg0: i32, %arg1: i32, %arg2: memref<1x9x128xf32, #tpu.memory_space<vmem>>, %arg3: memref<1x9x128xf32, #tpu.memory_space<vmem>>) attributes {dimension_semantics = [#tpu.dimension_semantics<parallel>, #tpu.dimension_semantics<parallel>], iteration_bounds = array<i64: 2, 4>, scalar_prefetch = 0 : i64, scratch_operands = 0 : i64, tpu.core_type = #tpu.core_type<tc>, window_params = [{transform_indices = @transform_0, window_bounds = array<i64: 1, 9, 128>}, {transform_indices = @transform_1, window_bounds = array<i64: 1, 9, 128>}]} {
    %c0 = arith.constant 0 : index
    %c0_0 = arith.constant 0 : index
    %c0_1 = arith.constant 0 : index
    %0 = vector.load %arg2[%c0, %c0_0, %c0_1] : memref<1x9x128xf32, #tpu.memory_space<vmem>>, vector<1x9x128xf32>
    %cst = arith.constant dense<0.000000e+00> : vector<1x128xf32>
    %1 = vector.multi_reduction <add>, %0, %cst [1] : vector<1x9x128xf32> to vector<1x128xf32>
    %2 = vector.shape_cast %1 : vector<1x128xf32> to vector<1x1x128xf32>
    %cst_2 = arith.constant 9.000000e+00 : f32
    %3 = vector.broadcast %cst_2 : f32 to vector<1x1x128xf32>
    %4 = arith.divf %2, %3 : vector<1x1x128xf32>
    %5 = vector.broadcast %4 : vector<1x1x128xf32> to vector<1x9x128xf32>
    %6 = arith.subf %0, %5 : vector<1x9x128xf32>
    %7 = arith.mulf %6, %6 : vector<1x9x128xf32>
    %cst_3 = arith.constant dense<0.000000e+00> : vector<1x128xf32>
    %8 = vector.multi_reduction <add>, %7, %cst_3 [1] : vector<1x9x128xf32> to vector<1x128xf32>
    %9 = vector.shape_cast %8 : vector<1x128xf32> to vector<1x1x128xf32>
    %cst_4 = arith.constant 9.000000e+00 : f32
    %10 = vector.broadcast %cst_4 : f32 to vector<1x1x128xf32>
    %11 = arith.divf %9, %10 : vector<1x1x128xf32>
    %12 = vector.broadcast %4 : vector<1x1x128xf32> to vector<1x9x128xf32>
    %13 = arith.subf %0, %12 : vector<1x9x128xf32>
    %cst_5 = arith.constant 9.99999974E-6 : f32
    %14 = vector.broadcast %cst_5 : f32 to vector<1x1x128xf32>
    %15 = arith.addf %11, %14 : vector<1x1x128xf32>
    %16 = math.rsqrt %15 : vector<1x1x128xf32>
    %17 = vector.broadcast %16 : vector<1x1x128xf32> to vector<1x9x128xf32>
    %18 = arith.mulf %13, %17 : vector<1x9x128xf32>
    %cst_6 = arith.constant 0.000000e+00 : f32
    %19 = vector.broadcast %cst_6 : f32 to vector<1x9x128xf32>
    %20 = arith.cmpf oge, %18, %19 : vector<1x9x128xf32>
    %cst_7 = arith.constant 2.000000e-01 : f32
    %21 = vector.broadcast %cst_7 : f32 to vector<1x9x128xf32>
    %22 = arith.mulf %21, %18 : vector<1x9x128xf32>
    %23 = arith.select %20, %18, %22 : vector<1x9x128xi1>, vector<1x9x128xf32>
    %c0_8 = arith.constant 0 : index
    %c0_9 = arith.constant 0 : index
    %c0_10 = arith.constant 0 : index
    %24 = vector.load %arg3[%c0_8, %c0_9, %c0_10] : memref<1x9x128xf32, #tpu.memory_space<vmem>>, vector<1x9x128xf32>
    tpu.vector_store %arg3[%c0_8, %c0_9, %c0_10], %23 {strides = array<i32>} : memref<1x9x128xf32, #tpu.memory_space<vmem>>, vector<1x9x128xf32>,
    return
  }
  func.func @transform_0(%arg0: i32, %arg1: i32) -> (i32, i32, i32) {
    %c0_i32 = arith.constant 0 : i32
    %c0_i32_0 = arith.constant 0 : i32
    return %arg0, %c0_i32, %arg1 : i32, i32, i32
  }
  func.func @transform_1(%arg0: i32, %arg1: i32) -> (i32, i32, i32) {
    %c0_i32 = arith.constant 0 : i32
    %c0_i32_0 = arith.constant 0 : i32
    return %arg0, %c0_i32, %arg1 : i32, i32, i32
  }
}

module attributes {stable_mosaic.version = 11 : i64} {
  func.func @_matmul_bias_kernel(%arg0: i32, %arg1: i32, %arg2: i32, %arg3: memref<8x512xbf16, #tpu.memory_space<vmem>>, %arg4: memref<512x128xbf16, #tpu.memory_space<vmem>>, %arg5: memref<1x128xf32, #tpu.memory_space<vmem>>, %arg6: memref<8x128xf32, #tpu.memory_space<vmem>>, %arg7: memref<8x128xf32, #tpu.memory_space<vmem>>) attributes {dimension_semantics = [#tpu.dimension_semantics<parallel>, #tpu.dimension_semantics<parallel>, #tpu.dimension_semantics<arbitrary>], iteration_bounds = array<i64: 1, 1, 16>, scalar_prefetch = 0 : i64, scratch_operands = 1 : i64, tpu.core_type = #tpu.core_type<tc>, window_params = [{transform_indices = @transform_0, window_bounds = array<i64: 8, 512>}, {transform_indices = @transform_1, window_bounds = array<i64: 512, 128>}, {transform_indices = @transform_2, window_bounds = array<i64: 1, 128>}, {transform_indices = @transform_3, window_bounds = array<i64: 8, 128>}]} {
    %c0_i32 = arith.constant 0 : i32
    %0 = arith.cmpi eq, %arg2, %c0_i32 : i32
    %1 = arith.extui %0 : i1 to i32
    %c0_i32_0 = arith.constant 0 : i32
    %2 = arith.cmpi ne, %1, %c0_i32_0 : i32
    scf.if %2 {
      %cst_9 = arith.constant 0.000000e+00 : f32
      %12 = vector.broadcast %cst_9 : f32 to vector<8x128xf32>
      %c0_10 = arith.constant 0 : index
      %c0_11 = arith.constant 0 : index
      %13 = vector.load %arg7[%c0_10, %c0_11] : memref<8x128xf32, #tpu.memory_space<vmem>>, vector<8x128xf32>
      tpu.vector_store %arg7[%c0_10, %c0_11], %12 {strides = array<i32>} : memref<8x128xf32, #tpu.memory_space<vmem>>, vector<8x128xf32>,
    } else {
    }
    %c0 = arith.constant 0 : index
    %c0_1 = arith.constant 0 : index
    %3 = vector.load %arg7[%c0, %c0_1] : memref<8x128xf32, #tpu.memory_space<vmem>>, vector<8x128xf32>
    %c0_2 = arith.constant 0 : index
    %c0_3 = arith.constant 0 : index
    %4 = vector.load %arg3[%c0_2, %c0_3] : memref<8x512xbf16, #tpu.memory_space<vmem>>, vector<8x512xbf16>
    %c0_4 = arith.constant 0 : index
    %c0_5 = arith.constant 0 : index
    %5 = vector.load %arg4[%c0_4, %c0_5] : memref<512x128xbf16, #tpu.memory_space<vmem>>, vector<512x128xbf16>
    %cst = arith.constant dense<0.000000e+00> : vector<8x128xf32>
    %6 = tpu.matmul %4, %5, %cst {dimension_numbers = #tpu.dot_dimension_numbers<[1], [0], [0], [1], [0, 0, 1, 1], [], []>} : vector<8x512xbf16>, vector<512x128xbf16>, vector<8x128xf32> -> vector<8x128xf32>
    %7 = arith.addf %3, %6 : vector<8x128xf32>
    %c0_6 = arith.constant 0 : index
    %c0_7 = arith.constant 0 : index
    %8 = vector.load %arg7[%c0_6, %c0_7] : memref<8x128xf32, #tpu.memory_space<vmem>>, vector<8x128xf32>
    tpu.vector_store %arg7[%c0_6, %c0_7], %7 {strides = array<i32>} : memref<8x128xf32, #tpu.memory_space<vmem>>, vector<8x128xf32>,
    %c15_i32 = arith.constant 15 : i32
    %9 = arith.cmpi eq, %arg2, %c15_i32 : i32
    %10 = arith.extui %9 : i1 to i32
    %c0_i32_8 = arith.constant 0 : i32
    %11 = arith.cmpi ne, %10, %c0_i32_8 : i32
    scf.if %11 {
      %c0_9 = arith.constant 0 : index
      %c0_10 = arith.constant 0 : index
      %12 = vector.load %arg7[%c0_9, %c0_10] : memref<8x128xf32, #tpu.memory_space<vmem>>, vector<8x128xf32>
      %c0_11 = arith.constant 0 : index
      %c0_12 = arith.constant 0 : index
      %13 = vector.load %arg5[%c0_11, %c0_12] : memref<1x128xf32, #tpu.memory_space<vmem>>, vector<1x128xf32>
      %14 = vector.broadcast %13 : vector<1x128xf32> to vector<8x128xf32>
      %15 = arith.addf %12, %14 : vector<8x128xf32>
      %c0_13 = arith.constant 0 : index
      %c0_14 = arith.constant 0 : index
      %16 = vector.load %arg6[%c0_13, %c0_14] : memref<8x128xf32, #tpu.memory_space<vmem>>, vector<8x128xf32>
      tpu.vector_store %arg6[%c0_13, %c0_14], %15 {strides = array<i32>} : memref<8x128xf32, #tpu.memory_space<vmem>>, vector<8x128xf32>,
    } else {
    }
    return
  }
  func.func @transform_0(%arg0: i32, %arg1: i32, %arg2: i32) -> (i32, i32) {
    %c0_i32 = arith.constant 0 : i32
    return %arg0, %arg2 : i32, i32
  }
  func.func @transform_1(%arg0: i32, %arg1: i32, %arg2: i32) -> (i32, i32) {
    %c0_i32 = arith.constant 0 : i32
    return %arg2, %arg1 : i32, i32
  }
  func.func @transform_2(%arg0: i32, %arg1: i32, %arg2: i32) -> (i32, i32) {
    %c0_i32 = arith.constant 0 : i32
    %c0_i32_0 = arith.constant 0 : i32
    return %c0_i32, %arg1 : i32, i32
  }
  func.func @transform_3(%arg0: i32, %arg1: i32, %arg2: i32) -> (i32, i32) {
    %c0_i32 = arith.constant 0 : i32
    return %arg0, %arg1 : i32, i32
  }
}

</mosaic_0001>

<bundles_post_ra>
// kernel: discriminator_forward.8
= control target key start
LH: loop header
LB: loop body
LE: loop exit
PB: predicated region body
PF: predicated region fallthrough
CT: control target
= control target key end

     0   :  { %8 = vsyncpa [#allocation4], 0  ;;  %s1804_s0 = inlined_call_operand.hbm [shape: bf16[512,128], index: 0, kind: input, shape index: {}]   ;;  %s1805_s1 = inlined_call_operand.hbm [shape: bf16[128,128], index: 1, kind: input, shape index: {}]   ;;  %s1806_s2 = inlined_call_operand.hbm [shape: f32[1,128], index: 2, kind: input, shape index: {}]   ;;  %s1807_s3 = inlined_call_operand.hbm [shape: f32[512,128], index: 3, kind: output, shape index: {}]  }
   0x1   :  { %9 = vsyncpa [#allocation7], 0 }
   0x2   :  { %10 = vsyncpa [#allocation5], 0  ;;  %s1655_s12 = smov [#allocation6]   ;;  %s1656_s14 = smov [#allocation3]  }
   0x3   :  { %s28_s13 = sshll.u32 %s1655_s12, 4  ;;  %s16_s15 = sshll.u32 %s1656_s14, 4  ;;  %s29_s13 = int_to_ptr.vmem [resolvable:$true] %s28_s13  ;;  %s1683_s15 = int_to_ptr.vmem [resolvable:$true] %s16_s15 }
   0x4   :  { %s1561_s18 = scalar_lea.hbm %s1805_s1, 1024 }
   0x5   :  { %p1562_p0 = scmp.ne.s32.totalorder %s1805_s1, %s1561_s18  ;;  %p1565_p1 = scmp.lt.u32.totalorder %s1561_s18, %s1805_s1 }
   0x7   :  { %p1567_p2 = pnand %p1565_p1, %p1562_p0 }
   0x9   :  { %1570 = shalt.err (!%p1567_p2)
}
   0xa   :  { %s1571_s23 = scalar_lea.vmem %s29_s13, 1024  ;;  %p1576_p4 = scmp.lt.s32.totalorder %s29_s13, %s29_s13 }
   0xb   :  { %p1572_p3 = scmp.ne.s32.totalorder %s29_s13, %s1571_s23  ;;  %p1577_p5 = scmp.lt.s32.totalorder %s1571_s23, %s1571_s23 }
   0xd   :  { %p1578_p6 = por %p1577_p5, %p1576_p4 }
   0xf   :  { %p1579_p7 = pnand %p1578_p6, %p1572_p3 }
  0x11   :  { %1582 = shalt.err (!%p1579_p7)
}
  0x12   :  { %s1657_s24 = smov 64   ;;  %s1658_s25 = smov 4  }
  0x13   :  { %34 = dma.hbm_to_vmem [thread:$0]  %s1805_s1, 1024, %s29_s13, [#allocation7], %s1657_s24, %s1657_s24, %s1658_s25  }
  0x14   :  { %s1583_s30 = scalar_lea.hbm %s1804_s0, 4096 }
  0x15   :  { %p1584_p8 = scmp.ne.s32.totalorder %s1804_s0, %s1583_s30  ;;  %p1587_p9 = scmp.lt.u32.totalorder %s1583_s30, %s1804_s0 }
  0x17   :  { %p1589_p10 = pnand %p1587_p9, %p1584_p8 }
  0x19   :  { %1592 = shalt.err (!%p1589_p10)
}
  0x1a   :  { %s1593_s8 = scalar_lea.vmem %s1683_s15, 4096  ;;  %p1598_p12 = scmp.lt.s32.totalorder %s1683_s15, %s1683_s15 }
  0x1b   :  { %p1594_p11 = scmp.ne.s32.totalorder %s1683_s15, %s1593_s8  ;;  %p1599_p13 = scmp.lt.s32.totalorder %s1593_s8, %s1593_s8 }
  0x1d   :  { %p1600_p0 = por %p1599_p13, %p1598_p12 }
  0x1f   :  { %p1601_p1 = pnand %p1600_p0, %p1594_p11 }
  0x21   :  { %1604 = shalt.err (!%p1601_p1)
}
  0x22   :  { %22 = dma.hbm_to_vmem [thread:$0]  %s1804_s0, 4096, %s1683_s15, [#allocation4], %s1657_s24, %s1657_s24, %s1658_s25  }
  0x23   :  { %s1659_s10 = smov [#allocation8]   ;;  %s1605_s14 = scalar_lea.hbm %s1806_s2, 16 }
  0x24   :  { %s41_s11 = sshll.u32 %s1659_s10, 4  ;;  %p1606_p2 = scmp.ne.s32.totalorder %s1806_s2, %s1605_s14  ;;  %s42_s11 = int_to_ptr.vmem [resolvable:$true] %s41_s11 }
  0x25   :  { %p1609_p3 = scmp.lt.u32.totalorder %s1605_s14, %s1806_s2 }
  0x27   :  { %p1611_p4 = pnand %p1609_p3, %p1606_p2 }
  0x29   :  { %1614 = shalt.err (!%p1611_p4)
}
  0x2a   :  { %s1615_s20 = scalar_lea.vmem %s42_s11, 16  ;;  %s1619_s0 = scalar_lea.vmem %s42_s11, 32 }
  0x2b   :  { %p1616_p5 = scmp.ne.s32.totalorder %s42_s11, %s1615_s20  ;;  %p1620_p6 = scmp.lt.s32.totalorder %s42_s11, %s42_s11 }
  0x2c   :  { %p1621_p7 = scmp.lt.s32.totalorder %s1619_s0, %s1615_s20 }
  0x2e   :  { %p1622_p8 = por %p1621_p7, %p1620_p6 }
  0x30   :  { %p1623_p9 = pnand %p1622_p8, %p1616_p5 }
  0x32   :  { %1626 = shalt.err (!%p1623_p9)
}
  0x33   :  { %44 = dma.hbm_to_vmem [thread:$0]  %s1806_s2, 16, %s42_s11, [#allocation7]  }
  0x34   :  { %1649 = dma.done.wait [#allocation4], 4096  }
  0x35   :  { %1650 = vsyncadd [#allocation4], 4294963200 }
  0x36   :  { %1651 = dma.done.wait [#allocation7], 1040  }
  0x37   :  { %1652 = vsyncadd [#allocation7], 4294966256  ;;  %v1521_v0 = vld [vmem:[#allocation6] sm:$0xff]   ;;  %v1522_v1 = vld [vmem:[#allocation6 + $0x8] sm:$0xff]   ;;  %s1660_s2 = smov [#allocation9]  }
  0x38   :  { %1417 = vmatprep.subr.bf16.mxu0 %v1521_v0  ;;  %1497 = vmatprep.subr.bf16.mxu1 %v1521_v0  ;;  %v1523_v2 = vld [vmem:[#allocation6 + $0x10] sm:$0xff]   ;;  %v1524_v3 = vld [vmem:[#allocation6 + $0x18] sm:$0xff]   ;;  %v1529_v4 = vld [vmem:[#allocation3] sm:$0xff]   ;;  %s1323_s22 = sshll.u32 %s1660_s2, 4  ;;  %s1324_s22 = int_to_ptr.vmem [resolvable:$true] %s1323_s22 }
  0x39   :  { %1418 = vmatpush3.bf16.msra.mxu0 %v1521_v0  ;;  %1505 = vmatpush3.bf16.msra.mxu1 %v1521_v0  ;;  %v1530_v5 = vld [vmem:[#allocation3 + $0x80] sm:$0xff]   ;;  %v1526_v7 = vld [vmem:[#allocation6 + $0x28] sm:$0xff]   ;;  %v1527_v8 = vld [vmem:[#allocation6 + $0x30] sm:$0xff]   ;;  %s1627_s23 = scalar_lea.vmem %s1324_s22, 8192  ;;  %p1632_p11 = scmp.lt.s32.totalorder %s1324_s22, %s1324_s22 }
  0x3a   :  { %1419 = vmatprep.subr.bf16.mxu0 %v1522_v1  ;;  %1498 = vmatprep.subr.bf16.mxu1 %v1522_v1  ;;  %v1525_v6 = vld [vmem:[#allocation6 + $0x20] sm:$0xff]   ;;  %v1528_v9 = vld [vmem:[#allocation6 + $0x38] sm:$0xff]   ;;  %v1531_v10 = vld [vmem:[#allocation3 + $0x8] sm:$0xff]   ;;  %p1628_p10 = scmp.ne.s32.totalorder %s1324_s22, %s1627_s23  ;;  %p1633_p12 = scmp.lt.s32.totalorder %s1627_s23, %s1627_s23 }
  0x3b   :  { %1433 = vmatprep.mubr.bf16.mxu0 %v1529_v4  ;;  %1465 = vmatprep.mubr.bf16.mxu1 %v1530_v5  ;;  %v1532_v11 = vld [vmem:[#allocation3 + $0x88] sm:$0xff]   ;;  %v1533_v12 = vld [vmem:[#allocation3 + $0x10] sm:$0xff]   ;;  %v1535_v14 = vld [vmem:[#allocation3 + $0x18] sm:$0xff]  }
  0x3c   :  { %v1534_v13 = vld [vmem:[#allocation3 + $0x90] sm:$0xff]   ;;  %v1536_v15 = vld [vmem:[#allocation3 + $0x98] sm:$0xff]   ;;  %v1537_v16 = vld [vmem:[#allocation3 + $0x20] sm:$0xff]   ;;  %p1634_p13 = por %p1633_p12, %p1632_p11 }
  0x3d   :  { %1420 = vmatpush3.bf16.msra.mxu0 %v1522_v1  ;;  %1506 = vmatpush3.bf16.msra.mxu1 %v1522_v1  ;;  %v1538_v17 = vld [vmem:[#allocation3 + $0xa0] sm:$0xff]   ;;  %v1539_v18 = vld [vmem:[#allocation3 + $0x28] sm:$0xff]   ;;  %v1541_v20 = vld [vmem:[#allocation3 + $0x30] sm:$0xff]  }
  0x3e   :  { %1421 = vmatprep.subr.bf16.mxu0 %v1523_v2  ;;  %1499 = vmatprep.subr.bf16.mxu1 %v1523_v2  ;;  %v1540_v19 = vld [vmem:[#allocation3 + $0xa8] sm:$0xff]   ;;  %v1542_v21 = vld [vmem:[#allocation3 + $0xb0] sm:$0xff]   ;;  %v1543_v22 = vld [vmem:[#allocation3 + $0x38] sm:$0xff]   ;;  %p1635_p0 = pnand %p1634_p13, %p1628_p10 }
  0x3f   :  { %v1544_v23 = vld [vmem:[#allocation3 + $0xb8] sm:$0xff]   ;;  %v1545_v24 = vld [vmem:[#allocation3 + $0x40] sm:$0xff]   ;;  %v1547_v26 = vld [vmem:[#allocation3 + $0x48] sm:$0xff]  }
  0x40   :  { %v1546_v25 = vld [vmem:[#allocation3 + $0xc0] sm:$0xff]   ;;  %v1548_v27 = vld [vmem:[#allocation3 + $0xc8] sm:$0xff]   ;;  %v1549_v28 = vld [vmem:[#allocation3 + $0x50] sm:$0xff]  }
  0x41   :  { %1422 = vmatpush3.bf16.msra.mxu0 %v1523_v2  ;;  %1507 = vmatpush3.bf16.msra.mxu1 %v1523_v2  ;;  %v1550_v29 = vld [vmem:[#allocation3 + $0xd0] sm:$0xff]   ;;  %v1551_v30 = vld [vmem:[#allocation3 + $0x58] sm:$0xff]   ;;  %v1553_v32 = vld [vmem:[#allocation3 + $0x60] sm:$0xff]  }
  0x42   :  { %1423 = vmatprep.subr.bf16.mxu0 %v1524_v3  ;;  %1500 = vmatprep.subr.bf16.mxu1 %v1524_v3  ;;  %v1552_v31 = vld [vmem:[#allocation3 + $0xd8] sm:$0xff]   ;;  %v1554_v33 = vld [vmem:[#allocation3 + $0xe0] sm:$0xff]   ;;  %v1555_v34 = vld [vmem:[#allocation3 + $0x68] sm:$0xff]  }
  0x43   :  { %v1556_v35 = vld [vmem:[#allocation3 + $0xe8] sm:$0xff]   ;;  %v1557_v36 = vld [vmem:[#allocation3 + $0x70] sm:$0xff]   ;;  %v1559_v38 = vld [vmem:[#allocation3 + $0x78] sm:$0xff]  }
  0x44   :  { %v1558_v37 = vld [vmem:[#allocation3 + $0xf0] sm:$0xff]   ;;  %v1560_v39 = vld [vmem:[#allocation3 + $0xf8] sm:$0xff]   ;;  %v1726_v40 = vld [vmem:[#allocation8] ss:$0 sm:$0xff] }
  0x45   :  { %1424 = vmatpush3.bf16.msra.mxu0 %v1524_v3  ;;  %1508 = vmatpush3.bf16.msra.mxu1 %v1524_v3 }
  0x46   :  { %1425 = vmatprep.subr.bf16.mxu0 %v1525_v6  ;;  %1501 = vmatprep.subr.bf16.mxu1 %v1525_v6 }
  0x49   :  { %1426 = vmatpush3.bf16.msra.mxu0 %v1525_v6  ;;  %1509 = vmatpush3.bf16.msra.mxu1 %v1525_v6 }
  0x4a   :  { %1427 = vmatprep.subr.bf16.mxu0 %v1526_v7  ;;  %1502 = vmatprep.subr.bf16.mxu1 %v1526_v7 }
  0x4d   :  { %1428 = vmatpush3.bf16.msra.mxu0 %v1526_v7  ;;  %1510 = vmatpush3.bf16.msra.mxu1 %v1526_v7 }
  0x4e   :  { %1429 = vmatprep.subr.bf16.mxu0 %v1527_v8  ;;  %1503 = vmatprep.subr.bf16.mxu1 %v1527_v8 }
  0x51   :  { %1430 = vmatpush3.bf16.msra.mxu0 %v1527_v8  ;;  %1511 = vmatpush3.bf16.msra.mxu1 %v1527_v8 }
  0x52   :  { %1431 = vmatprep.subr.bf16.mxu0 %v1528_v9  ;;  %1504 = vmatprep.subr.bf16.mxu1 %v1528_v9 }
  0x55   :  { %1432 = vmatpush3.bf16.msra.mxu0 %v1528_v9  ;;  %1512 = vmatpush3.bf16.msra.mxu1 %v1528_v9 }
  0x58   :  { %1434 = vmatmul.mubr.bf16.vlgmr.msra.gmra.mrb[0].mxu0 %v1531_v10  ;;  %1466 = vmatmul.mubr.bf16.vlgmr.msra.gmra.mrb[0].mxu1 %v1532_v11 }
  0x59   :  { %1437 = vmatprep.mubr.bf16.mxu0 %v1533_v12  ;;  %1469 = vmatprep.mubr.bf16.mxu1 %v1534_v13 }
  0x60   :  { %1438 = vmatmul.mubr.bf16.gmra.mrb[4].mxu0 %v1535_v14  ;;  %1470 = vmatmul.mubr.bf16.gmra.mrb[4].mxu1 %v1536_v15 }
  0x61   :  { %1441 = vmatprep.mubr.bf16.mxu0 %v1537_v16  ;;  %1473 = vmatprep.mubr.bf16.mxu1 %v1538_v17 }
  0x68   :  { %1442 = vmatmul.mubr.bf16.gmra.mrb[8].mxu0 %v1539_v18  ;;  %1474 = vmatmul.mubr.bf16.gmra.mrb[8].mxu1 %v1540_v19 }
  0x69   :  { %1445 = vmatprep.mubr.bf16.mxu0 %v1541_v20  ;;  %1477 = vmatprep.mubr.bf16.mxu1 %v1542_v21 }
  0x70   :  { %1446 = vmatmul.mubr.bf16.gmra.mrb[12].mxu0 %v1543_v22  ;;  %1478 = vmatmul.mubr.bf16.gmra.mrb[12].mxu1 %v1544_v23 }
  0x71   :  { %1449 = vmatprep.mubr.bf16.mxu0 %v1545_v24  ;;  %1481 = vmatprep.mubr.bf16.mxu1 %v1546_v25 }
  0x78   :  { %1450 = vmatmul.mubr.bf16.gmra.mrb[16].mxu0 %v1547_v26  ;;  %1482 = vmatmul.mubr.bf16.gmra.mrb[16].mxu1 %v1548_v27 }
  0x79   :  { %1453 = vmatprep.mubr.bf16.mxu0 %v1549_v28  ;;  %1485 = vmatprep.mubr.bf16.mxu1 %v1550_v29 }
  0x80   :  { %1454 = vmatmul.mubr.bf16.gmra.mrb[20].mxu0 %v1551_v30  ;;  %1486 = vmatmul.mubr.bf16.gmra.mrb[20].mxu1 %v1552_v31 }
  0x81   :  { %1457 = vmatprep.mubr.bf16.mxu0 %v1553_v32  ;;  %1489 = vmatprep.mubr.bf16.mxu1 %v1554_v33 }
  0x88   :  { %1458 = vmatmul.mubr.bf16.gmra.mrb[24].mxu0 %v1555_v34  ;;  %1490 = vmatmul.mubr.bf16.gmra.mrb[24].mxu1 %v1556_v35 }
  0x89   :  { %1461 = vmatprep.mubr.bf16.mxu0 %v1557_v36  ;;  %1493 = vmatprep.mubr.bf16.mxu1 %v1558_v37 }
  0x90   :  { %1462 = vmatmul.mubr.bf16.gmra.mrb[28].mxu0 %v1559_v38  ;;  %1494 = vmatmul.mubr.bf16.gmra.mrb[28].mxu1 %v1560_v39 }
 0x12b   :  { %v1435_v41 = vpop.f32.mrb[0].mxu0  ;;  %v1467_v42 = vpop.f32.mrb[0].mxu1 }
 0x12c   :  { %v1000_v43 = vadd.f32 %v1435_v41, %v1726_v40  ;;  %v1032_v44 = vadd.f32 %v1467_v42, %v1726_v40  ;;  %v541_v45 = vpop.f32.mrb[1].mxu0  ;;  %v669_v46 = vpop.f32.mrb[1].mxu1 }
 0x12d   :  { %v998_v47 = vadd.f32 %v1726_v40, %v541_v45  ;;  %v1030_v48 = vadd.f32 %v1726_v40, %v669_v46  ;;  %v1436_v49 = vpop.f32.mrb[2].mxu0  ;;  %v1468_v50 = vpop.f32.mrb[2].mxu1 }
 0x12e   :  { %vm1064_vm0 = vcmp.ge.f32.partialorder %v1000_v43, 0.0  ;;  %v1128_v51 = vmul.f32 0.2, %v1000_v43  ;;  %vm1096_vm1 = vcmp.ge.f32.partialorder %v1032_v44, 0.0  ;;  %v1160_v52 = vmul.f32 0.2, %v1032_v44 }
 0x12f   :  { %vm1062_vm2 = vcmp.ge.f32.partialorder %v998_v47, 0.0  ;;  %v1126_v53 = vmul.f32 0.2, %v998_v47  ;;  %vm1094_vm3 = vcmp.ge.f32.partialorder %v1030_v48, 0.0  ;;  %v1158_v54 = vmul.f32 0.2, %v1030_v48 }
 0x130   :  { %v1192_v55 = vsel %vm1064_vm0, %v1000_v43, %v1128_v51  ;;  %v1224_v56 = vsel %vm1096_vm1, %v1032_v44, %v1160_v52  ;;  %v1001_v57 = vadd.f32 %v1436_v49, %v1726_v40  ;;  %v1033_v58 = vadd.f32 %v1468_v50, %v1726_v40  ;;  %v544_v59 = vpop.f32.mrb[3].mxu0  ;;  %v672_v60 = vpop.f32.mrb[3].mxu1 }
 0x131   :  { %1256 = vst [vmem:[#allocation9 + $0x10] sm:$0xff] %v1192_v55  ;;  %1288 = vst [vmem:[#allocation9 + $0x110] sm:$0xff] %v1224_v56  ;;  %v1190_v61 = vsel %vm1062_vm2, %v998_v47, %v1126_v53  ;;  %v1222_v62 = vsel %vm1094_vm3, %v1030_v48, %v1158_v54  ;;  %v999_v63 = vadd.f32 %v1726_v40, %v544_v59 }
 0x132   :  { %v1031_v0 = vadd.f32 %v1726_v40, %v672_v60  ;;  %1254 = vst [vmem:[#allocation9] sm:$0xff] %v1190_v61  ;;  %1286 = vst [vmem:[#allocation9 + $0x100] sm:$0xff] %v1222_v62  ;;  %vm1065_vm4 = vcmp.ge.f32.partialorder %v1001_v57, 0.0  ;;  %v1129_v1 = vmul.f32 0.2, %v1001_v57  ;;  %vm1097_vm5 = vcmp.ge.f32.partialorder %v1033_v58, 0.0 }
 0x133   :  { %v1161_v2 = vmul.f32 0.2, %v1033_v58  ;;  %vm1063_vm6 = vcmp.ge.f32.partialorder %v999_v63, 0.0  ;;  %v1127_v3 = vmul.f32 0.2, %v999_v63  ;;  %v1439_v7 = vpop.f32.mrb[4].mxu0 }
 0x134   :  { %vm1095_vm7 = vcmp.ge.f32.partialorder %v1031_v0, 0.0  ;;  %v1159_v4 = vmul.f32 0.2, %v1031_v0  ;;  %v1193_v5 = vsel %vm1065_vm4, %v1001_v57, %v1129_v1  ;;  %v1471_v8 = vpop.f32.mrb[4].mxu1  ;;  %v1004_v11 = vadd.f32 %v1439_v7, %v1726_v40  ;;  %v557_v13 = vpop.f32.mrb[5].mxu0 }
 0x135   :  { %v1225_v6 = vsel %vm1097_vm5, %v1033_v58, %v1161_v2  ;;  %1257 = vst [vmem:[#allocation9 + $0x18] sm:$0xff] %v1193_v5  ;;  %v1191_v9 = vsel %vm1063_vm6, %v999_v63, %v1127_v3  ;;  %v1036_v12 = vadd.f32 %v1471_v8, %v1726_v40  ;;  %v685_v14 = vpop.f32.mrb[5].mxu1  ;;  %v1002_v15 = vadd.f32 %v1726_v40, %v557_v13  ;;  %v1440_v17 = vpop.f32.mrb[6].mxu0 }
 0x136   :  { %1289 = vst [vmem:[#allocation9 + $0x118] sm:$0xff] %v1225_v6  ;;  %v1223_v10 = vsel %vm1095_vm7, %v1031_v0, %v1159_v4  ;;  %1255 = vst [vmem:[#allocation9 + $0x8] sm:$0xff] %v1191_v9  ;;  %v1034_v16 = vadd.f32 %v1726_v40, %v685_v14  ;;  %v1472_v18 = vpop.f32.mrb[6].mxu1  ;;  %vm1068_vm8 = vcmp.ge.f32.partialorder %v1004_v11, 0.0  ;;  %v1132_v19 = vmul.f32 0.2, %v1004_v11 }
 0x137   :  { %1287 = vst [vmem:[#allocation9 + $0x108] sm:$0xff] %v1223_v10  ;;  %vm1100_vm9 = vcmp.ge.f32.partialorder %v1036_v12, 0.0  ;;  %v1164_v20 = vmul.f32 0.2, %v1036_v12  ;;  %vm1066_vm10 = vcmp.ge.f32.partialorder %v1002_v15, 0.0  ;;  %v1005_v25 = vadd.f32 %v1440_v17, %v1726_v40  ;;  %v560_v27 = vpop.f32.mrb[7].mxu0 }
 0x138   :  { %v1130_v21 = vmul.f32 0.2, %v1002_v15  ;;  %vm1098_vm11 = vcmp.ge.f32.partialorder %v1034_v16, 0.0  ;;  %v1162_v22 = vmul.f32 0.2, %v1034_v16  ;;  %v1196_v23 = vsel %vm1068_vm8, %v1004_v11, %v1132_v19  ;;  %v688_v28 = vpop.f32.mrb[7].mxu1 }
 0x139   :  { %v1228_v24 = vsel %vm1100_vm9, %v1036_v12, %v1164_v20  ;;  %v1037_v26 = vadd.f32 %v1472_v18, %v1726_v40  ;;  %1260 = vst [vmem:[#allocation9 + $0x30] sm:$0xff] %v1196_v23  ;;  %v1003_v31 = vadd.f32 %v1726_v40, %v560_v27  ;;  %v1035_v32 = vadd.f32 %v1726_v40, %v688_v28 }
 0x13a   :  { %1292 = vst [vmem:[#allocation9 + $0x130] sm:$0xff] %v1228_v24  ;;  %v1194_v29 = vsel %vm1066_vm10, %v1002_v15, %v1130_v21  ;;  %v1226_v30 = vsel %vm1098_vm11, %v1034_v16, %v1162_v22  ;;  %vm1069_vm12 = vcmp.ge.f32.partialorder %v1005_v25, 0.0  ;;  %v1133_v33 = vmul.f32 0.2, %v1005_v25 }
 0x13b   :  { %1258 = vst [vmem:[#allocation9 + $0x20] sm:$0xff] %v1194_v29  ;;  %1290 = vst [vmem:[#allocation9 + $0x120] sm:$0xff] %v1226_v30  ;;  %vm1101_vm13 = vcmp.ge.f32.partialorder %v1037_v26, 0.0  ;;  %v1165_v34 = vmul.f32 0.2, %v1037_v26  ;;  %vm1067_vm14 = vcmp.ge.f32.partialorder %v1003_v31, 0.0 }
 0x13c   :  { %v1131_v35 = vmul.f32 0.2, %v1003_v31  ;;  %vm1099_vm15 = vcmp.ge.f32.partialorder %v1035_v32, 0.0  ;;  %v1163_v36 = vmul.f32 0.2, %v1035_v32  ;;  %v1197_v37 = vsel %vm1069_vm12, %v1005_v25, %v1133_v33  ;;  %v1443_v39 = vpop.f32.mrb[8].mxu0 }
 0x13d   :  { %v1229_v38 = vsel %vm1101_vm13, %v1037_v26, %v1165_v34  ;;  %v1475_v41 = vpop.f32.mrb[8].mxu1  ;;  %1261 = vst [vmem:[#allocation9 + $0x38] sm:$0xff] %v1197_v37  ;;  %v1008_v44 = vadd.f32 %v1443_v39, %v1726_v40  ;;  %v573_v46 = vpop.f32.mrb[9].mxu0 }
 0x13e   :  { %1293 = vst [vmem:[#allocation9 + $0x138] sm:$0xff] %v1229_v38  ;;  %v1195_v42 = vsel %vm1067_vm14, %v1003_v31, %v1131_v35  ;;  %v1227_v43 = vsel %vm1099_vm15, %v1035_v32, %v1163_v36  ;;  %v1040_v45 = vadd.f32 %v1475_v41, %v1726_v40  ;;  %v701_v47 = vpop.f32.mrb[9].mxu1  ;;  %v1006_v48 = vadd.f32 %v1726_v40, %v573_v46  ;;  %v1444_v50 = vpop.f32.mrb[10].mxu0 }
 0x13f   :  { %1259 = vst [vmem:[#allocation9 + $0x28] sm:$0xff] %v1195_v42  ;;  %1291 = vst [vmem:[#allocation9 + $0x128] sm:$0xff] %v1227_v43  ;;  %v1038_v49 = vadd.f32 %v1726_v40, %v701_v47  ;;  %v1476_v51 = vpop.f32.mrb[10].mxu1  ;;  %vm1072_vm0 = vcmp.ge.f32.partialorder %v1008_v44, 0.0  ;;  %v1136_v52 = vmul.f32 0.2, %v1008_v44  ;;  %v1009_v58 = vadd.f32 %v1444_v50, %v1726_v40 }
 0x140   :  { %vm1104_vm1 = vcmp.ge.f32.partialorder %v1040_v45, 0.0  ;;  %v1168_v53 = vmul.f32 0.2, %v1040_v45  ;;  %vm1070_vm2 = vcmp.ge.f32.partialorder %v1006_v48, 0.0  ;;  %v1134_v54 = vmul.f32 0.2, %v1006_v48 }
 0x141   :  { %vm1102_vm3 = vcmp.ge.f32.partialorder %v1038_v49, 0.0  ;;  %v1166_v55 = vmul.f32 0.2, %v1038_v49  ;;  %v1200_v56 = vsel %vm1072_vm0, %v1008_v44, %v1136_v52  ;;  %v1041_v59 = vadd.f32 %v1476_v51, %v1726_v40  ;;  %v576_v60 = vpop.f32.mrb[11].mxu0  ;;  %v704_v61 = vpop.f32.mrb[11].mxu1 }
 0x142   :  { %v1232_v57 = vsel %vm1104_vm1, %v1040_v45, %v1168_v53  ;;  %1264 = vst [vmem:[#allocation9 + $0x50] sm:$0xff] %v1200_v56  ;;  %v1198_v62 = vsel %vm1070_vm2, %v1006_v48, %v1134_v54  ;;  %v1007_v0 = vadd.f32 %v1726_v40, %v576_v60  ;;  %v1039_v1 = vadd.f32 %v1726_v40, %v704_v61 }
 0x143   :  { %1296 = vst [vmem:[#allocation9 + $0x150] sm:$0xff] %v1232_v57  ;;  %v1230_v63 = vsel %vm1102_vm3, %v1038_v49, %v1166_v55  ;;  %v1447_v2 = vpop.f32.mrb[12].mxu0  ;;  %v1479_v3 = vpop.f32.mrb[12].mxu1  ;;  %1262 = vst [vmem:[#allocation9 + $0x40] sm:$0xff] %v1198_v62  ;;  %vm1073_vm4 = vcmp.ge.f32.partialorder %v1009_v58, 0.0  ;;  %vm1105_vm5 = vcmp.ge.f32.partialorder %v1041_v59, 0.0 }
 0x144   :  { %1294 = vst [vmem:[#allocation9 + $0x140] sm:$0xff] %v1230_v63  ;;  %v1137_v4 = vmul.f32 0.2, %v1009_v58  ;;  %v1169_v5 = vmul.f32 0.2, %v1041_v59  ;;  %vm1071_vm6 = vcmp.ge.f32.partialorder %v1007_v0, 0.0  ;;  %v1012_v10 = vadd.f32 %v1447_v2, %v1726_v40 }
 0x145   :  { %v1135_v6 = vmul.f32 0.2, %v1007_v0  ;;  %vm1103_vm7 = vcmp.ge.f32.partialorder %v1039_v1, 0.0  ;;  %v1167_v7 = vmul.f32 0.2, %v1039_v1  ;;  %v1044_v11 = vadd.f32 %v1479_v3, %v1726_v40  ;;  %v589_v12 = vpop.f32.mrb[13].mxu0 }
 0x146   :  { %v1201_v8 = vsel %vm1073_vm4, %v1009_v58, %v1137_v4  ;;  %v1233_v9 = vsel %vm1105_vm5, %v1041_v59, %v1169_v5  ;;  %v717_v13 = vpop.f32.mrb[13].mxu1  ;;  %v1010_v16 = vadd.f32 %v1726_v40, %v589_v12  ;;  %v1448_v18 = vpop.f32.mrb[14].mxu0  ;;  %vm1076_vm8 = vcmp.ge.f32.partialorder %v1012_v10, 0.0 }
 0x147   :  { %1265 = vst [vmem:[#allocation9 + $0x58] sm:$0xff] %v1201_v8  ;;  %1297 = vst [vmem:[#allocation9 + $0x158] sm:$0xff] %v1233_v9  ;;  %v1199_v14 = vsel %vm1071_vm6, %v1007_v0, %v1135_v6  ;;  %v1231_v15 = vsel %vm1103_vm7, %v1039_v1, %v1167_v7  ;;  %v1042_v17 = vadd.f32 %v1726_v40, %v717_v13  ;;  %v1480_v19 = vpop.f32.mrb[14].mxu1  ;;  %v1140_v20 = vmul.f32 0.2, %v1012_v10  ;;  %v592_v28 = vpop.f32.mrb[15].mxu0 }
 0x148   :  { %1263 = vst [vmem:[#allocation9 + $0x48] sm:$0xff] %v1199_v14  ;;  %1295 = vst [vmem:[#allocation9 + $0x148] sm:$0xff] %v1231_v15  ;;  %vm1108_vm9 = vcmp.ge.f32.partialorder %v1044_v11, 0.0  ;;  %v1172_v21 = vmul.f32 0.2, %v1044_v11  ;;  %vm1074_vm10 = vcmp.ge.f32.partialorder %v1010_v16, 0.0  ;;  %v1013_v26 = vadd.f32 %v1448_v18, %v1726_v40 }
 0x149   :  { %v1138_v22 = vmul.f32 0.2, %v1010_v16  ;;  %vm1106_vm11 = vcmp.ge.f32.partialorder %v1042_v17, 0.0  ;;  %v1170_v23 = vmul.f32 0.2, %v1042_v17  ;;  %v1204_v24 = vsel %vm1076_vm8, %v1012_v10, %v1140_v20  ;;  %v720_v29 = vpop.f32.mrb[15].mxu1 }
 0x14a   :  { %v1236_v25 = vsel %vm1108_vm9, %v1044_v11, %v1172_v21  ;;  %v1045_v27 = vadd.f32 %v1480_v19, %v1726_v40  ;;  %1268 = vst [vmem:[#allocation9 + $0x70] sm:$0xff] %v1204_v24  ;;  %v1011_v32 = vadd.f32 %v1726_v40, %v592_v28  ;;  %v1043_v33 = vadd.f32 %v1726_v40, %v720_v29 }
 0x14b   :  { %1300 = vst [vmem:[#allocation9 + $0x170] sm:$0xff] %v1236_v25  ;;  %v1202_v30 = vsel %vm1074_vm10, %v1010_v16, %v1138_v22  ;;  %v1234_v31 = vsel %vm1106_vm11, %v1042_v17, %v1170_v23  ;;  %v1451_v34 = vpop.f32.mrb[16].mxu0  ;;  %v1483_v35 = vpop.f32.mrb[16].mxu1  ;;  %vm1077_vm12 = vcmp.ge.f32.partialorder %v1013_v26, 0.0  ;;  %v1141_v36 = vmul.f32 0.2, %v1013_v26 }
 0x14c   :  { %1266 = vst [vmem:[#allocation9 + $0x60] sm:$0xff] %v1202_v30  ;;  %1298 = vst [vmem:[#allocation9 + $0x160] sm:$0xff] %v1234_v31  ;;  %vm1109_vm13 = vcmp.ge.f32.partialorder %v1045_v27, 0.0  ;;  %v1173_v37 = vmul.f32 0.2, %v1045_v27  ;;  %vm1075_vm14 = vcmp.ge.f32.partialorder %v1011_v32, 0.0  ;;  %v1016_v43 = vadd.f32 %v1451_v34, %v1726_v40 }
 0x14d   :  { %v1139_v38 = vmul.f32 0.2, %v1011_v32  ;;  %vm1107_vm15 = vcmp.ge.f32.partialorder %v1043_v33, 0.0  ;;  %v1171_v39 = vmul.f32 0.2, %v1043_v33  ;;  %v1205_v41 = vsel %vm1077_vm12, %v1013_v26, %v1141_v36  ;;  %v605_v45 = vpop.f32.mrb[17].mxu0 }
 0x14e   :  { %v1237_v42 = vsel %vm1109_vm13, %v1045_v27, %v1173_v37  ;;  %v1048_v44 = vadd.f32 %v1483_v35, %v1726_v40  ;;  %v733_v46 = vpop.f32.mrb[17].mxu1  ;;  %1269 = vst [vmem:[#allocation9 + $0x78] sm:$0xff] %v1205_v41  ;;  %v1014_v49 = vadd.f32 %v1726_v40, %v605_v45  ;;  %v1452_v51 = vpop.f32.mrb[18].mxu0  ;;  %vm1080_vm0 = vcmp.ge.f32.partialorder %v1016_v43, 0.0 }
 0x14f   :  { %1301 = vst [vmem:[#allocation9 + $0x178] sm:$0xff] %v1237_v42  ;;  %v1203_v47 = vsel %vm1075_vm14, %v1011_v32, %v1139_v38  ;;  %v1235_v48 = vsel %vm1107_vm15, %v1043_v33, %v1171_v39  ;;  %v1046_v50 = vadd.f32 %v1726_v40, %v733_v46  ;;  %v1484_v52 = vpop.f32.mrb[18].mxu1  ;;  %v1144_v53 = vmul.f32 0.2, %v1016_v43  ;;  %v608_v61 = vpop.f32.mrb[19].mxu0 }
 0x150   :  { %1267 = vst [vmem:[#allocation9 + $0x68] sm:$0xff] %v1203_v47  ;;  %1299 = vst [vmem:[#allocation9 + $0x168] sm:$0xff] %v1235_v48  ;;  %vm1112_vm1 = vcmp.ge.f32.partialorder %v1048_v44, 0.0  ;;  %v1176_v54 = vmul.f32 0.2, %v1048_v44  ;;  %vm1078_vm2 = vcmp.ge.f32.partialorder %v1014_v49, 0.0  ;;  %v1017_v59 = vadd.f32 %v1452_v51, %v1726_v40 }
 0x151   :  { %v1142_v55 = vmul.f32 0.2, %v1014_v49  ;;  %vm1110_vm3 = vcmp.ge.f32.partialorder %v1046_v50, 0.0  ;;  %v1174_v56 = vmul.f32 0.2, %v1046_v50  ;;  %v1208_v57 = vsel %vm1080_vm0, %v1016_v43, %v1144_v53  ;;  %v736_v62 = vpop.f32.mrb[19].mxu1 }
 0x152   :  { %v1240_v58 = vsel %vm1112_vm1, %v1048_v44, %v1176_v54  ;;  %v1049_v60 = vadd.f32 %v1484_v52, %v1726_v40  ;;  %1272 = vst [vmem:[#allocation9 + $0x90] sm:$0xff] %v1208_v57  ;;  %v1015_v1 = vadd.f32 %v1726_v40, %v608_v61  ;;  %v1047_v2 = vadd.f32 %v1726_v40, %v736_v62 }
 0x153   :  { %1304 = vst [vmem:[#allocation9 + $0x190] sm:$0xff] %v1240_v58  ;;  %v1206_v63 = vsel %vm1078_vm2, %v1014_v49, %v1142_v55  ;;  %v1238_v0 = vsel %vm1110_vm3, %v1046_v50, %v1174_v56  ;;  %v1455_v3 = vpop.f32.mrb[20].mxu0  ;;  %v1487_v4 = vpop.f32.mrb[20].mxu1  ;;  %vm1081_vm4 = vcmp.ge.f32.partialorder %v1017_v59, 0.0  ;;  %v1145_v5 = vmul.f32 0.2, %v1017_v59 }
 0x154   :  { %1270 = vst [vmem:[#allocation9 + $0x80] sm:$0xff] %v1206_v63  ;;  %1302 = vst [vmem:[#allocation9 + $0x180] sm:$0xff] %v1238_v0  ;;  %vm1113_vm5 = vcmp.ge.f32.partialorder %v1049_v60, 0.0  ;;  %v1177_v6 = vmul.f32 0.2, %v1049_v60  ;;  %vm1079_vm6 = vcmp.ge.f32.partialorder %v1015_v1, 0.0  ;;  %v1020_v11 = vadd.f32 %v1455_v3, %v1726_v40 }
 0x155   :  { %v1143_v7 = vmul.f32 0.2, %v1015_v1  ;;  %vm1111_vm7 = vcmp.ge.f32.partialorder %v1047_v2, 0.0  ;;  %v1175_v8 = vmul.f32 0.2, %v1047_v2  ;;  %v1209_v9 = vsel %vm1081_vm4, %v1017_v59, %v1145_v5  ;;  %v621_v13 = vpop.f32.mrb[21].mxu0 }
 0x156   :  { %v1241_v10 = vsel %vm1113_vm5, %v1049_v60, %v1177_v6  ;;  %v1052_v12 = vadd.f32 %v1487_v4, %v1726_v40  ;;  %v749_v14 = vpop.f32.mrb[21].mxu1  ;;  %1273 = vst [vmem:[#allocation9 + $0x98] sm:$0xff] %v1209_v9  ;;  %v1018_v17 = vadd.f32 %v1726_v40, %v621_v13  ;;  %v1456_v19 = vpop.f32.mrb[22].mxu0  ;;  %vm1084_vm8 = vcmp.ge.f32.partialorder %v1020_v11, 0.0 }
 0x157   :  { %1305 = vst [vmem:[#allocation9 + $0x198] sm:$0xff] %v1241_v10  ;;  %v1207_v15 = vsel %vm1079_vm6, %v1015_v1, %v1143_v7  ;;  %v1239_v16 = vsel %vm1111_vm7, %v1047_v2, %v1175_v8  ;;  %v1050_v18 = vadd.f32 %v1726_v40, %v749_v14  ;;  %v1488_v20 = vpop.f32.mrb[22].mxu1  ;;  %v1148_v21 = vmul.f32 0.2, %v1020_v11  ;;  %v624_v29 = vpop.f32.mrb[23].mxu0 }
 0x158   :  { %1271 = vst [vmem:[#allocation9 + $0x88] sm:$0xff] %v1207_v15  ;;  %1303 = vst [vmem:[#allocation9 + $0x188] sm:$0xff] %v1239_v16  ;;  %vm1116_vm9 = vcmp.ge.f32.partialorder %v1052_v12, 0.0  ;;  %v1180_v22 = vmul.f32 0.2, %v1052_v12  ;;  %vm1082_vm10 = vcmp.ge.f32.partialorder %v1018_v17, 0.0  ;;  %v1021_v27 = vadd.f32 %v1456_v19, %v1726_v40 }
 0x159   :  { %v1146_v23 = vmul.f32 0.2, %v1018_v17  ;;  %vm1114_vm11 = vcmp.ge.f32.partialorder %v1050_v18, 0.0  ;;  %v1178_v24 = vmul.f32 0.2, %v1050_v18  ;;  %v1212_v25 = vsel %vm1084_vm8, %v1020_v11, %v1148_v21  ;;  %v752_v30 = vpop.f32.mrb[23].mxu1 }
 0x15a   :  { %v1244_v26 = vsel %vm1116_vm9, %v1052_v12, %v1180_v22  ;;  %v1053_v28 = vadd.f32 %v1488_v20, %v1726_v40  ;;  %1276 = vst [vmem:[#allocation9 + $0xb0] sm:$0xff] %v1212_v25  ;;  %v1019_v33 = vadd.f32 %v1726_v40, %v624_v29  ;;  %v1051_v34 = vadd.f32 %v1726_v40, %v752_v30 }
 0x15b   :  { %1308 = vst [vmem:[#allocation9 + $0x1b0] sm:$0xff] %v1244_v26  ;;  %v1210_v31 = vsel %vm1082_vm10, %v1018_v17, %v1146_v23  ;;  %v1242_v32 = vsel %vm1114_vm11, %v1050_v18, %v1178_v24  ;;  %v1459_v35 = vpop.f32.mrb[24].mxu0  ;;  %v1491_v36 = vpop.f32.mrb[24].mxu1  ;;  %vm1085_vm12 = vcmp.ge.f32.partialorder %v1021_v27, 0.0  ;;  %v1149_v37 = vmul.f32 0.2, %v1021_v27 }
 0x15c   :  { %1274 = vst [vmem:[#allocation9 + $0xa0] sm:$0xff] %v1210_v31  ;;  %1306 = vst [vmem:[#allocation9 + $0x1a0] sm:$0xff] %v1242_v32  ;;  %vm1117_vm13 = vcmp.ge.f32.partialorder %v1053_v28, 0.0  ;;  %v1181_v38 = vmul.f32 0.2, %v1053_v28  ;;  %vm1083_vm14 = vcmp.ge.f32.partialorder %v1019_v33, 0.0  ;;  %v1024_v44 = vadd.f32 %v1459_v35, %v1726_v40 }
 0x15d   :  { %v1147_v39 = vmul.f32 0.2, %v1019_v33  ;;  %vm1115_vm15 = vcmp.ge.f32.partialorder %v1051_v34, 0.0  ;;  %v1179_v41 = vmul.f32 0.2, %v1051_v34  ;;  %v1213_v42 = vsel %vm1085_vm12, %v1021_v27, %v1149_v37  ;;  %v637_v46 = vpop.f32.mrb[25].mxu0 }
 0x15e   :  { %v1245_v43 = vsel %vm1117_vm13, %v1053_v28, %v1181_v38  ;;  %v1056_v45 = vadd.f32 %v1491_v36, %v1726_v40  ;;  %v765_v47 = vpop.f32.mrb[25].mxu1  ;;  %1277 = vst [vmem:[#allocation9 + $0xb8] sm:$0xff] %v1213_v42  ;;  %v1022_v50 = vadd.f32 %v1726_v40, %v637_v46  ;;  %v1460_v52 = vpop.f32.mrb[26].mxu0  ;;  %vm1088_vm0 = vcmp.ge.f32.partialorder %v1024_v44, 0.0 }
 0x15f   :  { %1309 = vst [vmem:[#allocation9 + $0x1b8] sm:$0xff] %v1245_v43  ;;  %v1211_v48 = vsel %vm1083_vm14, %v1019_v33, %v1147_v39  ;;  %v1243_v49 = vsel %vm1115_vm15, %v1051_v34, %v1179_v41  ;;  %v1054_v51 = vadd.f32 %v1726_v40, %v765_v47  ;;  %v1492_v53 = vpop.f32.mrb[26].mxu1  ;;  %v1152_v54 = vmul.f32 0.2, %v1024_v44  ;;  %v640_v62 = vpop.f32.mrb[27].mxu0 }
 0x160   :  { %1275 = vst [vmem:[#allocation9 + $0xa8] sm:$0xff] %v1211_v48  ;;  %1307 = vst [vmem:[#allocation9 + $0x1a8] sm:$0xff] %v1243_v49  ;;  %vm1120_vm1 = vcmp.ge.f32.partialorder %v1056_v45, 0.0  ;;  %v1184_v55 = vmul.f32 0.2, %v1056_v45  ;;  %vm1086_vm2 = vcmp.ge.f32.partialorder %v1022_v50, 0.0  ;;  %v1025_v60 = vadd.f32 %v1460_v52, %v1726_v40 }
 0x161   :  { %v1150_v56 = vmul.f32 0.2, %v1022_v50  ;;  %vm1118_vm3 = vcmp.ge.f32.partialorder %v1054_v51, 0.0  ;;  %v1182_v57 = vmul.f32 0.2, %v1054_v51  ;;  %v1216_v58 = vsel %vm1088_vm0, %v1024_v44, %v1152_v54  ;;  %v768_v63 = vpop.f32.mrb[27].mxu1 }
 0x162   :  { %v1248_v59 = vsel %vm1120_vm1, %v1056_v45, %v1184_v55  ;;  %v1057_v61 = vadd.f32 %v1492_v53, %v1726_v40  ;;  %1280 = vst [vmem:[#allocation9 + $0xd0] sm:$0xff] %v1216_v58  ;;  %v1023_v2 = vadd.f32 %v1726_v40, %v640_v62  ;;  %v1055_v3 = vadd.f32 %v1726_v40, %v768_v63 }
 0x163   :  { %1312 = vst [vmem:[#allocation9 + $0x1d0] sm:$0xff] %v1248_v59  ;;  %v1214_v0 = vsel %vm1086_vm2, %v1022_v50, %v1150_v56  ;;  %v1246_v1 = vsel %vm1118_vm3, %v1054_v51, %v1182_v57  ;;  %v1463_v4 = vpop.f32.mrb[28].mxu0  ;;  %v1495_v5 = vpop.f32.mrb[28].mxu1  ;;  %vm1089_vm4 = vcmp.ge.f32.partialorder %v1025_v60, 0.0  ;;  %v1153_v6 = vmul.f32 0.2, %v1025_v60 }
 0x164   :  { %1278 = vst [vmem:[#allocation9 + $0xc0] sm:$0xff] %v1214_v0  ;;  %1310 = vst [vmem:[#allocation9 + $0x1c0] sm:$0xff] %v1246_v1  ;;  %vm1121_vm5 = vcmp.ge.f32.partialorder %v1057_v61, 0.0  ;;  %v1185_v7 = vmul.f32 0.2, %v1057_v61  ;;  %vm1087_vm6 = vcmp.ge.f32.partialorder %v1023_v2, 0.0  ;;  %v1028_v12 = vadd.f32 %v1463_v4, %v1726_v40 }
 0x165   :  { %v1151_v8 = vmul.f32 0.2, %v1023_v2  ;;  %vm1119_vm7 = vcmp.ge.f32.partialorder %v1055_v3, 0.0  ;;  %v1183_v9 = vmul.f32 0.2, %v1055_v3  ;;  %v1217_v10 = vsel %vm1089_vm4, %v1025_v60, %v1153_v6  ;;  %v653_v14 = vpop.f32.mrb[29].mxu0 }
 0x166   :  { %v1249_v11 = vsel %vm1121_vm5, %v1057_v61, %v1185_v7  ;;  %v1060_v13 = vadd.f32 %v1495_v5, %v1726_v40  ;;  %v781_v15 = vpop.f32.mrb[29].mxu1  ;;  %1281 = vst [vmem:[#allocation9 + $0xd8] sm:$0xff] %v1217_v10  ;;  %v1026_v18 = vadd.f32 %v1726_v40, %v653_v14  ;;  %v1464_v20 = vpop.f32.mrb[30].mxu0  ;;  %vm1092_vm8 = vcmp.ge.f32.partialorder %v1028_v12, 0.0 }
 0x167   :  { %1313 = vst [vmem:[#allocation9 + $0x1d8] sm:$0xff] %v1249_v11  ;;  %v1215_v16 = vsel %vm1087_vm6, %v1023_v2, %v1151_v8  ;;  %v1247_v17 = vsel %vm1119_vm7, %v1055_v3, %v1183_v9  ;;  %v1058_v19 = vadd.f32 %v1726_v40, %v781_v15  ;;  %v1496_v21 = vpop.f32.mrb[30].mxu1  ;;  %v1156_v22 = vmul.f32 0.2, %v1028_v12  ;;  %v656_v30 = vpop.f32.mrb[31].mxu0 }
 0x168   :  { %1279 = vst [vmem:[#allocation9 + $0xc8] sm:$0xff] %v1215_v16  ;;  %1311 = vst [vmem:[#allocation9 + $0x1c8] sm:$0xff] %v1247_v17  ;;  %vm1124_vm9 = vcmp.ge.f32.partialorder %v1060_v13, 0.0  ;;  %v1188_v23 = vmul.f32 0.2, %v1060_v13  ;;  %vm1090_vm10 = vcmp.ge.f32.partialorder %v1026_v18, 0.0  ;;  %v1029_v28 = vadd.f32 %v1464_v20, %v1726_v40 }
 0x169   :  { %v1154_v24 = vmul.f32 0.2, %v1026_v18  ;;  %vm1122_vm11 = vcmp.ge.f32.partialorder %v1058_v19, 0.0  ;;  %v1186_v25 = vmul.f32 0.2, %v1058_v19  ;;  %v1220_v26 = vsel %vm1092_vm8, %v1028_v12, %v1156_v22  ;;  %v784_v31 = vpop.f32.mrb[31].mxu1 }
 0x16a   :  { %v1252_v27 = vsel %vm1124_vm9, %v1060_v13, %v1188_v23  ;;  %v1061_v29 = vadd.f32 %v1496_v21, %v1726_v40  ;;  %1284 = vst [vmem:[#allocation9 + $0xf0] sm:$0xff] %v1220_v26  ;;  %v1027_v34 = vadd.f32 %v1726_v40, %v656_v30  ;;  %v1059_v35 = vadd.f32 %v1726_v40, %v784_v31 }
 0x16b   :  { %1316 = vst [vmem:[#allocation9 + $0x1f0] sm:$0xff] %v1252_v27  ;;  %v1218_v32 = vsel %vm1090_vm10, %v1026_v18, %v1154_v24  ;;  %v1250_v33 = vsel %vm1122_vm11, %v1058_v19, %v1186_v25  ;;  %vm1093_vm12 = vcmp.ge.f32.partialorder %v1029_v28, 0.0  ;;  %v1157_v36 = vmul.f32 0.2, %v1029_v28 }
 0x16c   :  { %1282 = vst [vmem:[#allocation9 + $0xe0] sm:$0xff] %v1218_v32  ;;  %1314 = vst [vmem:[#allocation9 + $0x1e0] sm:$0xff] %v1250_v33  ;;  %vm1125_vm13 = vcmp.ge.f32.partialorder %v1061_v29, 0.0  ;;  %v1189_v37 = vmul.f32 0.2, %v1061_v29  ;;  %vm1091_vm14 = vcmp.ge.f32.partialorder %v1027_v34, 0.0 }
 0x16d   :  { %v1155_v38 = vmul.f32 0.2, %v1027_v34  ;;  %vm1123_vm15 = vcmp.ge.f32.partialorder %v1059_v35, 0.0  ;;  %v1187_v39 = vmul.f32 0.2, %v1059_v35  ;;  %v1221_v41 = vsel %vm1093_vm12, %v1029_v28, %v1157_v36 }
 0x16e   :  { %v1253_v42 = vsel %vm1125_vm13, %v1061_v29, %v1189_v37  ;;  %1285 = vst [vmem:[#allocation9 + $0xf8] sm:$0xff] %v1221_v41 }
 0x16f   :  { %1317 = vst [vmem:[#allocation9 + $0x1f8] sm:$0xff] %v1253_v42  ;;  %v1219_v43 = vsel %vm1091_vm14, %v1027_v34, %v1155_v38  ;;  %v1251_v44 = vsel %vm1123_vm15, %v1059_v35, %v1187_v39 }
 0x170   :  { %1283 = vst [vmem:[#allocation9 + $0xe8] sm:$0xff] %v1219_v43  ;;  %1315 = vst [vmem:[#allocation9 + $0x1e8] sm:$0xff] %v1251_v44 }
 0x171   :  { %1638 = shalt.err (!%p1635_p0)
}
 0x172   :  { %s1639_s26 = scalar_lea.hbm %s1807_s3, 8192 }
 0x173   :  { %p1640_p1 = scmp.ne.s32.totalorder %s1807_s3, %s1639_s26  ;;  %p1643_p2 = scmp.lt.u32.totalorder %s1639_s26, %s1807_s3 }
 0x175   :  { %p1645_p3 = pnand %p1643_p2, %p1640_p1 }
 0x177   :  { %1648 = shalt.err (!%p1645_p3)
}
 0x178   :  { %s1661_s4 = smov 128   ;;  %s1662_s5 = smov 8  }
 0x179   :  { %1329 = dma.vmem_to_hbm [thread:$0]  %s1324_s22, 8192, %s1807_s3, [#allocation5], %s1661_s4, %s1661_s4, %s1662_s5  }
 0x17a   :  { %1653 = dma.done.wait [#allocation5], 8192  }
 0x17b   :  { %1654 = vsyncadd [#allocation5], 4294959104 }
 0x17c   :  { %1333 = vsyncpa [#allocation4], 1 }
 0x17d   :  { %1334 = vsyncpa [#allocation7], 1 }
 0x17e   :  { %1335 = vsyncpa [#allocation5], 1 }

// kernel: discriminator_forward.9
= control target key start
LH: loop header
LB: loop body
LE: loop exit
PB: predicated region body
PF: predicated region fallthrough
CT: control target
= control target key end

     0   :  { %8 = vsyncpa [#allocation4], 0  ;;  %s2050_s0 = inlined_call_operand.hbm [shape: bf16[128,1024], index: 0, kind: input, shape index: {}]   ;;  %s2051_s1 = inlined_call_operand.hbm [shape: bf16[1024,128], index: 1, kind: input, shape index: {}]   ;;  %s2052_s2 = inlined_call_operand.hbm [shape: f32[1,128], index: 2, kind: input, shape index: {}]   ;;  %s2053_s3 = inlined_call_operand.hbm [shape: f32[128,128], index: 3, kind: output, shape index: {}]  }
   0x1   :  { %10 = vsyncpa [#allocation4 + $0x1], 0 }
   0x2   :  { %11 = vsyncpa [#allocation7], 0 }
   0x3   :  { %13 = vsyncpa [#allocation7 + $0x1], 0 }
   0x4   :  { %14 = vsyncpa [#allocation5], 0  ;;  %s1753_s12 = smov 0   ;;  %s1755_s13 = smov 0  }
   0x5   :  { %s1757_s14 = smov 0   ;;  %s1759_s15 = smov 0  }
   0x6   :  { %s1761_s16 = smov 0   ;;  %s1763_s17 = smov 0  }
   0x7 LB: > { %s1782_s18 = sadd.s32 4294967295, %s1719_s17   ;;  %s48_s19 = sadd.s32 1, %s1707_s14  ;;  %s1719_s17 = sphi %s1763_s17, %s20_s17   ;;  %s1715_s16 = sphi %s1761_s16, %s2071_s16   ;;  %s1711_s15 = sphi %s1759_s15, %s2070_s15   ;;  %s1707_s14 = sphi %s1757_s14, %s2069_s14   ;;  %s1703_s13 = sphi %s1755_s13, %s2068_s13   ;;  %s1699_s12 = sphi %s1753_s12, %s2067_s12  }
   0x8   : > { %p55_p0 = scmp.ne.s32.totalorder %s1707_s14, %s1703_s13  ;;  %p56_p1 = scmp.eq.s32.totalorder %s1719_s17, 0 }
   0x9   : > { %p61_p2 = scmp.ne.s32.totalorder %s1703_s13, %s1699_s12  ;;  %p2054_p3 = scmp.eq.s32.totalorder %s1782_s18, 0 }
   0xa   : > { %p57_p4 = por %p56_p1, %p55_p0  ;;  %p1163_p5 = scmp.ge.s32.totalorder %s1719_s17, 1 }
   0xb   : > { %p1793_p6 = por %p2054_p3, %p61_p2  ;;  %p154_p7 = scmp.lt.s32.totalorder %s1719_s17, 3 }
   0xc   : > { %s1721_s22 = smov [#allocation8]   ;;  %p1401_p10 = scmp.lt.s32.totalorder %s1719_s17, 2 }
   0xd   : > { %s2058_s20 = scalar_select %p1793_p6, 1, 0 }
   0xe   : > { %p1798_p8 = pnand %p1163_p5, %p154_p7  ;;  %s169_s23 = sshll.u32 %s1721_s22, 4  ;;  %s170_s23 = int_to_ptr.vmem [resolvable:$true] %s169_s23 }
   0xf   : > { %s180_s24 = sand.u32 1, %s1707_s14   ;;  %p1812_p12 = pnand %p1401_p10, %p57_p4 }
  0x10   : > { %s2059_s21 = scalar_select %p1798_p8, 1, 0 }
  0x11   : > { %p1389_p9 = pneg %p1798_p8  ;;  %s1543_s29 = scalar_lea.hbm %s2052_s2, 16 }
  0x12   : > { %s2061_s26 = scalar_select %p1812_p12, 1, 0 }
  0x13   : > { %p1808_p11 = pnand %p1389_p9, %p2054_p3  ;;  %p1544_p13 = scmp.ne.s32.totalorder %s2052_s2, %s1543_s29 }
  0x14   : > { %p1550_p5 = scmp.lt.u32.totalorder %s1543_s29, %s2052_s2 }
  0x15   : > { %p1545_p0 = pneg %p1808_p11 }
  0x17   : > { %p1546_p1 = pnand %p1545_p0, %p1544_p13 }
  0x19   : > { %p1547_p2 = pneg %p1546_p1 }
  0x1b   : > { %p1552_p4 = pnand %p1550_p5, %p1547_p2 }
  0x1d   : > { %1555 = shalt.err (!%p1552_p4)
}
  0x1e   : > { %s1556_s7 = scalar_lea.vmem %s170_s23, 16  ;;  %s1563_s8 = scalar_lea.vmem %s170_s23, 32 }
  0x1f   : > { %p1557_p7 = scmp.ne.s32.totalorder %s170_s23, %s1556_s7  ;;  %p1564_p3 = scmp.lt.s32.totalorder %s170_s23, %s170_s23 }
  0x20   : > { %p1565_p6 = scmp.lt.s32.totalorder %s1563_s8, %s1556_s7 }
  0x21   : > { %p1559_p9 = pnand %p1557_p7, %p1545_p0 }
  0x22   : > { %p1566_p8 = por %p1565_p6, %p1564_p3 }
  0x23   : > { %p1560_p10 = pneg %p1559_p9 }
  0x25   : > { %p1567_p12 = pnand %p1566_p8, %p1560_p10 }
  0x27   : > { %1570 = shalt.err (!%p1567_p12)
}
  0x28   : > { %1392 = dma.hbm_to_vmem [thread:$0]  (!%p1808_p11), %s2052_s2, 16, %s170_s23, [#allocation7]  }
  0x29   : > { %s32_s11 = sadd.s32 1, %s1715_s16  ;;  %s1835_s12 = sshll.u32 %s180_s24, 8 }
  0x2a   : > { %p33_p3 = scmp.ge.s32.totalorder %s32_s11, 2  ;;  %s1247_s22 = sshll.u32 %s1715_s16, 8 }
  0x2b   : > { %s184_s25 = scalar_lea.vmem [#allocation3], %s1835_s12  ;;  %s1844_s30 = scalar_lea.hbm %s2050_s0, %s1247_s22 }
  0x2c   : > { %s194_s27 = sshll.u32 %s184_s25, 4  ;;  %s2073_s11 = smov (%p33_p3, %s32_s11), 0  ;;  %s1846_s27 = int_to_ptr.vmem [resolvable:$true] %s194_s27 }
  0x2d   : > { %s44_s23 = ssub.s32 %s1715_s16, %s2073_s11  ;;  %s204_s4 = sand.u32 1, %s1719_s17  }
  0x2e   : > { %p46_p6 = scmp.eq.s32.totalorder %s44_s23, 0  ;;  %s1858_s6 = scalar_lea.sflag [#allocation4], %s180_s24 }
  0x2f   : > { %s1571_s7 = scalar_lea.hbm %s1844_s30, 4096  ;;  %p2062_p11 = scmp.ne.s32.totalorder %s2061_s26, 0 }
  0x30   : > { %s1854_s5 = scalar_select %p46_p6, %s1707_s14, %s48_s19  }
  0x31   : > { %p1572_p8 = scmp.ne.s32.totalorder %s1844_s30, %s1571_s7  ;;  %p1573_p12 = pneg %p2062_p11 }
  0x32   : > { %s1576_s10 = scalar_lea.hbm %s2050_s0, 8192  ;;  %p1577_p1 = scmp.lt.u32.totalorder %s1844_s30, %s2050_s0 }
  0x33   : > { %p1574_p13 = pnand %p1573_p12, %p1572_p8  ;;  %p1578_p2 = scmp.lt.u32.totalorder %s1576_s10, %s1571_s7 }
  0x34   : > { %p1580_p4 = scmp.lt.u32.totalorder %s1571_s7, %s1844_s30 }
  0x35   : > { %p1575_p0 = pneg %p1574_p13  ;;  %p1579_p5 = por %p1578_p2, %p1577_p1 }
  0x37   : > { %p1581_p7 = por %p1580_p4, %p1579_p5 }
  0x39   : > { %p1582_p9 = pnand %p1581_p7, %p1575_p0 }
  0x3b   : > { %1585 = shalt.err (!%p1582_p9)
}
  0x3c   : > { %s1586_s19 = scalar_lea.vmem %s1846_s27, 4096  ;;  %s1722_s24 = smov [#allocation3]  }
  0x3d   : > { %p1587_p10 = scmp.ne.s32.totalorder %s1846_s27, %s1586_s19  ;;  %s1591_s28 = sshll.u32 %s1722_s24, 4  ;;  %s1592_s28 = int_to_ptr.vmem [resolvable:$false] %s1591_s28 }
  0x3e   : > { %s1593_s29 = scalar_lea.vmem %s1592_s28, 8192  ;;  %p1594_p8 = scmp.lt.s32.totalorder %s1846_s27, %s1592_s28 }
  0x3f   : > { %p1589_p3 = pnand %p1587_p10, %p1573_p12  ;;  %p1595_p13 = scmp.lt.s32.totalorder %s1593_s29, %s1586_s19 }
  0x41   : > { %p1590_p6 = pneg %p1589_p3  ;;  %p1596_p1 = por %p1595_p13, %p1594_p8 }
  0x43   : > { %p1597_p2 = pnand %p1596_p1, %p1590_p6 }
  0x45   : > { %1600 = shalt.err (!%p1597_p2)
}
  0x46   : > { %s1723_s23 = smov 512   ;;  %s1724_s7 = smov 256  }
  0x47   : > { %s1725_s8 = smov 16   ;;  %s1248_s9 = sshll.u32 %s1715_s16, 12 }
  0x48   : > { %1396 = dma.hbm_to_vmem [thread:$0]  (!%p2062_p11), %s1844_s30, 4096, %s1846_s27, %s1858_s6, %s1723_s23, %s1724_s7, %s1725_s8  }
  0x49   : > { %s208_s10 = scalar_lea.vmem [#allocation6], %s1835_s12  ;;  %s1891_s24 = scalar_lea.hbm %s2051_s1, %s1248_s9 }
  0x4a   : > { %s216_s22 = sshll.u32 %s208_s10, 4  ;;  %s1897_s28 = scalar_lea.sflag [#allocation7], %s204_s4  ;;  %s1893_s22 = int_to_ptr.vmem [resolvable:$true] %s216_s22 }
  0x4b   : > { %s1601_s29 = scalar_lea.hbm %s1891_s24, 4096  ;;  %s1606_s30 = scalar_lea.hbm %s2051_s1, 8192 }
  0x4c   : > { %p1602_p0 = scmp.ne.s32.totalorder %s1891_s24, %s1601_s29  ;;  %p1607_p7 = scmp.lt.u32.totalorder %s1891_s24, %s2051_s1 }
  0x4d   : > { %p1608_p9 = scmp.lt.u32.totalorder %s1606_s30, %s1601_s29  ;;  %p1610_p3 = scmp.lt.u32.totalorder %s1601_s29, %s1891_s24 }
  0x4e   : > { %p1604_p5 = pnand %p1602_p0, %p1573_p12 }
  0x4f   : > { %p1609_p10 = por %p1608_p9, %p1607_p7 }
  0x50   : > { %p1605_p4 = pneg %p1604_p5 }
  0x51   : > { %p1611_p6 = por %p1610_p3, %p1609_p10 }
  0x53   : > { %p1612_p8 = pnand %p1611_p6, %p1605_p4 }
  0x55   : > { %1615 = shalt.err (!%p1612_p8)
}
  0x56   : > { %s1616_s4 = scalar_lea.vmem %s1893_s22, 4096  ;;  %s1726_s7 = smov [#allocation6]  }
  0x57   : > { %p1617_p13 = scmp.ne.s32.totalorder %s1893_s22, %s1616_s4  ;;  %s1621_s8 = sshll.u32 %s1726_s7, 4  ;;  %s1622_s8 = int_to_ptr.vmem [resolvable:$false] %s1621_s8 }
  0x58   : > { %s1623_s9 = scalar_lea.vmem %s1622_s8, 8192  ;;  %p1624_p0 = scmp.lt.s32.totalorder %s1893_s22, %s1622_s8 }
  0x59   : > { %p1619_p1 = pnand %p1617_p13, %p1573_p12  ;;  %p1625_p5 = scmp.lt.s32.totalorder %s1623_s9, %s1616_s4 }
  0x5b   : > { %p1620_p2 = pneg %p1619_p1  ;;  %p1626_p7 = por %p1625_p5, %p1624_p0 }
  0x5d   : > { %p1627_p9 = pnand %p1626_p7, %p1620_p2 }
  0x5f   : > { %1630 = shalt.err (!%p1627_p9)
}
  0x60   : > { %s1727_s10 = smov 64   ;;  %s1728_s25 = smov 4  }
  0x61   : > { %1399 = dma.hbm_to_vmem [thread:$0]  (!%p2062_p11), %s1891_s24, 4096, %s1893_s22, %s1897_s28, %s1727_s10, %s1727_s10, %s1728_s25  }
  0x62   : > { %p2063_p12 = scmp.ne.s32.totalorder %s2059_s21, 0 }
  0x63   : > { %s230_s19 = sand.u32 (!%p2063_p12), 1, %s1703_s13   ;;  %p2064_p4 = scmp.ne.s32.totalorder (!%p2063_p12), %s2058_s20, 0 }
  0x64   : > { %228 = sbr.rel (%p2063_p12) target bundleno = 473 (0x1d9), region = 32  ;;  %s1173_s29 = sshll.u32 (!%p2063_p12), %s230_s19, 8 }
  0x65   : > { %s231_s12 = scalar_lea.sflag (!%p2063_p12), [#allocation4], %s230_s19  ;;  %s1926_s27 = scalar_lea.vmem (!%p2063_p12), [#allocation3], %s1173_s29 }
  0x6b   : > { %1682 = dma.done.wait (%p2064_p4), %s231_s12, 4096  }
  0x6c   : > { %1684 = vsyncadd (%p2064_p4), %s231_s12, 4294963200  ;;  %s239_s30 = sand.u32 1, %s1782_s18   ;;  %s1933_s22 = scalar_lea.vmem [#allocation6], %s1173_s29 }
  0x6d   : > { %s240_s26 = scalar_lea.sflag [#allocation7], %s239_s30 }
  0x6e   : > { %1686 = dma.done.wait (%p2064_p4), %s240_s26, 4096  }
  0x6f   : > { %1688 = vsyncadd (%p2064_p4), %s240_s26, 4294963200  ;;  %p2065_p11 = scmp.eq.s32.totalorder %s1782_s18, 0 }
  0x71   : > { %1690 = dma.done.wait (%p2065_p11), [#allocation7], 16   ;;  %p2066_p10 = pmov %p2065_p11 }
  0x72   : > { %p1176_p3 = scmp.ne.s32.totalorder %s1711_s15, 0 }
  0x73   : > { %1692 = vsyncadd (%p2066_p10), [#allocation7], 4294967280  ;;  %v1729_v0 = vmov (!%p1176_p3), 0.0  }
  0x74   : > { %278 = sbr.rel (%p1176_p3) target bundleno = 124 (0x7c), region = 48  ;;  %279 = vst [vmem:[#allocation2] sm:$0xff] (!%p1176_p3), %v1729_v0  ;;  %280 = vst [vmem:[#allocation2 + $0x8] sm:$0xff] (!%p1176_p3), %v1729_v0 }
  0x75   : > { %281 = vst [vmem:[#allocation2 + $0x10] sm:$0xff] (!%p1176_p3), %v1729_v0  ;;  %282 = vst [vmem:[#allocation2 + $0x18] sm:$0xff] (!%p1176_p3), %v1729_v0 }
  0x76   : > { %283 = vst [vmem:[#allocation2 + $0x20] sm:$0xff] (!%p1176_p3), %v1729_v0  ;;  %284 = vst [vmem:[#allocation2 + $0x28] sm:$0xff] (!%p1176_p3), %v1729_v0 }
  0x77   : > { %285 = vst [vmem:[#allocation2 + $0x30] sm:$0xff] (!%p1176_p3), %v1729_v0  ;;  %286 = vst [vmem:[#allocation2 + $0x38] sm:$0xff] (!%p1176_p3), %v1729_v0 }
  0x78   : > { %287 = vst [vmem:[#allocation2 + $0x40] sm:$0xff] (!%p1176_p3), %v1729_v0  ;;  %288 = vst [vmem:[#allocation2 + $0x48] sm:$0xff] (!%p1176_p3), %v1729_v0 }
  0x79   : > { %289 = vst [vmem:[#allocation2 + $0x50] sm:$0xff] (!%p1176_p3), %v1729_v0  ;;  %290 = vst [vmem:[#allocation2 + $0x58] sm:$0xff] (!%p1176_p3), %v1729_v0 }
  0x7a   : > { %291 = vst [vmem:[#allocation2 + $0x60] sm:$0xff] (!%p1176_p3), %v1729_v0  ;;  %292 = vst [vmem:[#allocation2 + $0x68] sm:$0xff] (!%p1176_p3), %v1729_v0 }
  0x7b   : > { %293 = vst [vmem:[#allocation2 + $0x70] sm:$0xff] %v1729_v0  ;;  %294 = vst [vmem:[#allocation2 + $0x78] sm:$0xff] %v1729_v0 }
  0x7c PF: > { %v1463_v1 = vld [vmem:[%s1933_s22 + $0x40] sm:$0xff]   ;;  %v1467_v5 = vld [vmem:[%s1933_s22 + $0x48] sm:$0xff]   ;;  %v1471_v9 = vld [vmem:[%s1933_s22 + $0x50] sm:$0xff]   ;;  %p1241_p6 = scmp.ne.s32.totalorder %s1711_s15, 1 }
  0x7d   : > { %v1464_v2 = vld [vmem:[%s1933_s22 + $0xc0] sm:$0xff]   ;;  %1249 = vmatprep.subr.bf16.mxu0 %v1463_v1  ;;  %v1468_v6 = vld [vmem:[%s1933_s22 + $0xc8] sm:$0xff]   ;;  %v1472_v10 = vld [vmem:[%s1933_s22 + $0xd0] sm:$0xff]  }
  0x7e   : > { %v1465_v3 = vld [vmem:[%s1933_s22] sm:$0xff]   ;;  %1313 = vmatprep.subr.bf16.mxu1 %v1464_v2  ;;  %v1469_v7 = vld [vmem:[%s1933_s22 + $0x8] sm:$0xff]   ;;  %v1473_v11 = vld [vmem:[%s1933_s22 + $0x10] sm:$0xff]  }
  0x7f   : > { %v1466_v4 = vld [vmem:[%s1933_s22 + $0x80] sm:$0xff]   ;;  %1250 = vmatpush3.bf16.msra.mxu0 %v1465_v3  ;;  %v1470_v8 = vld [vmem:[%s1933_s22 + $0x88] sm:$0xff]   ;;  %v1474_v12 = vld [vmem:[%s1933_s22 + $0x90] sm:$0xff]  }
  0x80   : > { %1314 = vmatpush3.bf16.msra.mxu1 %v1466_v4  ;;  %1251 = vmatprep.subr.bf16.mxu0 %v1467_v5  ;;  %v1475_v13 = vld [vmem:[%s1933_s22 + $0x58] sm:$0xff]   ;;  %v1479_v17 = vld [vmem:[%s1933_s22 + $0x60] sm:$0xff]   ;;  %v1483_v21 = vld [vmem:[%s1933_s22 + $0x68] sm:$0xff]  }
  0x81   : > { %1315 = vmatprep.subr.bf16.mxu1 %v1468_v6  ;;  %v1476_v14 = vld [vmem:[%s1933_s22 + $0xd8] sm:$0xff]   ;;  %v1480_v18 = vld [vmem:[%s1933_s22 + $0xe0] sm:$0xff]   ;;  %v1484_v22 = vld [vmem:[%s1933_s22 + $0xe8] sm:$0xff]  }
  0x82   : > { %v1477_v15 = vld [vmem:[%s1933_s22 + $0x18] sm:$0xff]   ;;  %v1481_v19 = vld [vmem:[%s1933_s22 + $0x20] sm:$0xff]   ;;  %v1485_v23 = vld [vmem:[%s1933_s22 + $0x28] sm:$0xff]  }
  0x83   : > { %1252 = vmatpush3.bf16.msra.mxu0 %v1469_v7  ;;  %v1478_v16 = vld [vmem:[%s1933_s22 + $0x98] sm:$0xff]   ;;  %v1482_v20 = vld [vmem:[%s1933_s22 + $0xa0] sm:$0xff]   ;;  %v1486_v24 = vld [vmem:[%s1933_s22 + $0xa8] sm:$0xff]  }
  0x84   : > { %1316 = vmatpush3.bf16.msra.mxu1 %v1470_v8  ;;  %1253 = vmatprep.subr.bf16.mxu0 %v1471_v9  ;;  %v1487_v25 = vld [vmem:[%s1933_s22 + $0x70] sm:$0xff]   ;;  %v1491_v29 = vld [vmem:[%s1933_s22 + $0x78] sm:$0xff]  }
  0x85   : > { %1317 = vmatprep.subr.bf16.mxu1 %v1472_v10  ;;  %v1488_v26 = vld [vmem:[%s1933_s22 + $0xf0] sm:$0xff]   ;;  %v1492_v30 = vld [vmem:[%s1933_s22 + $0xf8] sm:$0xff]   ;;  %v295_v10 = vld [vmem:[#allocation2] sm:$0xff] }
  0x86   : > { %v1489_v27 = vld [vmem:[%s1933_s22 + $0x30] sm:$0xff]   ;;  %v1493_v31 = vld [vmem:[%s1933_s22 + $0x38] sm:$0xff]  }
  0x87   : > { %1254 = vmatpush3.bf16.msra.mxu0 %v1473_v11  ;;  %v1490_v28 = vld [vmem:[%s1933_s22 + $0xb0] sm:$0xff]   ;;  %v1494_v32 = vld [vmem:[%s1933_s22 + $0xb8] sm:$0xff]  }
  0x88   : > { %1318 = vmatpush3.bf16.msra.mxu1 %v1474_v12  ;;  %1255 = vmatprep.subr.bf16.mxu0 %v1475_v13  ;;  %v1495_v33 = vld [vmem:[%s1926_s27] ss:$16 sps:$4 sm:$0xff]   ;;  %v1497_v34 = vld [vmem:[%s1926_s27 + $0x4] ss:$16 sps:$4 sm:$0xff]   ;;  %v1498_v35 = vld [vmem:[%s1926_s27 + $0x8] ss:$16 sps:$4 sm:$0xff]  }
  0x89   : > { %1319 = vmatprep.subr.bf16.mxu1 %v1476_v14  ;;  %v1500_v36 = vld [vmem:[%s1926_s27 + $0xc] ss:$16 sps:$4 sm:$0xff]   ;;  %791 = vmatprep.mubr.bf16.mxu0 %v1497_v34  ;;  %v1501_v37 = vld [vmem:[%s1926_s27 + $0x24] ss:$16 sps:$4 sm:$0xff]   ;;  %v1505_v39 = vld [vmem:[%s1926_s27 + $0x20] ss:$16 sps:$4 sm:$0xff]  }
  0x8a   : > { %888 = vmatprep.mubr.bf16.mxu1 %v1500_v36  ;;  %v1503_v38 = vld [vmem:[%s1926_s27 + $0x2c] ss:$16 sps:$4 sm:$0xff]   ;;  %v1506_v40 = vld [vmem:[%s1926_s27 + $0x28] ss:$16 sps:$4 sm:$0xff]   ;;  %v1507_v41 = vld [vmem:[%s1926_s27 + $0x44] ss:$16 sps:$4 sm:$0xff]  }
  0x8b   : > { %1256 = vmatpush3.bf16.msra.mxu0 %v1477_v15  ;;  %v1509_v42 = vld [vmem:[%s1926_s27 + $0x4c] ss:$16 sps:$4 sm:$0xff]   ;;  %v1511_v43 = vld [vmem:[%s1926_s27 + $0x40] ss:$16 sps:$4 sm:$0xff]   ;;  %v1512_v44 = vld [vmem:[%s1926_s27 + $0x48] ss:$16 sps:$4 sm:$0xff]  }
  0x8c   : > { %1320 = vmatpush3.bf16.msra.mxu1 %v1478_v16  ;;  %1257 = vmatprep.subr.bf16.mxu0 %v1479_v17  ;;  %v1513_v45 = vld [vmem:[%s1926_s27 + $0x64] ss:$16 sps:$4 sm:$0xff]   ;;  %v1515_v46 = vld [vmem:[%s1926_s27 + $0x6c] ss:$16 sps:$4 sm:$0xff]   ;;  %v1517_v47 = vld [vmem:[%s1926_s27 + $0x60] ss:$16 sps:$4 sm:$0xff]  }
  0x8d   : > { %1321 = vmatprep.subr.bf16.mxu1 %v1480_v18  ;;  %v1518_v48 = vld [vmem:[%s1926_s27 + $0x68] ss:$16 sps:$4 sm:$0xff]   ;;  %v1519_v49 = vld [vmem:[%s1926_s27 + $0x84] ss:$16 sps:$4 sm:$0xff]   ;;  %v1521_v50 = vld [vmem:[%s1926_s27 + $0x8c] ss:$16 sps:$4 sm:$0xff]  }
  0x8e   : > { %v1523_v51 = vld [vmem:[%s1926_s27 + $0x80] ss:$16 sps:$4 sm:$0xff]   ;;  %v1524_v52 = vld [vmem:[%s1926_s27 + $0x88] ss:$16 sps:$4 sm:$0xff]   ;;  %v1525_v53 = vld [vmem:[%s1926_s27 + $0xa4] ss:$16 sps:$4 sm:$0xff]  }
  0x8f   : > { %1258 = vmatpush3.bf16.msra.mxu0 %v1481_v19  ;;  %v1527_v54 = vld [vmem:[%s1926_s27 + $0xac] ss:$16 sps:$4 sm:$0xff]   ;;  %v1529_v55 = vld [vmem:[%s1926_s27 + $0xa0] ss:$16 sps:$4 sm:$0xff]   ;;  %v1530_v56 = vld [vmem:[%s1926_s27 + $0xa8] ss:$16 sps:$4 sm:$0xff]  }
  0x90   : > { %1322 = vmatpush3.bf16.msra.mxu1 %v1482_v20  ;;  %1259 = vmatprep.subr.bf16.mxu0 %v1483_v21  ;;  %v1531_v57 = vld [vmem:[%s1926_s27 + $0xc4] ss:$16 sps:$4 sm:$0xff]   ;;  %v1533_v58 = vld [vmem:[%s1926_s27 + $0xcc] ss:$16 sps:$4 sm:$0xff]   ;;  %v1535_v59 = vld [vmem:[%s1926_s27 + $0xc0] ss:$16 sps:$4 sm:$0xff]  }
  0x91   : > { %1323 = vmatprep.subr.bf16.mxu1 %v1484_v22  ;;  %v1536_v60 = vld [vmem:[%s1926_s27 + $0xc8] ss:$16 sps:$4 sm:$0xff]   ;;  %v1537_v61 = vld [vmem:[%s1926_s27 + $0xe4] ss:$16 sps:$4 sm:$0xff]   ;;  %v1539_v62 = vld [vmem:[%s1926_s27 + $0xec] ss:$16 sps:$4 sm:$0xff]  }
  0x92   : > { %v1541_v63 = vld [vmem:[%s1926_s27 + $0xe0] ss:$16 sps:$4 sm:$0xff]   ;;  %v1542_v0 = vld [vmem:[%s1926_s27 + $0xe8] ss:$16 sps:$4 sm:$0xff]  }
  0x93   : > { %1260 = vmatpush3.bf16.msra.mxu0 %v1485_v23  ;;  %v296_v15 = vld [vmem:[#allocation2 + $0x8] sm:$0xff] }
  0x94   : > { %1324 = vmatpush3.bf16.msra.mxu1 %v1486_v24  ;;  %1261 = vmatprep.subr.bf16.mxu0 %v1487_v25 }
  0x95   : > { %1325 = vmatprep.subr.bf16.mxu1 %v1488_v26 }
  0x97   : > { %1262 = vmatpush3.bf16.msra.mxu0 %v1489_v27 }
  0x98   : > { %1326 = vmatpush3.bf16.msra.mxu1 %v1490_v28  ;;  %1263 = vmatprep.subr.bf16.mxu0 %v1491_v29  ;;  %v297_v28 = vld [vmem:[#allocation2 + $0x10] sm:$0xff] }
  0x99   : > { %1327 = vmatprep.subr.bf16.mxu1 %v1492_v30 }
  0x9b   : > { %1264 = vmatpush3.bf16.msra.mxu0 %v1493_v31 }
  0x9c   : > { %1328 = vmatpush3.bf16.msra.mxu1 %v1494_v32 }
  0x9e   : > { %792 = vmatmul.mubr.bf16.vlgmr.msra.gmra.mrb[0].mxu0 %v1495_v33  ;;  %v298_v33 = vld [vmem:[#allocation2 + $0x18] sm:$0xff] }
  0x9f   : > { %889 = vmatmul.mubr.bf16.vlgmr.msra.gmra.mrb[0].mxu1 %v1498_v35  ;;  %799 = vmatprep.mubr.bf16.mxu0 %v1501_v37 }
  0xa0   : > { %896 = vmatprep.mubr.bf16.mxu1 %v1503_v38 }
  0xa6   : > { %800 = vmatmul.mubr.bf16.gmra.mrb[4].mxu0 %v1505_v39 }
  0xa7   : > { %897 = vmatmul.mubr.bf16.gmra.mrb[4].mxu1 %v1506_v40  ;;  %807 = vmatprep.mubr.bf16.mxu0 %v1507_v41 }
  0xa8   : > { %904 = vmatprep.mubr.bf16.mxu1 %v1509_v42 }
  0xae   : > { %808 = vmatmul.mubr.bf16.gmra.mrb[8].mxu0 %v1511_v43 }
  0xaf   : > { %905 = vmatmul.mubr.bf16.gmra.mrb[8].mxu1 %v1512_v44  ;;  %815 = vmatprep.mubr.bf16.mxu0 %v1513_v45 }
  0xb0   : > { %912 = vmatprep.mubr.bf16.mxu1 %v1515_v46  ;;  %v299_v46 = vld [vmem:[#allocation2 + $0x20] sm:$0xff] }
  0xb6   : > { %816 = vmatmul.mubr.bf16.gmra.mrb[12].mxu0 %v1517_v47 }
  0xb7   : > { %913 = vmatmul.mubr.bf16.gmra.mrb[12].mxu1 %v1518_v48  ;;  %823 = vmatprep.mubr.bf16.mxu0 %v1519_v49 }
  0xb8   : > { %920 = vmatprep.mubr.bf16.mxu1 %v1521_v50 }
  0xbe   : > { %824 = vmatmul.mubr.bf16.gmra.mrb[16].mxu0 %v1523_v51  ;;  %v300_v51 = vld [vmem:[#allocation2 + $0x28] sm:$0xff] }
  0xbf   : > { %921 = vmatmul.mubr.bf16.gmra.mrb[16].mxu1 %v1524_v52  ;;  %831 = vmatprep.mubr.bf16.mxu0 %v1525_v53 }
  0xc0   : > { %928 = vmatprep.mubr.bf16.mxu1 %v1527_v54 }
  0xc6   : > { %832 = vmatmul.mubr.bf16.gmra.mrb[20].mxu0 %v1529_v55 }
  0xc7   : > { %929 = vmatmul.mubr.bf16.gmra.mrb[20].mxu1 %v1530_v56  ;;  %839 = vmatprep.mubr.bf16.mxu0 %v1531_v57 }
  0xc8   : > { %936 = vmatprep.mubr.bf16.mxu1 %v1533_v58 }
  0xce   : > { %840 = vmatmul.mubr.bf16.gmra.mrb[24].mxu0 %v1535_v59 }
  0xcf   : > { %937 = vmatmul.mubr.bf16.gmra.mrb[24].mxu1 %v1536_v60  ;;  %847 = vmatprep.mubr.bf16.mxu0 %v1537_v61 }
  0xd0   : > { %944 = vmatprep.mubr.bf16.mxu1 %v1539_v62 }
  0xd6   : > { %848 = vmatmul.mubr.bf16.gmra.mrb[28].mxu0 %v1541_v63 }
  0xd7   : > { %945 = vmatmul.mubr.bf16.gmra.mrb[28].mxu1 %v1542_v0  ;;  %v301_v0 = vld [vmem:[#allocation2 + $0x30] sm:$0xff] }
 0x171   : > { %v1265_v1 = vpop.f32.mrb[0].mxu0 }
 0x172   : > { %v1329_v2 = vpop.f32.mrb[0].mxu1  ;;  %v1266_v3 = vpop.f32.mrb[1].mxu0 }
 0x173   : > { %v1267_v4 = vadd.f32 %v1266_v3, %v1265_v1  ;;  %v1330_v5 = vpop.f32.mrb[1].mxu1  ;;  %v1268_v6 = vpop.f32.mrb[2].mxu0 }
 0x174   : > { %v1331_v7 = vadd.f32 %v1330_v5, %v1329_v2  ;;  %v1332_v8 = vpop.f32.mrb[2].mxu1  ;;  %v1269_v9 = vpop.f32.mrb[3].mxu0  ;;  %v302_v5 = vld [vmem:[#allocation2 + $0x38] sm:$0xff] }
 0x175   : > { %v1270_v11 = vadd.f32 %v1269_v9, %v1268_v6  ;;  %v1333_v12 = vpop.f32.mrb[3].mxu1 }
 0x176   : > { %v891_v13 = vadd.f32 %v1331_v7, %v1267_v4  ;;  %v1334_v14 = vadd.f32 %v1333_v12, %v1332_v8 }
 0x178   : > { %v953_v16 = vadd.f32 %v891_v13, %v295_v10  ;;  %v894_v17 = vadd.f32 %v1334_v14, %v1270_v11 }
 0x179   : > { %v1271_v18 = vpop.f32.mrb[4].mxu0 }
 0x17a   : > { %969 = vst [vmem:[#allocation2] sm:$0xff] %v953_v16  ;;  %v954_v19 = vadd.f32 %v894_v17, %v296_v15  ;;  %v1335_v20 = vpop.f32.mrb[4].mxu1  ;;  %v1272_v21 = vpop.f32.mrb[5].mxu0 }
 0x17b   : > { %v1273_v22 = vadd.f32 %v1272_v21, %v1271_v18  ;;  %v1336_v23 = vpop.f32.mrb[5].mxu1  ;;  %v1274_v24 = vpop.f32.mrb[6].mxu0  ;;  %v303_v18 = vld [vmem:[#allocation2 + $0x40] sm:$0xff] }
 0x17c   : > { %970 = vst [vmem:[#allocation2 + $0x8] sm:$0xff] %v954_v19  ;;  %v1337_v25 = vadd.f32 %v1336_v23, %v1335_v20  ;;  %v1338_v26 = vpop.f32.mrb[6].mxu1  ;;  %v1275_v27 = vpop.f32.mrb[7].mxu0  ;;  %v304_v23 = vld [vmem:[#allocation2 + $0x48] sm:$0xff] }
 0x17d   : > { %v1276_v29 = vadd.f32 %v1275_v27, %v1274_v24  ;;  %v1339_v30 = vpop.f32.mrb[7].mxu1 }
 0x17e   : > { %v899_v31 = vadd.f32 %v1337_v25, %v1273_v22  ;;  %v1340_v32 = vadd.f32 %v1339_v30, %v1338_v26 }
 0x180   : > { %v955_v34 = vadd.f32 %v899_v31, %v297_v28  ;;  %v902_v35 = vadd.f32 %v1340_v32, %v1276_v29 }
 0x181   : > { %v1277_v36 = vpop.f32.mrb[8].mxu0 }
 0x182   : > { %971 = vst [vmem:[#allocation2 + $0x10] sm:$0xff] %v955_v34  ;;  %v956_v37 = vadd.f32 %v902_v35, %v298_v33  ;;  %v1341_v38 = vpop.f32.mrb[8].mxu1  ;;  %v1278_v39 = vpop.f32.mrb[9].mxu0 }
 0x183   : > { %v1279_v40 = vadd.f32 %v1278_v39, %v1277_v36  ;;  %v1342_v41 = vpop.f32.mrb[9].mxu1  ;;  %v1280_v42 = vpop.f32.mrb[10].mxu0  ;;  %v305_v36 = vld [vmem:[#allocation2 + $0x50] sm:$0xff] }
 0x184   : > { %972 = vst [vmem:[#allocation2 + $0x18] sm:$0xff] %v956_v37  ;;  %v1343_v43 = vadd.f32 %v1342_v41, %v1341_v38  ;;  %v1344_v44 = vpop.f32.mrb[10].mxu1  ;;  %v1281_v45 = vpop.f32.mrb[11].mxu0  ;;  %v306_v41 = vld [vmem:[#allocation2 + $0x58] sm:$0xff] }
 0x185   : > { %v1282_v47 = vadd.f32 %v1281_v45, %v1280_v42  ;;  %v1345_v48 = vpop.f32.mrb[11].mxu1 }
 0x186   : > { %v907_v49 = vadd.f32 %v1343_v43, %v1279_v40  ;;  %v1346_v50 = vadd.f32 %v1345_v48, %v1344_v44 }
 0x188   : > { %v957_v52 = vadd.f32 %v907_v49, %v299_v46  ;;  %v910_v53 = vadd.f32 %v1346_v50, %v1282_v47 }
 0x189   : > { %v1283_v54 = vpop.f32.mrb[12].mxu0 }
 0x18a   : > { %973 = vst [vmem:[#allocation2 + $0x20] sm:$0xff] %v957_v52  ;;  %v958_v55 = vadd.f32 %v910_v53, %v300_v51  ;;  %v1347_v56 = vpop.f32.mrb[12].mxu1  ;;  %v1284_v57 = vpop.f32.mrb[13].mxu0 }
 0x18b   : > { %v1285_v58 = vadd.f32 %v1284_v57, %v1283_v54  ;;  %v1348_v59 = vpop.f32.mrb[13].mxu1  ;;  %v1286_v60 = vpop.f32.mrb[14].mxu0  ;;  %v307_v54 = vld [vmem:[#allocation2 + $0x60] sm:$0xff] }
 0x18c   : > { %974 = vst [vmem:[#allocation2 + $0x28] sm:$0xff] %v958_v55  ;;  %v1349_v61 = vadd.f32 %v1348_v59, %v1347_v56  ;;  %v1350_v62 = vpop.f32.mrb[14].mxu1  ;;  %v1287_v63 = vpop.f32.mrb[15].mxu0  ;;  %v308_v59 = vld [vmem:[#allocation2 + $0x68] sm:$0xff] }
 0x18d   : > { %v1288_v1 = vadd.f32 %v1287_v63, %v1286_v60  ;;  %v1351_v2 = vpop.f32.mrb[15].mxu1 }
 0x18e   : > { %v915_v3 = vadd.f32 %v1349_v61, %v1285_v58  ;;  %v1352_v4 = vadd.f32 %v1351_v2, %v1350_v62 }
 0x190   : > { %v959_v6 = vadd.f32 %v915_v3, %v301_v0  ;;  %v918_v7 = vadd.f32 %v1352_v4, %v1288_v1 }
 0x191   : > { %v1289_v8 = vpop.f32.mrb[16].mxu0 }
 0x192   : > { %975 = vst [vmem:[#allocation2 + $0x30] sm:$0xff] %v959_v6  ;;  %v960_v9 = vadd.f32 %v918_v7, %v302_v5  ;;  %v1353_v10 = vpop.f32.mrb[16].mxu1  ;;  %v1290_v11 = vpop.f32.mrb[17].mxu0 }
 0x193   : > { %v1291_v12 = vadd.f32 %v1290_v11, %v1289_v8  ;;  %v1354_v13 = vpop.f32.mrb[17].mxu1  ;;  %v1292_v14 = vpop.f32.mrb[18].mxu0  ;;  %v309_v8 = vld [vmem:[#allocation2 + $0x70] sm:$0xff] }
 0x194   : > { %976 = vst [vmem:[#allocation2 + $0x38] sm:$0xff] %v960_v9  ;;  %v1355_v15 = vadd.f32 %v1354_v13, %v1353_v10  ;;  %v1356_v16 = vpop.f32.mrb[18].mxu1  ;;  %v1293_v17 = vpop.f32.mrb[19].mxu0  ;;  %v310_v13 = vld [vmem:[#allocation2 + $0x78] sm:$0xff] }
 0x195   : > { %v1294_v19 = vadd.f32 %v1293_v17, %v1292_v14  ;;  %v1357_v20 = vpop.f32.mrb[19].mxu1  ;;  %v989_v17 = vld [vmem:[#allocation2] sm:$0xff] (!%p1241_p6) }
 0x196   : > { %v923_v21 = vadd.f32 %v1355_v15, %v1291_v12  ;;  %v1358_v22 = vadd.f32 %v1357_v20, %v1356_v16 }
 0x198   : > { %v961_v24 = vadd.f32 %v923_v21, %v303_v18  ;;  %v926_v25 = vadd.f32 %v1358_v22, %v1294_v19  ;;  %v1242_v18 = vld [vmem:[#allocation8] ss:$0 sm:$0xff] (!%p1241_p6)  ;;  %v990_v19 = vld [vmem:[#allocation2 + $0x8] sm:$0xff] (!%p1241_p6)  ;;  %v991_v22 = vld [vmem:[#allocation2 + $0x10] sm:$0xff] (!%p1241_p6) }
 0x199   : > { %v1295_v26 = vpop.f32.mrb[20].mxu0  ;;  %v1012_v20 = vadd.f32 (!%p1241_p6), %v1242_v18, %v989_v17  ;;  %v1013_v21 = vadd.f32 (!%p1241_p6), %v1242_v18, %v990_v19 }
 0x19a   : > { %977 = vst [vmem:[#allocation2 + $0x40] sm:$0xff] %v961_v24  ;;  %v962_v27 = vadd.f32 %v926_v25, %v304_v23  ;;  %v1359_v28 = vpop.f32.mrb[20].mxu1  ;;  %v1296_v29 = vpop.f32.mrb[21].mxu0  ;;  %v992_v23 = vld [vmem:[#allocation2 + $0x18] sm:$0xff] (!%p1241_p6)  ;;  %v993_v24 = vld [vmem:[#allocation2 + $0x20] sm:$0xff] (!%p1241_p6)  ;;  %v1014_v25 = vadd.f32 (!%p1241_p6), %v1242_v18, %v991_v22 }
 0x19b   : > { %v1297_v30 = vadd.f32 %v1296_v29, %v1295_v26  ;;  %v1360_v31 = vpop.f32.mrb[21].mxu1  ;;  %v1298_v32 = vpop.f32.mrb[22].mxu0  ;;  %v1015_v26 = vadd.f32 (!%p1241_p6), %v1242_v18, %v992_v23  ;;  %v995_v29 = vld [vmem:[#allocation2 + $0x30] sm:$0xff] (!%p1241_p6)  ;;  %1028 = vst [vmem:[#allocation9] sm:$0xff] (!%p1241_p6), %v1012_v20  ;;  %1029 = vst [vmem:[#allocation9 + $0x8] sm:$0xff] (!%p1241_p6), %v1013_v21 }
 0x19c   : > { %978 = vst [vmem:[#allocation2 + $0x48] sm:$0xff] %v962_v27  ;;  %v1361_v33 = vadd.f32 %v1360_v31, %v1359_v28  ;;  %v1362_v34 = vpop.f32.mrb[22].mxu1  ;;  %v1299_v35 = vpop.f32.mrb[23].mxu0  ;;  %v1016_v27 = vadd.f32 (!%p1241_p6), %v1242_v18, %v993_v24  ;;  %v994_v28 = vld [vmem:[#allocation2 + $0x28] sm:$0xff] (!%p1241_p6)  ;;  %1030 = vst [vmem:[#allocation9 + $0x10] sm:$0xff] (!%p1241_p6), %v1014_v25 }
 0x19d   : > { %v1300_v37 = vadd.f32 %v1299_v35, %v1298_v32  ;;  %v1363_v38 = vpop.f32.mrb[23].mxu1  ;;  %v1017_v31 = vadd.f32 (!%p1241_p6), %v1242_v18, %v994_v28  ;;  %v1018_v32 = vadd.f32 (!%p1241_p6), %v1242_v18, %v995_v29  ;;  %1031 = vst [vmem:[#allocation9 + $0x18] sm:$0xff] (!%p1241_p6), %v1015_v26 }
 0x19e   : > { %v931_v39 = vadd.f32 %v1361_v33, %v1297_v30  ;;  %v1364_v40 = vadd.f32 %v1363_v38, %v1362_v34  ;;  %v996_v30 = vld [vmem:[#allocation2 + $0x38] sm:$0xff] (!%p1241_p6)  ;;  %1032 = vst [vmem:[#allocation9 + $0x20] sm:$0xff] (!%p1241_p6), %v1016_v27 }
 0x19f   : > { %v1019_v33 = vadd.f32 (!%p1241_p6), %v1242_v18, %v996_v30  ;;  %1033 = vst [vmem:[#allocation9 + $0x28] sm:$0xff] (!%p1241_p6), %v1017_v31  ;;  %1034 = vst [vmem:[#allocation9 + $0x30] sm:$0xff] (!%p1241_p6), %v1018_v32 }
 0x1a0   : > { %v963_v42 = vadd.f32 %v931_v39, %v305_v36  ;;  %v934_v43 = vadd.f32 %v1364_v40, %v1300_v37 }
 0x1a1   : > { %v1301_v44 = vpop.f32.mrb[24].mxu0  ;;  %v997_v34 = vld [vmem:[#allocation2 + $0x40] sm:$0xff] (!%p1241_p6)  ;;  %1035 = vst [vmem:[#allocation9 + $0x38] sm:$0xff] (!%p1241_p6), %v1019_v33 }
 0x1a2   : > { %979 = vst [vmem:[#allocation2 + $0x50] sm:$0xff] %v963_v42  ;;  %v964_v45 = vadd.f32 %v934_v43, %v306_v41  ;;  %v1365_v46 = vpop.f32.mrb[24].mxu1  ;;  %v1302_v47 = vpop.f32.mrb[25].mxu0  ;;  %v1020_v37 = vadd.f32 (!%p1241_p6), %v1242_v18, %v997_v34 }
 0x1a3   : > { %v1303_v48 = vadd.f32 %v1302_v47, %v1301_v44  ;;  %v1366_v49 = vpop.f32.mrb[25].mxu1  ;;  %v1304_v50 = vpop.f32.mrb[26].mxu0  ;;  %v998_v35 = vld [vmem:[#allocation2 + $0x48] sm:$0xff] (!%p1241_p6) }
 0x1a4   : > { %980 = vst [vmem:[#allocation2 + $0x58] sm:$0xff] %v964_v45  ;;  %v1367_v51 = vadd.f32 %v1366_v49, %v1365_v46  ;;  %v1368_v52 = vpop.f32.mrb[26].mxu1  ;;  %v1305_v53 = vpop.f32.mrb[27].mxu0  ;;  %v1021_v38 = vadd.f32 (!%p1241_p6), %v1242_v18, %v998_v35  ;;  %1036 = vst [vmem:[#allocation9 + $0x40] sm:$0xff] (!%p1241_p6), %v1020_v37 }
 0x1a5   : > { %v1306_v55 = vadd.f32 %v1305_v53, %v1304_v50  ;;  %v1369_v56 = vpop.f32.mrb[27].mxu1 }
 0x1a6   : > { %v939_v57 = vadd.f32 %v1367_v51, %v1303_v48  ;;  %v1370_v58 = vadd.f32 %v1369_v56, %v1368_v52  ;;  %1037 = vst [vmem:[#allocation9 + $0x48] sm:$0xff] (!%p1241_p6), %v1021_v38 }
 0x1a8   : > { %v965_v60 = vadd.f32 %v939_v57, %v307_v54  ;;  %v942_v61 = vadd.f32 %v1370_v58, %v1306_v55 }
 0x1a9   : > { %v1307_v62 = vpop.f32.mrb[28].mxu0  ;;  %v999_v36 = vld [vmem:[#allocation2 + $0x50] sm:$0xff] (!%p1241_p6) }
 0x1aa   : > { %981 = vst [vmem:[#allocation2 + $0x60] sm:$0xff] %v965_v60  ;;  %v966_v63 = vadd.f32 %v942_v61, %v308_v59  ;;  %v1371_v0 = vpop.f32.mrb[28].mxu1  ;;  %v1308_v1 = vpop.f32.mrb[29].mxu0  ;;  %v1022_v39 = vadd.f32 (!%p1241_p6), %v1242_v18, %v999_v36 }
 0x1ab   : > { %v1309_v2 = vadd.f32 %v1308_v1, %v1307_v62  ;;  %v1372_v3 = vpop.f32.mrb[29].mxu1  ;;  %v1310_v4 = vpop.f32.mrb[30].mxu0  ;;  %v1000_v40 = vld [vmem:[#allocation2 + $0x58] sm:$0xff] (!%p1241_p6) }
 0x1ac   : > { %982 = vst [vmem:[#allocation2 + $0x68] sm:$0xff] %v966_v63  ;;  %v1373_v5 = vadd.f32 %v1372_v3, %v1371_v0  ;;  %v1374_v6 = vpop.f32.mrb[30].mxu1  ;;  %v1311_v7 = vpop.f32.mrb[31].mxu0  ;;  %v1023_v43 = vadd.f32 (!%p1241_p6), %v1242_v18, %v1000_v40  ;;  %1038 = vst [vmem:[#allocation9 + $0x50] sm:$0xff] (!%p1241_p6), %v1022_v39 }
 0x1ad   : > { %v1312_v9 = vadd.f32 %v1311_v7, %v1310_v4  ;;  %v1375_v10 = vpop.f32.mrb[31].mxu1 }
 0x1ae   : > { %v947_v11 = vadd.f32 %v1373_v5, %v1309_v2  ;;  %v1376_v12 = vadd.f32 %v1375_v10, %v1374_v6  ;;  %988 = sbr.rel (%p1241_p6) target bundleno = 447 (0x1bf), region = 52  ;;  %1039 = vst [vmem:[#allocation9 + $0x58] sm:$0xff] (!%p1241_p6), %v1023_v43 }
 0x1b0   : > { %v967_v14 = vadd.f32 %v947_v11, %v309_v8  ;;  %v950_v15 = vadd.f32 %v1376_v12, %v1312_v9 }
 0x1b1   : > { %v1001_v41 = vld [vmem:[#allocation2 + $0x60] sm:$0xff] (!%p1241_p6) }
 0x1b2   : > { %983 = vst [vmem:[#allocation2 + $0x70] sm:$0xff] %v967_v14  ;;  %v968_v16 = vadd.f32 %v950_v15, %v310_v13  ;;  %v1024_v44 = vadd.f32 (!%p1241_p6), %v1242_v18, %v1001_v41 }
 0x1b3   : > { %v1002_v42 = vld [vmem:[#allocation2 + $0x68] sm:$0xff] (!%p1241_p6) }
 0x1b4   : > { %984 = vst [vmem:[#allocation2 + $0x78] sm:$0xff] %v968_v16  ;;  %v1025_v45 = vadd.f32 (!%p1241_p6), %v1242_v18, %v1002_v42  ;;  %1040 = vst [vmem:[#allocation9 + $0x60] sm:$0xff] (!%p1241_p6), %v1024_v44 }
 0x1b6   : > { %1041 = vst [vmem:[#allocation9 + $0x68] sm:$0xff] %v1025_v45 }
 0x1b9   : > { %v1003_v46 = vld [vmem:[#allocation2 + $0x70] sm:$0xff] }
 0x1ba   : > { %v1026_v48 = vadd.f32 %v1242_v18, %v1003_v46 }
 0x1bb   : > { %v1004_v47 = vld [vmem:[#allocation2 + $0x78] sm:$0xff] }
 0x1bc   : > { %v1027_v49 = vadd.f32 %v1242_v18, %v1004_v47  ;;  %1042 = vst [vmem:[#allocation9 + $0x70] sm:$0xff] %v1026_v48 }
 0x1be   : > { %1043 = vst [vmem:[#allocation9 + $0x78] sm:$0xff] %v1027_v49 }
 0x1bf PF: > { %p1403_p8 = scmp.eq.s32.totalorder %s1782_s18, 1  ;;  %s1730_s15 = smov [#allocation9]  }
 0x1c0   : > { %s1054_s20 = sshll.u32 %s1730_s15, 4  ;;  %s1055_s20 = int_to_ptr.vmem [resolvable:$true] %s1054_s20 }
 0x1c1   : > { %s1631_s21 = scalar_lea.vmem %s1055_s20, 2048  ;;  %p1638_p0 = scmp.lt.s32.totalorder %s1055_s20, %s1055_s20 }
 0x1c2   : > { %p1632_p13 = scmp.ne.s32.totalorder %s1055_s20, %s1631_s21  ;;  %p1639_p5 = scmp.lt.s32.totalorder %s1631_s21, %s1631_s21 }
 0x1c4   : > { %p1633_p1 = pnand %p1632_p13, %p1403_p8  ;;  %p1640_p7 = por %p1639_p5, %p1638_p0 }
 0x1c6   : > { %p1634_p2 = pneg %p1633_p1 }
 0x1c8   : > { %p1641_p9 = pnand %p1640_p7, %p1634_p2 }
 0x1ca   : > { %1644 = shalt.err (!%p1641_p9)
}
 0x1cb   : > { %s1645_s6 = scalar_lea.hbm %s2053_s3, 2048 }
 0x1cc   : > { %p1646_p12 = scmp.ne.s32.totalorder %s2053_s3, %s1645_s6  ;;  %p1651_p10 = scmp.lt.u32.totalorder %s1645_s6, %s2053_s3 }
 0x1ce   : > { %p1647_p4 = pnand %p1646_p12, %p1403_p8 }
 0x1d0   : > { %p1648_p11 = pneg %p1647_p4 }
 0x1d2   : > { %p1653_p3 = pnand %p1651_p10, %p1648_p11 }
 0x1d4   : > { %1656 = shalt.err (!%p1653_p3)
}
 0x1d5   : > { %s1731_s9 = smov 128   ;;  %s1732_s10 = smov 8  }
 0x1d6   : > { %1386 = dma.vmem_to_hbm [thread:$0]  (%p1403_p8), %s1055_s20, 2048, %s2053_s3, [#allocation5], %s1731_s9, %s1731_s9, %s1732_s10  }
 0x1d7   : > { %1694 = dma.done.wait (%p1403_p8), [#allocation5], 2048  }
 0x1d8   : > { %1696 = vsyncadd (%p1403_p8), [#allocation5], 4294965248 }
 0x1d9 PF: > { %s20_s17 = sadd.s32 1, %s1719_s17   ;;  %s2067_s12 = smov %s1703_s13 }
 0x1da   : > { %p17_p6 = scmp.ge.s32.totalorder %s20_s17, 4   ;;  %s2068_s13 = smov %s1707_s14 }
 0x1db   : > { %s2069_s14 = smov %s1854_s5  ;;  %s2070_s15 = smov %s1715_s16 }
 0x1dc   : > { %s2071_s16 = smov %s2073_s11  ;;  %19 = sbr.rel (!%p17_p6) target bundleno = 7 (0x7), region = 96 }
 0x1e3   :  { %1070 = vsyncpa [#allocation4], 1 }
 0x1e4   :  { %1072 = vsyncpa [#allocation4 + $0x1], 1 }
 0x1e5   :  { %1073 = vsyncpa [#allocation7], 1 }
 0x1e6   :  { %1075 = vsyncpa [#allocation7 + $0x1], 1 }
 0x1e7   :  { %1076 = vsyncpa [#allocation5], 1 }
 0x1e8   :  { %1078 = vsyncpa [#allocation5 + $0x1], 1 }

// kernel: discriminator_forward.10
= control target key start
LH: loop header
LB: loop body
LE: loop exit
PB: predicated region body
PF: predicated region fallthrough
CT: control target
= control target key end

     0   :  { %6 = vsyncpa [#allocation3], 0  ;;  %s649_s0 = inlined_call_operand.hbm [shape: f32[2,64,128], index: 0, kind: input, shape index: {}]   ;;  %s650_s1 = inlined_call_operand.vmem [shape: f32[2,64,128], index: 1, kind: output, shape index: {}]  }
   0x1   :  { %8 = vsyncpa [#allocation3 + $0x1], 0  ;;  %s515_s6 = smov 0   ;;  %s517_s7 = smov 0  }
   0x2   :  { %s519_s8 = smov 0   ;;  %s521_s9 = smov 0  }
   0x3   :  { %s523_s10 = smov 0   ;;  %s525_s11 = smov 0  }
   0x4 LB: > { %s346_s12 = sadd.s32 4294967295, %s500_s11   ;;  %s26_s13 = sadd.s32 1, %s496_s10  ;;  %s500_s11 = sphi %s525_s11, %s14_s11   ;;  %s496_s10 = sphi %s523_s10, %s658_s10   ;;  %s492_s9 = sphi %s521_s9, %s657_s9   ;;  %s488_s8 = sphi %s519_s8, %s656_s8   ;;  %s484_s7 = sphi %s517_s7, %s655_s7   ;;  %s480_s6 = sphi %s515_s6, %s654_s6  }
   0x5   : > { %p28_p0 = scmp.ge.s32.totalorder %s26_s13, 2  ;;  %s35_s14 = sadd.s32 1, %s488_s8 }
   0x6   : > { %p42_p1 = scmp.ne.s32.totalorder %s488_s8, %s484_s7  ;;  %p43_p2 = scmp.eq.s32.totalorder %s500_s11, 0 }
   0x7   : > { %s660_s13 = smov (%p28_p0, %s26_s13), 0  ;;  %p48_p4 = scmp.ne.s32.totalorder %s484_s7, %s480_s6 }
   0x8   : > { %p551_p3 = por %p43_p2, %p42_p1  ;;  %s30_s16 = ssub.s32 %s496_s10, %s660_s13 }
   0x9   : > { %p49_p5 = scmp.eq.s32.totalorder %s346_s12, 0  ;;  %p33_p6 = scmp.eq.s32.totalorder %s30_s16, 0 }
   0xa   : > { %p367_p8 = scmp.lt.s32.totalorder %s500_s11, 2  ;;  %s100_s19 = sand.u32 1, %s488_s8  }
   0xb   : > { %p558_p7 = por %p49_p5, %p48_p4  ;;  %s359_s20 = sshll.u32 %s496_s10, 10 }
   0xc   : > { %s564_s18 = scalar_select %p33_p6, %s488_s8, %s35_s14  }
   0xd   : > { %s350_s21 = sshll.u32 %s100_s19, 6  ;;  %s571_s24 = scalar_lea.hbm %s649_s0, %s359_s20 }
   0xe   : > { %s104_s25 = scalar_lea.vmem [#allocation2], %s350_s21  ;;  %p575_p9 = pnand %p367_p8, %p551_p3 }
   0xf   : > { %s112_s26 = sshll.u32 %s104_s25, 4  ;;  %s581_s28 = scalar_lea.sflag [#allocation3], %s100_s19  ;;  %s579_s26 = int_to_ptr.vmem [resolvable:$true] %s112_s26 }
  0x10   : > { %s420_s29 = scalar_lea.hbm %s571_s24, 1024  ;;  %p422_p11 = pneg %p575_p9 }
  0x11   : > { %p421_p10 = scmp.ne.s32.totalorder %s571_s24, %s420_s29  ;;  %s425_s3 = scalar_lea.hbm %s649_s0, 2048 }
  0x12   : > { %p426_p0 = scmp.lt.u32.totalorder %s571_s24, %s649_s0  ;;  %p427_p1 = scmp.lt.u32.totalorder %s425_s3, %s420_s29 }
  0x13   : > { %p423_p12 = pnand %p422_p11, %p421_p10  ;;  %p429_p3 = scmp.lt.u32.totalorder %s420_s29, %s571_s24 }
  0x14   : > { %p428_p2 = por %p427_p1, %p426_p0 }
  0x15   : > { %p424_p13 = pneg %p423_p12 }
  0x16   : > { %p430_p4 = por %p429_p3, %p428_p2 }
  0x18   : > { %p431_p5 = pnand %p430_p4, %p424_p13 }
  0x1a   : > { %434 = shalt.err (!%p431_p5)
}
  0x1b   : > { %s435_s6 = scalar_lea.vmem %s579_s26, 1024  ;;  %s502_s12 = smov [#allocation2]  }
  0x1c   : > { %p436_p6 = scmp.ne.s32.totalorder %s579_s26, %s435_s6  ;;  %s440_s14 = sshll.u32 %s502_s12, 4  ;;  %s441_s14 = int_to_ptr.vmem [resolvable:$false] %s440_s14 }
  0x1d   : > { %s442_s15 = scalar_lea.vmem %s441_s14, 2048  ;;  %p443_p12 = scmp.lt.s32.totalorder %s579_s26, %s441_s14 }
  0x1e   : > { %p438_p8 = pnand %p436_p6, %p422_p11  ;;  %p444_p0 = scmp.lt.s32.totalorder %s442_s15, %s435_s6 }
  0x20   : > { %p439_p10 = pneg %p438_p8  ;;  %p445_p1 = por %p444_p0, %p443_p12 }
  0x22   : > { %p446_p2 = pnand %p445_p1, %p439_p10 }
  0x24   : > { %449 = shalt.err (!%p446_p2)
}
  0x25   : > { %s503_s16 = smov 128   ;;  %s504_s19 = smov 8  }
  0x26   : > { %366 = dma.hbm_to_vmem [thread:$0]  (!%p575_p9), %s571_s24, 1024, %s579_s26, %s581_s28, %s503_s16, %s503_s16, %s504_s19  }
  0x27   : > { %p353_p11 = scmp.ge.s32.totalorder %s500_s11, 1  ;;  %p120_p13 = scmp.lt.s32.totalorder %s500_s11, 3 }
  0x29   : > { %p121_p3 = pnand %p353_p11, %p120_p13 }
  0x2a   : > { %s126_s20 = sand.u32 (!%p121_p3), 1, %s484_s7  }
  0x2b   : > { %124 = sbr.rel (%p121_p3) target bundleno = 136 (0x88), region = 24  ;;  %s354_s21 = sshll.u32 (!%p121_p3), %s126_s20, 6 }
  0x2c   : > { %s127_s22 = scalar_lea.sflag (!%p121_p3), [#allocation3], %s126_s20  ;;  %s130_s23 = scalar_lea.vmem (!%p121_p3), [#allocation2], %s354_s21 }
  0x32   : > { %475 = dma.done.wait (%p558_p7), %s127_s22, 1024  }
  0x33   : > { %477 = vsyncadd (%p558_p7), %s127_s22, 4294966272  ;;  %v160_v0 = vld [vmem:[%s130_s23] sm:$0xff]  ;;  %v161_v1 = vld [vmem:[%s130_s23 + $0x8] sm:$0xff]  ;;  %p152_p7 = scmp.lt.s32.totalorder %s492_s9, 1 }
  0x34   : > { %v162_v2 = vld [vmem:[%s130_s23 + $0x10] sm:$0xff]  ;;  %v168_v3 = vadd.f32 %v161_v1, %v160_v0  ;;  %v163_v4 = vld [vmem:[%s130_s23 + $0x18] sm:$0xff]  ;;  %v164_v6 = vld [vmem:[%s130_s23 + $0x20] sm:$0xff] }
  0x35   : > { %v165_v8 = vld [vmem:[%s130_s23 + $0x28] sm:$0xff]  ;;  %v166_v10 = vld [vmem:[%s130_s23 + $0x30] sm:$0xff]  ;;  %v167_v12 = vld [vmem:[%s130_s23 + $0x38] sm:$0xff]  ;;  %s662_s9 = smov (!%p152_p7, %s492_s9), 1 }
  0x36   : > { %v169_v5 = vadd.f32 %v168_v3, %v162_v2  ;;  %s360_s17 = sshll.u32 %s662_s9, 6 }
  0x37   : > { %s621_s26 = scalar_lea.vmem %s650_s1, %s360_s17 }
  0x38   : > { %v170_v7 = vadd.f32 %v169_v5, %v163_v4 }
  0x3a   : > { %v171_v9 = vadd.f32 %v170_v7, %v164_v6 }
  0x3c   : > { %v172_v11 = vadd.f32 %v171_v9, %v165_v8 }
  0x3e   : > { %v173_v13 = vadd.f32 %v172_v11, %v166_v10 }
  0x40   : > { %v174_v14 = vadd.f32 %v173_v13, %v167_v12 }
  0x42   : > { %v175_v15 = vrot.slane %v174_v14, 4 }
  0x44   : > { %v176_v16 = vadd.f32 %v175_v15, %v174_v14 }
  0x46   : > { %v177_v17 = vrot.slane %v176_v16, 2 }
  0x48   : > { %v178_v18 = vadd.f32 %v177_v17, %v176_v16 }
  0x4a   : > { %v179_v19 = vrot.slane %v178_v18, 1 }
  0x4c   : > { %v180_v20 = vadd.f32 %v179_v19, %v178_v18 }
  0x4e   : > { %v182_v21 = vmul.f32 0.015625, %v180_v20 }
  0x50   : > { %v183_v22 = vsub.f32 %v160_v0, %v182_v21  ;;  %v184_v23 = vsub.f32 %v161_v1, %v182_v21  ;;  %v185_v24 = vsub.f32 %v162_v2, %v182_v21  ;;  %v186_v25 = vsub.f32 %v163_v4, %v182_v21 }
  0x51   : > { %v187_v26 = vsub.f32 %v164_v6, %v182_v21  ;;  %v188_v30 = vsub.f32 %v165_v8, %v182_v21  ;;  %v189_v33 = vsub.f32 %v166_v10, %v182_v21  ;;  %v190_v36 = vsub.f32 %v167_v12, %v182_v21 }
  0x52   : > { %v191_v27 = vmul.f32 %v183_v22, %v183_v22  ;;  %v192_v28 = vmul.f32 %v184_v23, %v184_v23  ;;  %v193_v29 = vmul.f32 %v185_v24, %v185_v24  ;;  %v194_v31 = vmul.f32 %v186_v25, %v186_v25 }
  0x53   : > { %v195_v34 = vmul.f32 %v187_v26, %v187_v26  ;;  %v196_v37 = vmul.f32 %v188_v30, %v188_v30  ;;  %v197_v39 = vmul.f32 %v189_v33, %v189_v33  ;;  %v198_v41 = vmul.f32 %v190_v36, %v190_v36 }
  0x54   : > { %v199_v32 = vadd.f32 %v192_v28, %v191_v27 }
  0x56   : > { %v200_v35 = vadd.f32 %v199_v32, %v193_v29 }
  0x58   : > { %v201_v38 = vadd.f32 %v200_v35, %v194_v31 }
  0x5a   : > { %v202_v40 = vadd.f32 %v201_v38, %v195_v34 }
  0x5c   : > { %v203_v42 = vadd.f32 %v202_v40, %v196_v37 }
  0x5e   : > { %v204_v43 = vadd.f32 %v203_v42, %v197_v39 }
  0x60   : > { %v205_v44 = vadd.f32 %v204_v43, %v198_v41 }
  0x62   : > { %v206_v45 = vrot.slane %v205_v44, 4 }
  0x64   : > { %v207_v46 = vadd.f32 %v206_v45, %v205_v44 }
  0x66   : > { %v208_v47 = vrot.slane %v207_v46, 2 }
  0x68   : > { %v209_v48 = vadd.f32 %v208_v47, %v207_v46 }
  0x6a   : > { %v210_v49 = vrot.slane %v209_v48, 1 }
  0x6c   : > { %v211_v50 = vadd.f32 %v210_v49, %v209_v48 }
  0x6e   : > { %v212_v51 = vmul.f32 0.015625, %v211_v50 }
  0x70   : > { %v213_v52 = vadd.f32 1e-05, %v212_v51 }
  0x72   : > { %418 = vrsqrt.f32 %v213_v52 }
  0x7c   : > { %v419_v53 = vpop.eup %418 }
  0x7d   : > { %v215_v54 = vmul.f32 %v419_v53, %v183_v22  ;;  %v216_v55 = vmul.f32 %v419_v53, %v184_v23  ;;  %v217_v56 = vmul.f32 %v419_v53, %v185_v24  ;;  %v218_v57 = vmul.f32 %v419_v53, %v186_v25 }
  0x7e   : > { %v219_v58 = vmul.f32 %v419_v53, %v187_v26  ;;  %v220_v59 = vmul.f32 %v419_v53, %v188_v30  ;;  %v221_v60 = vmul.f32 %v419_v53, %v189_v33  ;;  %v222_v61 = vmul.f32 %v419_v53, %v190_v36 }
  0x7f   : > { %vm223_vm0 = vcmp.ge.f32.partialorder %v215_v54, 0.0  ;;  %v231_v62 = vmul.f32 0.2, %v215_v54  ;;  %vm224_vm1 = vcmp.ge.f32.partialorder %v216_v55, 0.0  ;;  %v232_v63 = vmul.f32 0.2, %v216_v55 }
  0x80   : > { %vm225_vm2 = vcmp.ge.f32.partialorder %v217_v56, 0.0  ;;  %v233_v0 = vmul.f32 0.2, %v217_v56  ;;  %vm226_vm3 = vcmp.ge.f32.partialorder %v218_v57, 0.0  ;;  %v234_v1 = vmul.f32 0.2, %v218_v57 }
  0x81   : > { %v239_v2 = vsel %vm223_vm0, %v215_v54, %v231_v62  ;;  %v240_v3 = vsel %vm224_vm1, %v216_v55, %v232_v63  ;;  %vm227_vm4 = vcmp.ge.f32.partialorder %v219_v58, 0.0  ;;  %v235_v4 = vmul.f32 0.2, %v219_v58 }
  0x82   : > { %247 = vst [vmem:[%s621_s26] sm:$0xff] %v239_v2  ;;  %248 = vst [vmem:[%s621_s26 + $0x8] sm:$0xff] %v240_v3  ;;  %v241_v5 = vsel %vm225_vm2, %v217_v56, %v233_v0  ;;  %v242_v6 = vsel %vm226_vm3, %v218_v57, %v234_v1  ;;  %vm228_vm5 = vcmp.ge.f32.partialorder %v220_v59, 0.0  ;;  %v236_v7 = vmul.f32 0.2, %v220_v59 }
  0x83   : > { %249 = vst [vmem:[%s621_s26 + $0x10] sm:$0xff] %v241_v5  ;;  %250 = vst [vmem:[%s621_s26 + $0x18] sm:$0xff] %v242_v6  ;;  %v243_v8 = vsel %vm227_vm4, %v219_v58, %v235_v4  ;;  %vm229_vm6 = vcmp.ge.f32.partialorder %v221_v60, 0.0  ;;  %v237_v9 = vmul.f32 0.2, %v221_v60  ;;  %vm230_vm7 = vcmp.ge.f32.partialorder %v222_v61, 0.0 }
  0x84   : > { %251 = vst [vmem:[%s621_s26 + $0x20] sm:$0xff] %v243_v8  ;;  %v244_v10 = vsel %vm228_vm5, %v220_v59, %v236_v7  ;;  %v238_v11 = vmul.f32 0.2, %v222_v61 }
  0x85   : > { %252 = vst [vmem:[%s621_s26 + $0x28] sm:$0xff] %v244_v10  ;;  %v245_v12 = vsel %vm229_vm6, %v221_v60, %v237_v9 }
  0x86   : > { %253 = vst [vmem:[%s621_s26 + $0x30] sm:$0xff] %v245_v12  ;;  %v246_v13 = vsel %vm230_vm7, %v222_v61, %v238_v11 }
  0x87   : > { %254 = vst [vmem:[%s621_s26 + $0x38] sm:$0xff] %v246_v13 }
  0x88 PF: > { %s14_s11 = sadd.s32 1, %s500_s11   ;;  %s654_s6 = smov %s484_s7 }
  0x89   : > { %p11_p9 = scmp.ge.s32.totalorder %s14_s11, 4   ;;  %s655_s7 = smov %s488_s8 }
  0x8a   : > { %s656_s8 = smov %s564_s18  ;;  %s657_s9 = smov %s496_s10 }
  0x8b   : > { %s658_s10 = smov %s660_s13  ;;  %13 = sbr.rel (!%p11_p9) target bundleno = 4 (0x4), region = 64 }
  0x92   :  { %282 = vsyncpa [#allocation3], 1 }
  0x93   :  { %284 = vsyncpa [#allocation3 + $0x1], 1 }

// kernel: discriminator_forward.12
= control target key start
LH: loop header
LB: loop body
LE: loop exit
PB: predicated region body
PF: predicated region fallthrough
CT: control target
= control target key end

     0   :  { %6 = vsyncpa [#allocation3], 0  ;;  %s675_s0 = inlined_call_operand.hbm [shape: f32[2,16,256], index: 0, kind: input, shape index: {}]   ;;  %s676_s1 = inlined_call_operand.vmem [shape: f32[2,16,256], index: 1, kind: output, shape index: {}]  }
   0x1   :  { %8 = vsyncpa [#allocation3 + $0x1], 0  ;;  %s510_s6 = smov 0   ;;  %s512_s7 = smov 0  }
   0x2   :  { %s514_s8 = smov 0   ;;  %s516_s9 = smov 0  }
   0x3   :  { %s518_s10 = smov 0   ;;  %s520_s11 = smov 0  }
   0x4   :  { %s522_s12 = smov 0   ;;  %s524_s13 = smov 0  }
   0x5 LB: > { %s307_s14 = sadd.s32 4294967295, %s494_s13   ;;  %s23_s15 = sadd.s32 1, %s486_s11  ;;  %s494_s13 = sphi %s524_s13, %s14_s13   ;;  %s490_s12 = sphi %s522_s12, %s689_s12   ;;  %s486_s11 = sphi %s520_s11, %s688_s11   ;;  %s482_s10 = sphi %s518_s10, %s687_s10   ;;  %s478_s9 = sphi %s516_s9, %s686_s9   ;;  %s474_s8 = sphi %s514_s8, %s685_s8   ;;  %s470_s7 = sphi %s512_s7, %s684_s7   ;;  %s466_s6 = sphi %s510_s6, %s683_s6  }
   0x6   : > { %p24_p0 = scmp.ge.s32.totalorder %s23_s15, 2  ;;  %s26_s16 = sadd.s32 1, %s490_s12 }
   0x7   : > { %s35_s17 = sadd.s32 1, %s474_s8  ;;  %p42_p1 = scmp.ne.s32.totalorder %s474_s8, %s470_s7 }
   0x8   : > { %s691_s15 = smov (%p24_p0, %s23_s15), 0  ;;  %s693_s16 = smov (!%p24_p0, %s26_s16), %s490_s12 }
   0x9   : > { %s31_s18 = ssub.s32 %s486_s11, %s691_s15  ;;  %p43_p2 = scmp.eq.s32.totalorder %s494_s13, 0 }
   0xa   : > { %p28_p3 = scmp.ge.s32.totalorder %s693_s16, 2  ;;  %p48_p4 = scmp.ne.s32.totalorder %s470_s7, %s466_s6 }
   0xb   : > { %p564_p5 = por %p43_p2, %p42_p1  ;;  %p49_p6 = scmp.eq.s32.totalorder %s307_s14, 0 }
   0xc   : > { %s695_s16 = smov (%p28_p3, %s693_s16), 0  ;;  %p74_p8 = scmp.eq.s32.totalorder %s307_s14, 3 }
   0xd   : > { %p570_p7 = por %p49_p6, %p48_p4  ;;  %s30_s21 = ssub.s32 %s490_s12, %s695_s16 }
   0xe   : > { %s32_s22 = sor.u32 %s31_s18, %s30_s21  ;;  %p579_p9 = por %p74_p8, %p42_p1 }
   0xf   : > { %p33_p10 = scmp.eq.s32.totalorder %s32_s22, 0  ;;  %p328_p11 = scmp.lt.s32.totalorder %s494_s13, 4 }
  0x10   : > { %s679_s23 = scalar_select %p579_p9, 1, 0 }
  0x11   : > { %s100_s24 = sand.u32 1, %s474_s8   ;;  %s312_s25 = sshll.u32 %s490_s12, 2 }
  0x12   : > { %s587_s26 = scalar_select %p33_p10, %s474_s8, %s35_s17  }
  0x13   : > { %s311_s27 = sshll.u32 %s100_s24, 4  ;;  %s109_s28 = sadd.s32 %s486_s11, %s312_s25 }
  0x14   : > { %s313_s29 = sshll.u32 %s109_s28, 7  ;;  %s104_s30 = scalar_lea.vmem [#allocation2], %s311_s27 }
  0x15   : > { %s112_s2 = sshll.u32 %s104_s30, 4  ;;  %s593_s5 = scalar_lea.hbm %s675_s0, %s313_s29  ;;  %s595_s2 = int_to_ptr.vmem [resolvable:$true] %s112_s2 }
  0x16   : > { %p599_p12 = pnand %p328_p11, %p564_p5  ;;  %s604_s14 = scalar_lea.sflag [#allocation3], %s100_s24 }
  0x17   : > { %s398_s17 = scalar_lea.hbm %s593_s5, 256  ;;  %s403_s19 = scalar_lea.hbm %s675_s0, 1024 }
  0x18   : > { %p399_p0 = scmp.ne.s32.totalorder %s593_s5, %s398_s17  ;;  %p400_p1 = pneg %p599_p12 }
  0x19   : > { %p404_p4 = scmp.lt.u32.totalorder %s593_s5, %s675_s0  ;;  %p405_p5 = scmp.lt.u32.totalorder %s403_s19, %s398_s17 }
  0x1a   : > { %p401_p2 = pnand %p400_p1, %p399_p0  ;;  %p407_p8 = scmp.lt.u32.totalorder %s398_s17, %s593_s5 }
  0x1b   : > { %p406_p6 = por %p405_p5, %p404_p4 }
  0x1c   : > { %p402_p3 = pneg %p401_p2 }
  0x1d   : > { %p408_p10 = por %p407_p8, %p406_p6 }
  0x1f   : > { %p409_p11 = pnand %p408_p10, %p402_p3 }
  0x21   : > { %412 = shalt.err (!%p409_p11)
}
  0x22   : > { %s413_s24 = scalar_lea.vmem %s595_s2, 256  ;;  %s496_s27 = smov [#allocation2]  }
  0x23   : > { %p414_p0 = scmp.ne.s32.totalorder %s595_s2, %s413_s24  ;;  %s418_s28 = sshll.u32 %s496_s27, 4  ;;  %s419_s28 = int_to_ptr.vmem [resolvable:$false] %s418_s28 }
  0x24   : > { %s420_s29 = scalar_lea.vmem %s419_s28, 512  ;;  %p421_p9 = scmp.lt.s32.totalorder %s595_s2, %s419_s28 }
  0x25   : > { %p416_p2 = pnand %p414_p0, %p400_p1  ;;  %p422_p4 = scmp.lt.s32.totalorder %s420_s29, %s413_s24 }
  0x27   : > { %p417_p13 = pneg %p416_p2  ;;  %p423_p5 = por %p422_p4, %p421_p9 }
  0x29   : > { %p424_p6 = pnand %p423_p5, %p417_p13 }
  0x2b   : > { %427 = shalt.err (!%p424_p6)
}
  0x2c   : > { %s497_s30 = smov 256   ;;  %s498_s3 = smov 128  }
  0x2d   : > { %s499_s4 = smov 8   ;;  %p120_p1 = scmp.lt.s32.totalorder %s494_s13, 5 }
  0x2e   : > { %327 = dma.hbm_to_vmem [thread:$0]  (!%p599_p12), %s593_s5, 256, %s595_s2, %s604_s14, %s497_s30, %s498_s3, %s499_s4  }
  0x2f   : > { %p681_p3 = scmp.ge.s32.totalorder %s494_s13, 1 }
  0x31   : > { %p121_p8 = pnand %p681_p3, %p120_p1 }
  0x32   : > { %s126_s17 = sand.u32 (!%p121_p8), 1, %s470_s7  }
  0x33   : > { %124 = sbr.rel (%p121_p8) target bundleno = 123 (0x7b), region = 24  ;;  %s636_s18 = sshll.u32 (!%p121_p8), %s126_s17, 4 }
  0x34   : > { %s127_s21 = scalar_lea.sflag (!%p121_p8), [#allocation3], %s126_s17  ;;  %s130_s19 = scalar_lea.vmem (!%p121_p8), [#allocation2], %s636_s18 }
  0x3a   : > { %461 = dma.done.wait (%p570_p7), %s127_s21, 256  }
  0x3b   : > { %463 = vsyncadd (%p570_p7), %s127_s21, 4294967040  ;;  %v148_v0 = vld [vmem:[%s130_s19] sm:$0xff]  ;;  %v149_v1 = vld [vmem:[%s130_s19 + $0x8] sm:$0xff]  ;;  %s147_s20 = scalar_lea.vmem [#allocation4], %s636_s18  ;;  %p682_p7 = scmp.ne.s32.totalorder %s679_s23, 0 }
  0x3c   : > { %v150_v2 = vadd.f32 %v149_v1, %v148_v0  ;;  %s318_s2 = sshll.u32 (%p682_p7), %s482_s10, 2 }
  0x3d   : > { %s191_s5 = sadd.s32 (%p682_p7), %s478_s9, %s318_s2 }
  0x3e   : > { %v151_v3 = vrot.slane %v150_v2, 4  ;;  %s319_s6 = sshll.u32 (%p682_p7), %s191_s5, 3 }
  0x3f   : > { %s193_s25 = scalar_lea.vmem (%p682_p7), %s676_s1, %s319_s6 }
  0x40   : > { %v152_v4 = vadd.f32 %v151_v3, %v150_v2 }
  0x42   : > { %v153_v5 = vrot.slane %v152_v4, 2 }
  0x44   : > { %v154_v6 = vadd.f32 %v153_v5, %v152_v4 }
  0x46   : > { %v155_v7 = vrot.slane %v154_v6, 1 }
  0x48   : > { %v156_v8 = vadd.f32 %v155_v7, %v154_v6 }
  0x4a   : > { %v158_v9 = vmul.f32 0.0625, %v156_v8 }
  0x4c   : > { %v159_v10 = vsub.f32 %v148_v0, %v158_v9  ;;  %v160_v11 = vsub.f32 %v149_v1, %v158_v9 }
  0x4e   : > { %v161_v12 = vmul.f32 %v159_v10, %v159_v10  ;;  %v162_v13 = vmul.f32 %v160_v11, %v160_v11 }
  0x50   : > { %v163_v14 = vadd.f32 %v162_v13, %v161_v12 }
  0x52   : > { %v164_v15 = vrot.slane %v163_v14, 4 }
  0x54   : > { %v165_v16 = vadd.f32 %v164_v15, %v163_v14 }
  0x56   : > { %v166_v17 = vrot.slane %v165_v16, 2 }
  0x58   : > { %v167_v18 = vadd.f32 %v166_v17, %v165_v16 }
  0x5a   : > { %v168_v19 = vrot.slane %v167_v18, 1 }
  0x5c   : > { %v169_v20 = vadd.f32 %v168_v19, %v167_v18 }
  0x5e   : > { %v170_v21 = vmul.f32 0.0625, %v169_v20 }
  0x60   : > { %v171_v22 = vadd.f32 1e-05, %v170_v21 }
  0x62   : > { %396 = vrsqrt.f32 %v171_v22 }
  0x6c   : > { %v397_v23 = vpop.eup %396  ;;  %189 = sbr.rel (!%p682_p7) target bundleno = 123 (0x7b), region = 32 }
  0x6d   : > { %v173_v24 = vmul.f32 %v397_v23, %v159_v10  ;;  %v174_v25 = vmul.f32 %v397_v23, %v160_v11 }
  0x6f   : > { %vm175_vm0 = vcmp.ge.f32.partialorder %v173_v24, 0.0  ;;  %v177_v26 = vmul.f32 0.2, %v173_v24  ;;  %vm176_vm1 = vcmp.ge.f32.partialorder %v174_v25, 0.0  ;;  %v178_v27 = vmul.f32 0.2, %v174_v25 }
  0x71   : > { %v179_v28 = vsel %vm175_vm0, %v173_v24, %v177_v26  ;;  %v180_v29 = vsel %vm176_vm1, %v174_v25, %v178_v27 }
  0x72   : > { %181 = vst [vmem:[%s147_s20] sm:$0xff] %v179_v28  ;;  %182 = vst [vmem:[%s147_s20 + $0x8] sm:$0xff] %v180_v29 }
  0x79   : > { %v223_v30 = vld [vmem:[%s147_s20] sm:$0xff]  ;;  %v225_v31 = vld [vmem:[%s147_s20 + $0x8] sm:$0xff] }
  0x7a   : > { %224 = vst [vmem:[%s193_s25] sm:$0xff] %v223_v30  ;;  %226 = vst [vmem:[%s193_s25 + $0x10] sm:$0xff] %v225_v31 }
  0x7b PF: > { %s14_s13 = sadd.s32 1, %s494_s13   ;;  %s683_s6 = smov %s470_s7 }
  0x7c   : > { %p11_p9 = scmp.ge.s32.totalorder %s14_s13, 6   ;;  %s684_s7 = smov %s474_s8 }
  0x7d   : > { %s685_s8 = smov %s587_s26  ;;  %s686_s9 = smov %s486_s11 }
  0x7e   : > { %s687_s10 = smov %s490_s12  ;;  %s688_s11 = smov %s691_s15 }
  0x7f   : > { %s689_s12 = smov %s695_s16  ;;  %13 = sbr.rel (!%p11_p9) target bundleno = 5 (0x5), region = 102 }
  0x86   :  { %242 = vsyncpa [#allocation3], 1 }
  0x87   :  { %244 = vsyncpa [#allocation3 + $0x1], 1 }

// kernel: discriminator_forward.11
= control target key start
LH: loop header
LB: loop body
LE: loop exit
PB: predicated region body
PF: predicated region fallthrough
CT: control target
= control target key end

     0   :  { %s1825_s0 = inlined_call_operand.hbm [shape: bf16[32,2048], index: 0, kind: input, shape index: {}]   ;;  %s1826_s1 = inlined_call_operand.hbm [shape: bf16[2048,256], index: 1, kind: input, shape index: {}]   ;;  %s1827_s2 = inlined_call_operand.hbm [shape: f32[1,256], index: 2, kind: input, shape index: {}]   ;;  %s1828_s3 = inlined_call_operand.hbm [shape: f32[32,256], index: 3, kind: output, shape index: {}]  }
   0x1   :  { %1833 = sst [smem:[#allocation14_spill]] %s1825_s0 }
   0x2   :  { %8 = vsyncpa [#allocation4], 0 }
   0x3   :  { %10 = vsyncpa [#allocation4 + $0x1], 0 }
   0x4   :  { %11 = vsyncpa [#allocation7], 0 }
   0x5   :  { %13 = vsyncpa [#allocation7 + $0x1], 0 }
   0x6   :  { %14 = vsyncpa [#allocation5], 0  ;;  %s1524_s12 = smov 0   ;;  %s1526_s13 = smov 0  }
   0x7   :  { %s1528_s14 = smov 0   ;;  %s1530_s15 = smov 0  }
   0x8   :  { %s1532_s16 = smov 0   ;;  %s1534_s17 = smov 0  }
   0x9 LB: > { %s1553_s18 = sadd.s32 4294967295, %s1490_s17   ;;  %s48_s19 = sadd.s32 1, %s1478_s14  ;;  %s1490_s17 = sphi %s1534_s17, %s20_s17   ;;  %s1486_s16 = sphi %s1532_s16, %s1848_s16   ;;  %s1482_s15 = sphi %s1530_s15, %s1847_s15   ;;  %s1478_s14 = sphi %s1528_s14, %s1846_s14   ;;  %s1474_s13 = sphi %s1526_s13, %s1845_s13   ;;  %s1470_s12 = sphi %s1524_s12, %s1844_s12  }
   0xa   : > { %p55_p0 = scmp.ne.s32.totalorder %s1478_s14, %s1474_s13  ;;  %p56_p1 = scmp.eq.s32.totalorder %s1490_s17, 0 }
   0xb   : > { %p61_p2 = scmp.ne.s32.totalorder %s1474_s13, %s1470_s12  ;;  %p1829_p3 = scmp.eq.s32.totalorder %s1553_s18, 0 }
   0xc   : > { %p57_p4 = por %p56_p1, %p55_p0  ;;  %p1017_p5 = scmp.ge.s32.totalorder %s1490_s17, 1 }
   0xd   : > { %p1564_p6 = por %p1829_p3, %p61_p2  ;;  %p154_p7 = scmp.lt.s32.totalorder %s1490_s17, 5 }
   0xe   : > { %s1492_s22 = smov [#allocation8]   ;;  %p1144_p10 = scmp.lt.s32.totalorder %s1490_s17, 4 }
   0xf   : > { %s1834_s20 = scalar_select %p1564_p6, 1, 0 }
  0x10   : > { %p1569_p8 = pnand %p1017_p5, %p154_p7  ;;  %s170_s23 = sshll.u32 %s1492_s22, 4  ;;  %s171_s23 = int_to_ptr.vmem [resolvable:$true] %s170_s23 }
  0x11   : > { %s1577_s24 = sand.u32 1, %s1478_s14   ;;  %p1585_p12 = pnand %p1144_p10, %p57_p4 }
  0x12   : > { %s1835_s21 = scalar_select %p1569_p8, 1, 0 }
  0x13   : > { %p1132_p9 = pneg %p1569_p8  ;;  %s1314_s29 = scalar_lea.hbm %s1827_s2, 32 }
  0x14   : > { %s1837_s26 = scalar_select %p1585_p12, 1, 0 }
  0x15   : > { %p1581_p11 = pnand %p1132_p9, %p1829_p3  ;;  %p1315_p13 = scmp.ne.s32.totalorder %s1827_s2, %s1314_s29 }
  0x16   : > { %p1321_p5 = scmp.lt.u32.totalorder %s1314_s29, %s1827_s2 }
  0x17   : > { %p1316_p0 = pneg %p1581_p11 }
  0x19   : > { %p1317_p1 = pnand %p1316_p0, %p1315_p13 }
  0x1b   : > { %p1318_p2 = pneg %p1317_p1 }
  0x1d   : > { %p1323_p4 = pnand %p1321_p5, %p1318_p2 }
  0x1f   : > { %1326 = shalt.err (!%p1323_p4)
}
  0x20   : > { %s1327_s7 = scalar_lea.vmem %s171_s23, 32  ;;  %p1335_p3 = scmp.lt.s32.totalorder %s171_s23, %s171_s23 }
  0x21   : > { %p1328_p7 = scmp.ne.s32.totalorder %s171_s23, %s1327_s7  ;;  %p1336_p6 = scmp.lt.s32.totalorder %s1327_s7, %s1327_s7 }
  0x23   : > { %p1330_p9 = pnand %p1328_p7, %p1316_p0  ;;  %p1337_p8 = por %p1336_p6, %p1335_p3 }
  0x25   : > { %p1331_p10 = pneg %p1330_p9 }
  0x27   : > { %p1338_p12 = pnand %p1337_p8, %p1331_p10 }
  0x29   : > { %1341 = shalt.err (!%p1338_p12)
}
  0x2a   : > { %1135 = dma.hbm_to_vmem [thread:$0]  (!%p1581_p11), %s1827_s2, 32, %s171_s23, [#allocation7]  }
  0x2b   : > { %s32_s10 = sadd.s32 1, %s1486_s16  ;;  %s1020_s11 = sshll.u32 %s1577_s24, 6 }
  0x2c   : > { %p33_p3 = scmp.ge.s32.totalorder %s32_s10, 4  ;;  %s1109_s12 = sshll.u32 %s1486_s16, 8 }
  0x2d   : > { %s185_s22 = scalar_lea.vmem [#allocation3], %s1020_s11  ;;  %s1838_s0 = sld [smem:[#allocation14_spill]] }
  0x2e   : > { %s195_s25 = sshll.u32 %s185_s22, 4  ;;  %s1850_s10 = smov (%p33_p3, %s32_s10), 0  ;;  %s1615_s25 = int_to_ptr.vmem [resolvable:$true] %s195_s25 }
  0x2f   : > { %s44_s23 = ssub.s32 %s1486_s16, %s1850_s10  ;;  %s205_s30 = sand.u32 1, %s1490_s17  }
  0x30   : > { %p46_p6 = scmp.eq.s32.totalorder %s44_s23, 0  ;;  %s182_s5 = scalar_lea.sflag [#allocation4], %s1577_s24 }
  0x31   : > { %p1839_p11 = scmp.ne.s32.totalorder %s1837_s26, 0 }
  0x32   : > { %s1623_s4 = scalar_select %p46_p6, %s1478_s14, %s48_s19  }
  0x33   : > { %s1613_s29 = scalar_lea.hbm %s1838_s0, %s1109_s12  ;;  %p1344_p12 = pneg %p1839_p11 }
  0x34   : > { %s1342_s6 = scalar_lea.hbm %s1613_s29, 1024  ;;  %s1347_s9 = scalar_lea.hbm %s1838_s0, 4096 }
  0x35   : > { %p1343_p8 = scmp.ne.s32.totalorder %s1613_s29, %s1342_s6  ;;  %p1348_p1 = scmp.lt.u32.totalorder %s1613_s29, %s1838_s0 }
  0x36   : > { %p1349_p2 = scmp.lt.u32.totalorder %s1347_s9, %s1342_s6  ;;  %p1351_p4 = scmp.lt.u32.totalorder %s1342_s6, %s1613_s29 }
  0x37   : > { %p1345_p13 = pnand %p1344_p12, %p1343_p8 }
  0x38   : > { %p1350_p5 = por %p1349_p2, %p1348_p1 }
  0x39   : > { %p1346_p0 = pneg %p1345_p13 }
  0x3a   : > { %p1352_p7 = por %p1351_p4, %p1350_p5 }
  0x3c   : > { %p1353_p9 = pnand %p1352_p7, %p1346_p0 }
  0x3e   : > { %1356 = shalt.err (!%p1353_p9)
}
  0x3f   : > { %s1357_s19 = scalar_lea.vmem %s1615_s25, 1024  ;;  %s1493_s22 = smov [#allocation3]  }
  0x40   : > { %p1358_p10 = scmp.ne.s32.totalorder %s1615_s25, %s1357_s19  ;;  %s1362_s27 = sshll.u32 %s1493_s22, 4  ;;  %s1363_s27 = int_to_ptr.vmem [resolvable:$false] %s1362_s27 }
  0x41   : > { %s1364_s28 = scalar_lea.vmem %s1363_s27, 2048  ;;  %p1365_p8 = scmp.lt.s32.totalorder %s1615_s25, %s1363_s27 }
  0x42   : > { %p1360_p3 = pnand %p1358_p10, %p1344_p12  ;;  %p1366_p13 = scmp.lt.s32.totalorder %s1364_s28, %s1357_s19 }
  0x44   : > { %p1361_p6 = pneg %p1360_p3  ;;  %p1367_p1 = por %p1366_p13, %p1365_p8 }
  0x46   : > { %p1368_p2 = pnand %p1367_p1, %p1361_p6 }
  0x48   : > { %1371 = shalt.err (!%p1368_p2)
}
  0x49   : > { %s1494_s23 = smov 1024   ;;  %s1495_s6 = smov 256  }
  0x4a   : > { %s1496_s7 = smov 16   ;;  %s1023_s8 = sshll.u32 %s1577_s24, 9 }
  0x4b   : > { %1139 = dma.hbm_to_vmem [thread:$0]  (!%p1839_p11), %s1613_s29, 1024, %s1615_s25, %s182_s5, %s1494_s23, %s1495_s6, %s1496_s7  }
  0x4c   : > { %s1111_s9 = sshll.u32 %s1486_s16, 13  ;;  %s209_s22 = scalar_lea.vmem [#allocation6], %s1023_s8 }
  0x4d   : > { %s1658_s19 = scalar_lea.hbm %s1826_s1, %s1111_s9  ;;  %s219_s27 = sshll.u32 %s209_s22, 4  ;;  %s1660_s27 = int_to_ptr.vmem [resolvable:$true] %s219_s27 }
  0x4e   : > { %s1664_s28 = scalar_lea.sflag [#allocation7], %s205_s30  ;;  %s1372_s0 = scalar_lea.hbm %s1658_s19, 8192 }
  0x4f   : > { %p1373_p0 = scmp.ne.s32.totalorder %s1658_s19, %s1372_s0  ;;  %s1377_s29 = scalar_lea.hbm %s1826_s1, 32768 }
  0x50   : > { %p1378_p7 = scmp.lt.u32.totalorder %s1658_s19, %s1826_s1  ;;  %p1379_p9 = scmp.lt.u32.totalorder %s1377_s29, %s1372_s0 }
  0x51   : > { %p1375_p5 = pnand %p1373_p0, %p1344_p12  ;;  %p1381_p3 = scmp.lt.u32.totalorder %s1372_s0, %s1658_s19 }
  0x52   : > { %p1380_p10 = por %p1379_p9, %p1378_p7 }
  0x53   : > { %p1376_p4 = pneg %p1375_p5 }
  0x54   : > { %p1382_p6 = por %p1381_p3, %p1380_p10 }
  0x56   : > { %p1383_p8 = pnand %p1382_p6, %p1376_p4 }
  0x58   : > { %1386 = shalt.err (!%p1383_p8)
}
  0x59   : > { %s1387_s30 = scalar_lea.vmem %s1660_s27, 8192  ;;  %s1497_s6 = smov [#allocation6]  }
  0x5a   : > { %p1388_p13 = scmp.ne.s32.totalorder %s1660_s27, %s1387_s30  ;;  %s1392_s7 = sshll.u32 %s1497_s6, 4  ;;  %s1393_s7 = int_to_ptr.vmem [resolvable:$false] %s1392_s7 }
  0x5b   : > { %s1394_s8 = scalar_lea.vmem %s1393_s7, 16384  ;;  %p1395_p0 = scmp.lt.s32.totalorder %s1660_s27, %s1393_s7 }
  0x5c   : > { %p1390_p1 = pnand %p1388_p13, %p1344_p12  ;;  %p1396_p5 = scmp.lt.s32.totalorder %s1394_s8, %s1387_s30 }
  0x5e   : > { %p1391_p2 = pneg %p1390_p1  ;;  %p1397_p7 = por %p1396_p5, %p1395_p0 }
  0x60   : > { %p1398_p9 = pnand %p1397_p7, %p1391_p2 }
  0x62   : > { %1401 = shalt.err (!%p1398_p9)
}
  0x63   : > { %s1498_s0 = smov 128   ;;  %s1499_s9 = smov 8  }
  0x64   : > { %1142 = dma.hbm_to_vmem [thread:$0]  (!%p1839_p11), %s1658_s19, 8192, %s1660_s27, %s1664_s28, %s1498_s0, %s1498_s0, %s1499_s9  }
  0x65   : > { %p1840_p12 = scmp.ne.s32.totalorder %s1835_s21, 0 }
  0x66   : > { %s233_s11 = sand.u32 (!%p1840_p12), 1, %s1474_s13   ;;  %p1841_p4 = scmp.ne.s32.totalorder (!%p1840_p12), %s1834_s20, 0 }
  0x67   : > { %231 = sbr.rel (%p1840_p12) target bundleno = 456 (0x1c8), region = 32  ;;  %s1028_s12 = sshll.u32 (!%p1840_p12), %s233_s11, 6 }
  0x68   : > { %s234_s22 = scalar_lea.sflag (!%p1840_p12), [#allocation4], %s233_s11  ;;  %s1693_s24 = scalar_lea.vmem (!%p1840_p12), [#allocation3], %s1028_s12 }
  0x6e   : > { %1453 = dma.done.wait (%p1841_p4), %s234_s22, 1024  }
  0x6f   : > { %1455 = vsyncadd (%p1841_p4), %s234_s22, 4294966272  ;;  %s242_s25 = sand.u32 1, %s1553_s18   ;;  %s1029_s26 = sshll.u32 %s233_s11, 9 }
  0x70   : > { %s243_s19 = scalar_lea.sflag [#allocation7], %s242_s25  ;;  %s1700_s27 = scalar_lea.vmem [#allocation6], %s1029_s26 }
  0x71   : > { %1457 = dma.done.wait (%p1841_p4), %s243_s19, 8192  }
  0x72   : > { %1459 = vsyncadd (%p1841_p4), %s243_s19, 4294959104  ;;  %p1842_p11 = scmp.eq.s32.totalorder %s1553_s18, 0 }
  0x74   : > { %1461 = dma.done.wait (%p1842_p11), [#allocation7], 32   ;;  %p1843_p10 = pmov %p1842_p11 }
  0x75   : > { %p1031_p3 = scmp.ne.s32.totalorder %s1482_s15, 0 }
  0x76   : > { %1463 = vsyncadd (%p1843_p10), [#allocation7], 4294967264  ;;  %v1500_v0 = vmov (!%p1031_p3), 0.0  }
  0x77   : > { %283 = sbr.rel (%p1031_p3) target bundleno = 126 (0x7e), region = 48  ;;  %284 = vst [vmem:[#allocation2] sm:$0xff] (!%p1031_p3), %v1500_v0  ;;  %285 = vst [vmem:[#allocation2 + $0x8] sm:$0xff] (!%p1031_p3), %v1500_v0 }
  0x78   : > { %286 = vst [vmem:[#allocation2 + $0x10] sm:$0xff] (!%p1031_p3), %v1500_v0  ;;  %287 = vst [vmem:[#allocation2 + $0x18] sm:$0xff] (!%p1031_p3), %v1500_v0 }
  0x79   : > { %288 = vst [vmem:[#allocation2 + $0x20] sm:$0xff] (!%p1031_p3), %v1500_v0  ;;  %289 = vst [vmem:[#allocation2 + $0x28] sm:$0xff] (!%p1031_p3), %v1500_v0 }
  0x7a   : > { %290 = vst [vmem:[#allocation2 + $0x30] sm:$0xff] (!%p1031_p3), %v1500_v0  ;;  %291 = vst [vmem:[#allocation2 + $0x38] sm:$0xff] (!%p1031_p3), %v1500_v0 }
  0x7e PF: > { %v1206_v1 = vld [vmem:[%s1700_s27 + $0x4] ss:$8 sps:$4 sm:$0xff]   ;;  %v1210_v3 = vld [vmem:[%s1700_s27] ss:$8 sps:$4 sm:$0xff]   ;;  %v1212_v5 = vld [vmem:[%s1700_s27 + $0x14] ss:$8 sps:$4 sm:$0xff]  }
  0x7f   : > { %v1208_v2 = vld [vmem:[%s1700_s27 + $0x104] ss:$8 sps:$4 sm:$0xff]   ;;  %732 = vmatprep.subr.bf16.mxu1 %v1206_v1  ;;  %v1211_v4 = vld [vmem:[%s1700_s27 + $0x100] ss:$8 sps:$4 sm:$0xff]   ;;  %v1214_v6 = vld [vmem:[%s1700_s27 + $0x114] ss:$8 sps:$4 sm:$0xff]  }
  0x80   : > { %785 = vmatprep.subr.bf16.mxu0 %v1208_v2  ;;  %733 = vmatpush1.bf16.msra.mxu1 %v1210_v3  ;;  %v1216_v7 = vld [vmem:[%s1700_s27 + $0x10] ss:$8 sps:$4 sm:$0xff]   ;;  %v1218_v9 = vld [vmem:[%s1700_s27 + $0x24] ss:$8 sps:$4 sm:$0xff]   ;;  %v1222_v11 = vld [vmem:[%s1700_s27 + $0x20] ss:$8 sps:$4 sm:$0xff]  }
  0x81   : > { %786 = vmatpush1.bf16.msra.mxu0 %v1211_v4  ;;  %734 = vmatprep.subr.bf16.mxu1 %v1212_v5  ;;  %v1217_v8 = vld [vmem:[%s1700_s27 + $0x110] ss:$8 sps:$4 sm:$0xff]   ;;  %v1220_v10 = vld [vmem:[%s1700_s27 + $0x124] ss:$8 sps:$4 sm:$0xff]   ;;  %v1223_v12 = vld [vmem:[%s1700_s27 + $0x120] ss:$8 sps:$4 sm:$0xff]  }
  0x82   : > { %787 = vmatprep.subr.bf16.mxu0 %v1214_v6  ;;  %v1224_v13 = vld [vmem:[%s1700_s27 + $0x34] ss:$8 sps:$4 sm:$0xff]   ;;  %v1228_v15 = vld [vmem:[%s1700_s27 + $0x30] ss:$8 sps:$4 sm:$0xff]   ;;  %v1230_v17 = vld [vmem:[%s1700_s27 + $0x44] ss:$8 sps:$4 sm:$0xff]  }
  0x83   : > { %v1226_v14 = vld [vmem:[%s1700_s27 + $0x134] ss:$8 sps:$4 sm:$0xff]   ;;  %v1229_v16 = vld [vmem:[%s1700_s27 + $0x130] ss:$8 sps:$4 sm:$0xff]   ;;  %v1232_v18 = vld [vmem:[%s1700_s27 + $0x144] ss:$8 sps:$4 sm:$0xff]  }
  0x84   : > { %735 = vmatpush1.bf16.msra.mxu1 %v1216_v7  ;;  %v1234_v19 = vld [vmem:[%s1700_s27 + $0x40] ss:$8 sps:$4 sm:$0xff]   ;;  %v1236_v21 = vld [vmem:[%s1700_s27 + $0x54] ss:$8 sps:$4 sm:$0xff]   ;;  %v1240_v23 = vld [vmem:[%s1700_s27 + $0x50] ss:$8 sps:$4 sm:$0xff]  }
  0x85   : > { %788 = vmatpush1.bf16.msra.mxu0 %v1217_v8  ;;  %736 = vmatprep.subr.bf16.mxu1 %v1218_v9  ;;  %v1235_v20 = vld [vmem:[%s1700_s27 + $0x140] ss:$8 sps:$4 sm:$0xff]   ;;  %v1238_v22 = vld [vmem:[%s1700_s27 + $0x154] ss:$8 sps:$4 sm:$0xff]   ;;  %v1241_v24 = vld [vmem:[%s1700_s27 + $0x150] ss:$8 sps:$4 sm:$0xff]  }
  0x86   : > { %789 = vmatprep.subr.bf16.mxu0 %v1220_v10  ;;  %v1242_v25 = vld [vmem:[%s1700_s27 + $0x64] ss:$8 sps:$4 sm:$0xff]   ;;  %v1246_v27 = vld [vmem:[%s1700_s27 + $0x60] ss:$8 sps:$4 sm:$0xff]   ;;  %v1248_v29 = vld [vmem:[%s1700_s27 + $0x74] ss:$8 sps:$4 sm:$0xff]  }
  0x87   : > { %v1244_v26 = vld [vmem:[%s1700_s27 + $0x164] ss:$8 sps:$4 sm:$0xff]   ;;  %v1247_v28 = vld [vmem:[%s1700_s27 + $0x160] ss:$8 sps:$4 sm:$0xff]   ;;  %v1250_v30 = vld [vmem:[%s1700_s27 + $0x174] ss:$8 sps:$4 sm:$0xff]  }
  0x88   : > { %737 = vmatpush1.bf16.msra.mxu1 %v1222_v11  ;;  %v1252_v31 = vld [vmem:[%s1700_s27 + $0x70] ss:$8 sps:$4 sm:$0xff]   ;;  %v1254_v33 = vld [vmem:[%s1700_s27 + $0x84] ss:$8 sps:$4 sm:$0xff]   ;;  %v1258_v35 = vld [vmem:[%s1700_s27 + $0x80] ss:$8 sps:$4 sm:$0xff]  }
  0x89   : > { %790 = vmatpush1.bf16.msra.mxu0 %v1223_v12  ;;  %738 = vmatprep.subr.bf16.mxu1 %v1224_v13  ;;  %v1253_v32 = vld [vmem:[%s1700_s27 + $0x170] ss:$8 sps:$4 sm:$0xff]   ;;  %v1256_v34 = vld [vmem:[%s1700_s27 + $0x184] ss:$8 sps:$4 sm:$0xff]   ;;  %v1259_v36 = vld [vmem:[%s1700_s27 + $0x180] ss:$8 sps:$4 sm:$0xff]  }
  0x8a   : > { %791 = vmatprep.subr.bf16.mxu0 %v1226_v14  ;;  %v1260_v37 = vld [vmem:[%s1700_s27 + $0x94] ss:$8 sps:$4 sm:$0xff]   ;;  %v1264_v39 = vld [vmem:[%s1700_s27 + $0x90] ss:$8 sps:$4 sm:$0xff]   ;;  %v1266_v41 = vld [vmem:[%s1700_s27 + $0xa4] ss:$8 sps:$4 sm:$0xff]  }
  0x8b   : > { %v1262_v38 = vld [vmem:[%s1700_s27 + $0x194] ss:$8 sps:$4 sm:$0xff]   ;;  %v1265_v40 = vld [vmem:[%s1700_s27 + $0x190] ss:$8 sps:$4 sm:$0xff]   ;;  %v1268_v42 = vld [vmem:[%s1700_s27 + $0x1a4] ss:$8 sps:$4 sm:$0xff]  }
  0x8c   : > { %739 = vmatpush1.bf16.msra.mxu1 %v1228_v15  ;;  %v1270_v43 = vld [vmem:[%s1700_s27 + $0xa0] ss:$8 sps:$4 sm:$0xff]   ;;  %v1272_v45 = vld [vmem:[%s1700_s27 + $0xb4] ss:$8 sps:$4 sm:$0xff]   ;;  %v1276_v47 = vld [vmem:[%s1700_s27 + $0xb0] ss:$8 sps:$4 sm:$0xff]  }
  0x8d   : > { %792 = vmatpush1.bf16.msra.mxu0 %v1229_v16  ;;  %740 = vmatprep.subr.bf16.mxu1 %v1230_v17  ;;  %v1271_v44 = vld [vmem:[%s1700_s27 + $0x1a0] ss:$8 sps:$4 sm:$0xff]   ;;  %v1274_v46 = vld [vmem:[%s1700_s27 + $0x1b4] ss:$8 sps:$4 sm:$0xff]   ;;  %v1277_v48 = vld [vmem:[%s1700_s27 + $0x1b0] ss:$8 sps:$4 sm:$0xff]  }
  0x8e   : > { %793 = vmatprep.subr.bf16.mxu0 %v1232_v18  ;;  %v1278_v49 = vld [vmem:[%s1700_s27 + $0xc4] ss:$8 sps:$4 sm:$0xff]   ;;  %v1282_v53 = vld [vmem:[%s1700_s27 + $0xc0] ss:$8 sps:$4 sm:$0xff]   ;;  %v1284_v55 = vld [vmem:[%s1700_s27 + $0xd4] ss:$8 sps:$4 sm:$0xff]  }
  0x8f   : > { %v1304_v50 = vld [vmem:[%s1693_s24 + $0x4] ss:$16 sps:$4 sm:$0xff]   ;;  %v1307_v52 = vld [vmem:[%s1693_s24 + $0xc] ss:$16 sps:$4 sm:$0xff]   ;;  %v1283_v54 = vld [vmem:[%s1700_s27 + $0x1c0] ss:$8 sps:$4 sm:$0xff]  }
  0x90   : > { %741 = vmatpush1.bf16.msra.mxu1 %v1234_v19  ;;  %v1280_v51 = vld [vmem:[%s1700_s27 + $0x1c4] ss:$8 sps:$4 sm:$0xff]   ;;  %764 = vmatprep.mubr.bf16.mxu1 %v1304_v50  ;;  %v1286_v56 = vld [vmem:[%s1700_s27 + $0x1d4] ss:$8 sps:$4 sm:$0xff]   ;;  %v1288_v57 = vld [vmem:[%s1700_s27 + $0xd0] ss:$8 sps:$4 sm:$0xff]  }
  0x91   : > { %794 = vmatpush1.bf16.msra.mxu0 %v1235_v20  ;;  %742 = vmatprep.subr.bf16.mxu1 %v1236_v21  ;;  %v1289_v58 = vld [vmem:[%s1700_s27 + $0x1d0] ss:$8 sps:$4 sm:$0xff]   ;;  %v1290_v59 = vld [vmem:[%s1700_s27 + $0xe4] ss:$8 sps:$4 sm:$0xff]   ;;  %v1294_v61 = vld [vmem:[%s1700_s27 + $0xe0] ss:$8 sps:$4 sm:$0xff]  }
  0x92   : > { %795 = vmatprep.subr.bf16.mxu0 %v1238_v22  ;;  %817 = vmatprep.mubr.bf16.mxu0 %v1307_v52  ;;  %v1292_v60 = vld [vmem:[%s1700_s27 + $0x1e4] ss:$8 sps:$4 sm:$0xff]   ;;  %v1295_v62 = vld [vmem:[%s1700_s27 + $0x1e0] ss:$8 sps:$4 sm:$0xff]   ;;  %v1296_v63 = vld [vmem:[%s1700_s27 + $0xf4] ss:$8 sps:$4 sm:$0xff]  }
  0x93   : > { %v1298_v0 = vld [vmem:[%s1700_s27 + $0x1f4] ss:$8 sps:$4 sm:$0xff]   ;;  %v1300_v1 = vld [vmem:[%s1700_s27 + $0xf0] ss:$8 sps:$4 sm:$0xff]   ;;  %v292_v10 = vld [vmem:[#allocation2] sm:$0xff]  ;;  %p1104_p6 = scmp.ne.s32.totalorder %s1482_s15, 3 }
  0x94   : > { %743 = vmatpush1.bf16.msra.mxu1 %v1240_v23  ;;  %v1301_v2 = vld [vmem:[%s1700_s27 + $0x1f0] ss:$8 sps:$4 sm:$0xff]   ;;  %v1308_v5 = vld [vmem:[%s1693_s24 + $0x24] ss:$16 sps:$4 sm:$0xff]   ;;  %v1310_v6 = vld [vmem:[%s1693_s24 + $0x2c] ss:$16 sps:$4 sm:$0xff]  }
  0x95   : > { %796 = vmatpush1.bf16.msra.mxu0 %v1241_v24  ;;  %744 = vmatprep.subr.bf16.mxu1 %v1242_v25  ;;  %v1302_v3 = vld [vmem:[%s1693_s24] ss:$16 sps:$4 sm:$0xff]   ;;  %v1305_v4 = vld [vmem:[%s1693_s24 + $0x8] ss:$16 sps:$4 sm:$0xff]  }
  0x96   : > { %797 = vmatprep.subr.bf16.mxu0 %v1244_v26  ;;  %v1312_v7 = vld [vmem:[%s1693_s24 + $0x20] ss:$16 sps:$4 sm:$0xff]   ;;  %v1313_v8 = vld [vmem:[%s1693_s24 + $0x28] ss:$16 sps:$4 sm:$0xff]  }
  0x97   : > { %v293_v14 = vld [vmem:[#allocation2 + $0x8] sm:$0xff]  ;;  %v294_v18 = vld [vmem:[#allocation2 + $0x10] sm:$0xff]  ;;  %v295_v23 = vld [vmem:[#allocation2 + $0x18] sm:$0xff] }
  0x98   : > { %745 = vmatpush1.bf16.msra.mxu1 %v1246_v27 }
  0x99   : > { %798 = vmatpush1.bf16.msra.mxu0 %v1247_v28  ;;  %746 = vmatprep.subr.bf16.mxu1 %v1248_v29 }
  0x9a   : > { %799 = vmatprep.subr.bf16.mxu0 %v1250_v30  ;;  %v296_v30 = vld [vmem:[#allocation2 + $0x20] sm:$0xff] }
  0x9c   : > { %747 = vmatpush1.bf16.msra.mxu1 %v1252_v31 }
  0x9d   : > { %800 = vmatpush1.bf16.msra.mxu0 %v1253_v32  ;;  %748 = vmatprep.subr.bf16.mxu1 %v1254_v33 }
  0x9e   : > { %801 = vmatprep.subr.bf16.mxu0 %v1256_v34  ;;  %v297_v34 = vld [vmem:[#allocation2 + $0x28] sm:$0xff] }
  0xa0   : > { %749 = vmatpush1.bf16.msra.mxu1 %v1258_v35 }
  0xa1   : > { %802 = vmatpush1.bf16.msra.mxu0 %v1259_v36  ;;  %750 = vmatprep.subr.bf16.mxu1 %v1260_v37 }
  0xa2   : > { %803 = vmatprep.subr.bf16.mxu0 %v1262_v38  ;;  %v298_v38 = vld [vmem:[#allocation2 + $0x30] sm:$0xff] }
  0xa4   : > { %751 = vmatpush1.bf16.msra.mxu1 %v1264_v39 }
  0xa5   : > { %804 = vmatpush1.bf16.msra.mxu0 %v1265_v40  ;;  %752 = vmatprep.subr.bf16.mxu1 %v1266_v41 }
  0xa6   : > { %805 = vmatprep.subr.bf16.mxu0 %v1268_v42 }
  0xa8   : > { %753 = vmatpush1.bf16.msra.mxu1 %v1270_v43  ;;  %v299_v43 = vld [vmem:[#allocation2 + $0x38] sm:$0xff] }
  0xa9   : > { %806 = vmatpush1.bf16.msra.mxu0 %v1271_v44  ;;  %754 = vmatprep.subr.bf16.mxu1 %v1272_v45 }
  0xaa   : > { %807 = vmatprep.subr.bf16.mxu0 %v1274_v46 }
  0xac   : > { %755 = vmatpush1.bf16.msra.mxu1 %v1276_v47 }
  0xad   : > { %808 = vmatpush1.bf16.msra.mxu0 %v1277_v48  ;;  %756 = vmatprep.subr.bf16.mxu1 %v1278_v49  ;;  %v868_v49 = vlaneseq (!%p1104_p6) }
  0xae   : > { %809 = vmatprep.subr.bf16.mxu0 %v1280_v51  ;;  %v866_v51 = vld [vmem:[#allocation8] sm:$0x3] (!%p1104_p6) }
  0xaf   : > { %v869_v50 = vshrl.u32 (!%p1104_p6), %v868_v49, 7 }
  0xb0   : > { %757 = vmatpush1.bf16.msra.mxu1 %v1282_v53 }
  0xb1   : > { %810 = vmatpush1.bf16.msra.mxu0 %v1283_v54  ;;  %758 = vmatprep.subr.bf16.mxu1 %v1284_v55  ;;  %v870_v53 = vsub.s32 (!%p1104_p6), 0, %v869_v50  ;;  %v874_v55 = vsub.s32 (!%p1104_p6), 1, %v869_v50 }
  0xb2   : > { %811 = vmatprep.subr.bf16.mxu0 %v1286_v56 }
  0xb4   : > { %759 = vmatpush1.bf16.msra.mxu1 %v1288_v57 }
  0xb5   : > { %812 = vmatpush1.bf16.msra.mxu0 %v1289_v58  ;;  %760 = vmatprep.subr.bf16.mxu1 %v1290_v59  ;;  %v871_v59 = vrot.slane (!%p1104_p6), %v866_v51, %v870_v53 }
  0xb6   : > { %813 = vmatprep.subr.bf16.mxu0 %v1292_v60  ;;  %v875_v60 = vrot.slane (!%p1104_p6), %v866_v51, %v874_v55 }
  0xb8   : > { %761 = vmatpush1.bf16.msra.mxu1 %v1294_v61 }
  0xb9   : > { %814 = vmatpush1.bf16.msra.mxu0 %v1295_v62  ;;  %762 = vmatprep.subr.bf16.mxu1 %v1296_v63 }
  0xba   : > { %815 = vmatprep.subr.bf16.mxu0 %v1298_v0 }
  0xbc   : > { %763 = vmatpush1.bf16.msra.mxu1 %v1300_v1 }
  0xbd   : > { %816 = vmatpush1.bf16.msra.mxu0 %v1301_v2 }
  0xbf   : > { %765 = vmatmul.mubr.bf16.vlgmr.msra.gmra.mrb[0].mxu1 %v1302_v3 }
  0xc0   : > { %818 = vmatmul.mubr.bf16.vlgmr.msra.gmra.mrb[0].mxu0 %v1305_v4  ;;  %774 = vmatprep.mubr.bf16.mxu1 %v1308_v5 }
  0xc1   : > { %827 = vmatprep.mubr.bf16.mxu0 %v1310_v6 }
  0xc7   : > { %775 = vmatmul.mubr.bf16.gmra.mrb[4].mxu1 %v1312_v7 }
  0xc8   : > { %828 = vmatmul.mubr.bf16.gmra.mrb[4].mxu0 %v1313_v8 }
 0x192   : > { %v766_v9 = vpop.f32.mrb[0].mxu1 }
 0x193   : > { %v819_v11 = vpop.f32.mrb[0].mxu0  ;;  %v768_v13 = vpop.f32.mrb[1].mxu1 }
 0x194   : > { %v820_v12 = vadd.f32 %v819_v11, %v766_v9  ;;  %v821_v15 = vpop.f32.mrb[1].mxu0  ;;  %v770_v17 = vpop.f32.mrb[2].mxu1 }
 0x195   : > { %v822_v16 = vadd.f32 %v821_v15, %v768_v13  ;;  %v823_v19 = vpop.f32.mrb[2].mxu0  ;;  %v772_v22 = vpop.f32.mrb[3].mxu1 }
 0x196   : > { %v838_v20 = vadd.f32 %v820_v12, %v292_v10  ;;  %v824_v21 = vadd.f32 %v823_v19, %v770_v17  ;;  %v825_v24 = vpop.f32.mrb[3].mxu0 }
 0x197   : > { %v839_v25 = vadd.f32 %v822_v16, %v293_v14  ;;  %v826_v26 = vadd.f32 %v825_v24, %v772_v22 }
 0x198   : > { %846 = vst [vmem:[#allocation2] sm:$0xff] %v838_v20  ;;  %v840_v27 = vadd.f32 %v824_v21, %v294_v18 }
 0x199   : > { %847 = vst [vmem:[#allocation2 + $0x8] sm:$0xff] %v839_v25  ;;  %v841_v28 = vadd.f32 %v826_v26, %v295_v23 }
 0x19a   : > { %848 = vst [vmem:[#allocation2 + $0x10] sm:$0xff] %v840_v27  ;;  %v776_v29 = vpop.f32.mrb[4].mxu1 }
 0x19b   : > { %849 = vst [vmem:[#allocation2 + $0x18] sm:$0xff] %v841_v28  ;;  %v829_v31 = vpop.f32.mrb[4].mxu0  ;;  %v778_v33 = vpop.f32.mrb[5].mxu1 }
 0x19c   : > { %v830_v32 = vadd.f32 %v829_v31, %v776_v29  ;;  %v831_v35 = vpop.f32.mrb[5].mxu0  ;;  %v780_v37 = vpop.f32.mrb[6].mxu1 }
 0x19d   : > { %v832_v36 = vadd.f32 %v831_v35, %v778_v33  ;;  %v833_v39 = vpop.f32.mrb[6].mxu0  ;;  %v782_v42 = vpop.f32.mrb[7].mxu1  ;;  %857 = sbr.rel (%p1104_p6) target bundleno = 430 (0x1ae), region = 52 }
 0x19e   : > { %v842_v40 = vadd.f32 %v830_v32, %v296_v30  ;;  %v834_v41 = vadd.f32 %v833_v39, %v780_v37  ;;  %v835_v44 = vpop.f32.mrb[7].mxu0 }
 0x19f   : > { %v843_v45 = vadd.f32 %v832_v36, %v297_v34  ;;  %v836_v46 = vadd.f32 %v835_v44, %v782_v42  ;;  %v858_v52 = vld [vmem:[#allocation2] sm:$0xff] (!%p1104_p6) }
 0x1a0   : > { %850 = vst [vmem:[#allocation2 + $0x20] sm:$0xff] %v842_v40  ;;  %v844_v47 = vadd.f32 %v834_v41, %v298_v38  ;;  %v859_v54 = vld [vmem:[#allocation2 + $0x8] sm:$0xff] (!%p1104_p6)  ;;  %v878_v0 = vadd.f32 (!%p1104_p6), %v871_v59, %v858_v52 }
 0x1a1   : > { %851 = vst [vmem:[#allocation2 + $0x28] sm:$0xff] %v843_v45  ;;  %v845_v48 = vadd.f32 %v836_v46, %v299_v43  ;;  %v860_v56 = vld [vmem:[#allocation2 + $0x10] sm:$0xff] (!%p1104_p6)  ;;  %v879_v1 = vadd.f32 (!%p1104_p6), %v875_v60, %v859_v54 }
 0x1a2   : > { %852 = vst [vmem:[#allocation2 + $0x30] sm:$0xff] %v844_v47  ;;  %v861_v57 = vld [vmem:[#allocation2 + $0x18] sm:$0xff] (!%p1104_p6)  ;;  %v880_v2 = vadd.f32 (!%p1104_p6), %v871_v59, %v860_v56  ;;  %886 = vst [vmem:[#allocation9] sm:$0xff] (!%p1104_p6), %v878_v0 }
 0x1a3   : > { %853 = vst [vmem:[#allocation2 + $0x38] sm:$0xff] %v845_v48  ;;  %v881_v3 = vadd.f32 (!%p1104_p6), %v875_v60, %v861_v57  ;;  %887 = vst [vmem:[#allocation9 + $0x8] sm:$0xff] (!%p1104_p6), %v879_v1 }
 0x1a4   : > { %888 = vst [vmem:[#allocation9 + $0x10] sm:$0xff] %v880_v2 }
 0x1a5   : > { %889 = vst [vmem:[#allocation9 + $0x18] sm:$0xff] %v881_v3 }
 0x1a7   : > { %v862_v58 = vld [vmem:[#allocation2 + $0x20] sm:$0xff] }
 0x1a8   : > { %v863_v61 = vld [vmem:[#allocation2 + $0x28] sm:$0xff]  ;;  %v882_v4 = vadd.f32 %v871_v59, %v862_v58 }
 0x1a9   : > { %v864_v62 = vld [vmem:[#allocation2 + $0x30] sm:$0xff]  ;;  %v883_v5 = vadd.f32 %v875_v60, %v863_v61 }
 0x1aa   : > { %v865_v63 = vld [vmem:[#allocation2 + $0x38] sm:$0xff]  ;;  %v884_v6 = vadd.f32 %v871_v59, %v864_v62  ;;  %890 = vst [vmem:[#allocation9 + $0x20] sm:$0xff] %v882_v4 }
 0x1ab   : > { %v885_v7 = vadd.f32 %v875_v60, %v865_v63  ;;  %891 = vst [vmem:[#allocation9 + $0x28] sm:$0xff] %v883_v5 }
 0x1ac   : > { %892 = vst [vmem:[#allocation9 + $0x30] sm:$0xff] %v884_v6 }
 0x1ad   : > { %893 = vst [vmem:[#allocation9 + $0x38] sm:$0xff] %v885_v7 }
 0x1ae PF: > { %p1146_p8 = scmp.eq.s32.totalorder %s1553_s18, 3  ;;  %s1501_s15 = smov [#allocation9]  }
 0x1af   : > { %s906_s20 = sshll.u32 %s1501_s15, 4  ;;  %s907_s20 = int_to_ptr.vmem [resolvable:$true] %s906_s20 }
 0x1b0   : > { %s1402_s21 = scalar_lea.vmem %s907_s20, 1024  ;;  %p1409_p0 = scmp.lt.s32.totalorder %s907_s20, %s907_s20 }
 0x1b1   : > { %p1403_p13 = scmp.ne.s32.totalorder %s907_s20, %s1402_s21  ;;  %p1410_p5 = scmp.lt.s32.totalorder %s1402_s21, %s1402_s21 }
 0x1b3   : > { %p1404_p1 = pnand %p1403_p13, %p1146_p8  ;;  %p1411_p7 = por %p1410_p5, %p1409_p0 }
 0x1b5   : > { %p1405_p2 = pneg %p1404_p1 }
 0x1b7   : > { %p1412_p9 = pnand %p1411_p7, %p1405_p2 }
 0x1b9   : > { %1415 = shalt.err (!%p1412_p9)
}
 0x1ba   : > { %s1416_s5 = scalar_lea.hbm %s1828_s3, 1024 }
 0x1bb   : > { %p1417_p12 = scmp.ne.s32.totalorder %s1828_s3, %s1416_s5  ;;  %p1422_p10 = scmp.lt.u32.totalorder %s1416_s5, %s1828_s3 }
 0x1bd   : > { %p1418_p4 = pnand %p1417_p12, %p1146_p8 }
 0x1bf   : > { %p1419_p11 = pneg %p1418_p4 }
 0x1c1   : > { %p1424_p3 = pnand %p1422_p10, %p1419_p11 }
 0x1c3   : > { %1427 = shalt.err (!%p1424_p3)
}
 0x1c4   : > { %s1502_s8 = smov 256   ;;  %s1503_s0 = smov 16  }
 0x1c5   : > { %1129 = dma.vmem_to_hbm [thread:$0]  (%p1146_p8), %s907_s20, 1024, %s1828_s3, [#allocation5], %s1502_s8, %s1502_s8, %s1503_s0  }
 0x1c6   : > { %1465 = dma.done.wait (%p1146_p8), [#allocation5], 1024  }
 0x1c7   : > { %1467 = vsyncadd (%p1146_p8), [#allocation5], 4294966272 }
 0x1c8 PF: > { %s20_s17 = sadd.s32 1, %s1490_s17   ;;  %s1844_s12 = smov %s1474_s13 }
 0x1c9   : > { %p17_p6 = scmp.ge.s32.totalorder %s20_s17, 6   ;;  %s1845_s13 = smov %s1478_s14 }
 0x1ca   : > { %s1846_s14 = smov %s1623_s4  ;;  %s1847_s15 = smov %s1486_s16 }
 0x1cb   : > { %s1848_s16 = smov %s1850_s10  ;;  %19 = sbr.rel (!%p17_p6) target bundleno = 9 (0x9), region = 96 }
 0x1d2   :  { %922 = vsyncpa [#allocation4], 1 }
 0x1d3   :  { %924 = vsyncpa [#allocation4 + $0x1], 1 }
 0x1d4   :  { %925 = vsyncpa [#allocation7], 1 }
 0x1d5   :  { %927 = vsyncpa [#allocation7 + $0x1], 1 }
 0x1d6   :  { %928 = vsyncpa [#allocation5], 1 }
 0x1d7   :  { %930 = vsyncpa [#allocation5 + $0x1], 1 }

// kernel: discriminator_forward.14
= control target key start
LH: loop header
LB: loop body
LE: loop exit
PB: predicated region body
PF: predicated region fallthrough
CT: control target
= control target key end

     0   :  { %s463_s6 = smov 0   ;;  %s465_s7 = smov 0   ;;  %s565_s0 = inlined_call_operand.vmem [shape: f32[2,9,512], index: 0, kind: input, shape index: {}]   ;;  %s566_s1 = inlined_call_operand.vmem [shape: f32[2,9,512], index: 1, kind: output, shape index: {}]  }
   0x1   :  { %s467_s8 = smov 0   ;;  %s469_s9 = smov 0  }
   0x2   :  { %s471_s10 = smov 0   ;;  %s473_s11 = smov 0  }
   0x3   :  { %s475_s12 = smov 0  }
   0x4 LB: > { %s20_s13 = sadd.s32 1, %s443_s10  ;;  %s23_s14 = sadd.s32 1, %s447_s11  ;;  %s451_s12 = sphi %s475_s12, %s11_s12   ;;  %s447_s11 = sphi %s473_s11, %s573_s11   ;;  %s443_s10 = sphi %s471_s10, %s572_s10   ;;  %s439_s9 = sphi %s469_s9, %s571_s9   ;;  %s435_s8 = sphi %s467_s8, %s570_s8   ;;  %s431_s7 = sphi %s465_s7, %s569_s7   ;;  %s427_s6 = sphi %s463_s6, %s568_s6  }
   0x5   : > { %p21_p0 = scmp.ge.s32.totalorder %s20_s13, 4  ;;  %s324_s15 = sadd.s32 4294967295, %s451_s12  }
   0x6   : > { %p39_p1 = scmp.ne.s32.totalorder %s431_s7, %s427_s6  ;;  %p40_p2 = scmp.eq.s32.totalorder %s451_s12, 0 }
   0x7   : > { %s575_s13 = smov (%p21_p0, %s20_s13), 0  ;;  %s577_s14 = smov (!%p21_p0, %s23_s14), %s447_s11 }
   0x8   : > { %p25_p3 = scmp.ge.s32.totalorder %s577_s14, 2  ;;  %p71_p4 = scmp.eq.s32.totalorder %s324_s15, 7 }
   0x9   : > { %s28_s16 = ssub.s32 %s443_s10, %s575_s13  ;;  %p41_p5 = por %p40_p2, %p39_p1 }
   0xa   : > { %s579_s14 = smov (%p25_p3, %s577_s14), 0  ;;  %p511_p6 = por %p71_p4, %p39_p1 }
   0xb   : > { %s27_s18 = ssub.s32 %s447_s11, %s579_s14  ;;  %s32_s20 = sadd.s32 1, %s431_s7 }
   0xc   : > { %s29_s19 = sor.u32 %s28_s16, %s27_s18  ;;  %p327_p8 = scmp.ge.s32.totalorder %s451_s12, 8 }
   0xd   : > { %p30_p7 = scmp.eq.s32.totalorder %s29_s19, 0 }
   0xe   : > { %93 = sbr.rel (%p327_p8) target bundleno = 29 (0x1d), region = 16 }
   0xf   : > { %s519_s21 = scalar_select %p30_p7, %s431_s7, %s32_s20  }
  0x15   : > { %96 = sbr.rel (!%p41_p5) target bundleno = 29 (0x1d), region = 20  ;;  %s98_s22 = sand.u32 (%p41_p5), 1, %s431_s7  }
  0x16   : > { %s329_s23 = sshll.u32 (%p41_p5), %s447_s11, 3  ;;  %s328_s24 = sshll.u32 (%p41_p5), %s98_s22, 4 }
  0x17   : > { %s102_s25 = sadd.s32 (%p41_p5), %s443_s10, %s329_s23  ;;  %s100_s30 = scalar_lea.vmem (%p41_p5), [#allocation2], %s328_s24 }
  0x18   : > { %s330_s26 = sshll.u32 (%p41_p5), %s102_s25, 3 }
  0x19   : > { %s104_s29 = scalar_lea.vmem (%p41_p5), %s565_s0, %s330_s26 }
  0x1a   : > { %v134_v0 = vld [vmem:[%s104_s29] sm:$0xff] (%p41_p5) }
  0x1b   : > { %v136_v1 = vld [vmem:[%s104_s29 + $0x20] sm:$0xff] (%p41_p5)  ;;  %135 = vst [vmem:[%s100_s30] sm:$0xff] (%p41_p5), %v134_v0 }
  0x1c   : > { %137 = vst [vmem:[%s100_s30 + $0x8] sm:$0xff] %v136_v1 }
  0x1d PF: > { %p331_p9 = scmp.ge.s32.totalorder %s451_s12, 1  ;;  %p142_p10 = scmp.lt.s32.totalorder %s451_s12, 9 }
  0x1f   : > { %p143_p11 = pnand %p331_p9, %p142_p10 }
  0x20   : > { %s149_s2 = sand.u32 (!%p143_p11), 1, %s427_s6   ;;  %vm169_vm0 = vcmask (!%p143_p11), 1040384  }
  0x21   : > { %146 = sbr.rel (%p143_p11) target bundleno = 101 (0x65), region = 58  ;;  %s531_s3 = sshll.u32 (!%p143_p11), %s149_s2, 4 }
  0x22   : > { %s151_s4 = scalar_lea.vmem (!%p143_p11), [#allocation2], %s531_s3  ;;  %s166_s5 = scalar_lea.vmem (!%p143_p11), [#allocation3], %s531_s3 }
  0x23   : > { %v167_v2 = vld [vmem:[%s151_s4] sm:$0xff] (!%p143_p11)  ;;  %v168_v3 = vld [vmem:[%s151_s4 + $0x8] sm:$0x1] (!%p143_p11) }
  0x24   : > { %v170_v4 = vsel (!%p143_p11), %vm169_vm0, %v168_v3, 0.0 }
  0x25   : > { %v171_v5 = vadd.f32 (!%p143_p11), %v170_v4, %v167_v2 }
  0x27   : > { %v172_v6 = vrot.slane (!%p143_p11), %v171_v5, 4 }
  0x28   : > { %s335_s6 = sshll.u32 (%p511_p6), %s439_s9, 3 }
  0x29   : > { %v173_v7 = vadd.f32 %v172_v6, %v171_v5  ;;  %s213_s15 = sadd.s32 (%p511_p6), %s435_s8, %s335_s6 }
  0x2a   : > { %s336_s16 = sshll.u32 (%p511_p6), %s213_s15, 3 }
  0x2b   : > { %v174_v8 = vrot.slane %v173_v7, 2  ;;  %s215_s20 = scalar_lea.vmem (%p511_p6), %s566_s1, %s336_s16 }
  0x2d   : > { %v175_v9 = vadd.f32 %v174_v8, %v173_v7 }
  0x2f   : > { %v176_v10 = vrot.slane %v175_v9, 1 }
  0x31   : > { %v177_v11 = vadd.f32 %v176_v10, %v175_v9 }
  0x33   : > { %v179_v12 = vmul.f32 0.11111111, %v177_v11 }
  0x35   : > { %v180_v13 = vsub.f32 %v167_v2, %v179_v12  ;;  %v181_v14 = vsub.f32 %v168_v3, %v179_v12 }
  0x37   : > { %v182_v15 = vmul.f32 %v180_v13, %v180_v13  ;;  %v183_v16 = vmul.f32 %v181_v14, %v181_v14 }
  0x39   : > { %v184_v17 = vsel %vm169_vm0, %v183_v16, 0.0 }
  0x3a   : > { %v185_v18 = vadd.f32 %v184_v17, %v182_v15 }
  0x3c   : > { %v186_v19 = vrot.slane %v185_v18, 4 }
  0x3e   : > { %v187_v20 = vadd.f32 %v186_v19, %v185_v18 }
  0x40   : > { %v188_v21 = vrot.slane %v187_v20, 2 }
  0x42   : > { %v189_v22 = vadd.f32 %v188_v21, %v187_v20 }
  0x44   : > { %v190_v23 = vrot.slane %v189_v22, 1 }
  0x46   : > { %v191_v24 = vadd.f32 %v190_v23, %v189_v22 }
  0x48   : > { %v192_v25 = vmul.f32 0.11111111, %v191_v24 }
  0x4a   : > { %v193_v26 = vadd.f32 1e-05, %v192_v25 }
  0x4c   : > { %395 = vrsqrt.f32 %v193_v26 }
  0x56   : > { %v396_v27 = vpop.eup %395  ;;  %211 = sbr.rel (!%p511_p6) target bundleno = 101 (0x65), region = 66 }
  0x57   : > { %v195_v28 = vmul.f32 %v396_v27, %v180_v13  ;;  %v196_v29 = vmul.f32 %v396_v27, %v181_v14 }
  0x59   : > { %vm197_vm1 = vcmp.ge.f32.partialorder %v195_v28, 0.0  ;;  %v199_v30 = vmul.f32 0.2, %v195_v28  ;;  %vm198_vm2 = vcmp.ge.f32.partialorder %v196_v29, 0.0  ;;  %v200_v31 = vmul.f32 0.2, %v196_v29 }
  0x5b   : > { %v201_v32 = vsel %vm197_vm1, %v195_v28, %v199_v30  ;;  %v202_v33 = vsel %vm198_vm2, %v196_v29, %v200_v31 }
  0x5c   : > { %203 = vst [vmem:[%s166_s5] sm:$0xff] %v201_v32  ;;  %204 = vst [vmem:[%s166_s5 + $0x8] sm:$0x1] %v202_v33 }
  0x63   : > { %v245_v34 = vld [vmem:[%s166_s5] sm:$0xff]  ;;  %v247_v35 = vld [vmem:[%s166_s5 + $0x8] sm:$0xff] }
  0x64   : > { %246 = vst [vmem:[%s215_s20] sm:$0xff] %v245_v34  ;;  %248 = vst [vmem:[%s215_s20 + $0x20] sm:$0xff] %v247_v35 }
  0x65 PF: > { %s11_s12 = sadd.s32 1, %s451_s12   ;;  %s568_s6 = smov %s431_s7 }
  0x66   : > { %p8_p12 = scmp.ge.s32.totalorder %s11_s12, 10   ;;  %s569_s7 = smov %s519_s21 }
  0x67   : > { %s570_s8 = smov %s443_s10  ;;  %s571_s9 = smov %s447_s11 }
  0x68   : > { %s572_s10 = smov %s575_s13  ;;  %s573_s11 = smov %s579_s14 }
  0x69   :  { %10 = sbr.rel (!%p8_p12) target bundleno = 4 (0x4), region = 135 }

// kernel: discriminator_forward.13
= control target key start
LH: loop header
LB: loop body
LE: loop exit
PB: predicated region body
PF: predicated region fallthrough
CT: control target
= control target key end

     0   :  { %s2173_s0 = inlined_call_operand.hbm [shape: bf16[24,4096], index: 0, kind: input, shape index: {}]   ;;  %s2174_s1 = inlined_call_operand.hbm [shape: bf16[4096,512], index: 1, kind: input, shape index: {}]   ;;  %s2175_s2 = inlined_call_operand.hbm [shape: f32[1,512], index: 2, kind: input, shape index: {}]   ;;  %s2176_s3 = inlined_call_operand.hbm [shape: f32[24,512], index: 3, kind: output, shape index: {}]  }
   0x1   :  { %2189 = sst [smem:[#allocation20_spill]] %s2173_s0 }
   0x2   :  { %2190 = sst [smem:[#allocation21_spill]] %s2174_s1 }
   0x3   :  { %2191 = sst [smem:[#allocation22_spill]] %s2175_s2 }
   0x4   :  { %2192 = sst [smem:[#allocation23_spill]] %s2176_s3 }
   0x5   :  { %8 = vsyncpa [#allocation4], 0 }
   0x6   :  { %10 = vsyncpa [#allocation4 + $0x1], 0 }
   0x7   :  { %11 = vsyncpa [#allocation7], 0 }
   0x8   :  { %13 = vsyncpa [#allocation7 + $0x1], 0 }
   0x9   :  { %14 = vsyncpa [#allocation5], 0 }
   0xa   :  { %16 = vsyncpa [#allocation5 + $0x1], 0  ;;  %s1682_s12 = smov 0   ;;  %s1684_s13 = smov 0  }
   0xb   :  { %s1686_s14 = smov 0   ;;  %s1688_s15 = smov 0  }
   0xc   :  { %s1690_s16 = smov 0   ;;  %s1692_s17 = smov 0  }
   0xd   :  { %s1694_s18 = smov 0   ;;  %s1696_s19 = smov 0  }
   0xe   :  { %s1698_s20 = smov 0   ;;  %s1700_s21 = smov 0  }
   0xf   :  { %s1702_s22 = smov 0   ;;  %s1704_s23 = smov 0  }
  0x10   :  { %s1706_s24 = smov 0   ;;  %s1708_s25 = smov 0  }
  0x11 LB: > { %2193 = sst [smem:[#allocation14_spill]] %s1595_s12  ;;  %s34_s26 = sadd.s32 1, %s1639_s23  ;;  %s1647_s25 = sphi %s1708_s25, %s22_s25   ;;  %s1643_s24 = sphi %s1706_s24, %s2235_s24   ;;  %s1639_s23 = sphi %s1704_s23, %s2246_s23   ;;  %s1635_s22 = sphi %s1702_s22, %s2233_s22   ;;  %s1631_s21 = sphi %s1700_s21, %s2245_s21   ;;  %s1627_s20 = sphi %s1698_s20, %s2244_s20   ;;  %s1623_s19 = sphi %s1696_s19, %s2243_s19   ;;  %s1619_s18 = sphi %s1694_s18, %s2242_s18   ;;  %s1615_s17 = sphi %s1692_s17, %s2241_s17   ;;  %s1611_s16 = sphi %s1690_s16, %s2240_s16   ;;  %s1607_s15 = sphi %s1688_s15, %s2239_s15   ;;  %s1603_s14 = sphi %s1686_s14, %s2238_s14   ;;  %s1599_s13 = sphi %s1684_s13, %s2237_s13   ;;  %s1595_s12 = sphi %s1682_s12, %s2236_s12  }
  0x12   : > { %2194 = sst [smem:[#allocation15_spill]] %s1631_s21  ;;  %s37_s27 = sadd.s32 1, %s1643_s24 }
  0x13   : > { %2195 = sst [smem:[#allocation16_spill]] %s1635_s22  ;;  %p35_p0 = scmp.ge.s32.totalorder %s34_s26, 8 }
  0x14   : > { %2196 = sst [smem:[#allocation17_spill]] %s1643_s24  ;;  %p2182_p1 = scmp.eq.s32.totalorder %s1647_s25, 0 }
  0x15   : > { %s78_s28 = sadd.s32 1, %s1615_s17  ;;  %p85_p2 = scmp.ne.s32.totalorder %s1615_s17, %s1611_s16 }
  0x16   : > { %s2248_s26 = smov (%p35_p0, %s34_s26), 0  ;;  %s2250_s27 = smov (!%p35_p0, %s37_s27), %s1643_s24 }
  0x17   : > { %2197 = sst [smem:[#allocation18_spill]] %s2248_s26  ;;  %s1763_s29 = ssub.s32 %s1639_s23, %s2248_s26 }
  0x18   : > { %p1767_p3 = por %p85_p2, %p2182_p1  ;;  %p39_p4 = scmp.ge.s32.totalorder %s2250_s27, 2 }
  0x19   : > { %p2181_p7 = scmp.lt.s32.totalorder %s1647_s25, 16  ;;  %s1141_s4 = sshll.u32 %s1639_s23, 8 }
  0x1a   : > { %s2252_s27 = smov (%p39_p4, %s2250_s27), 0  ;;  %s193_s7 = sand.u32 1, %s1647_s25  }
  0x1b   : > { %2199 = sst [smem:[#allocation19_spill]] %s2252_s27  ;;  %s1780_s5 = ssub.s32 %s1643_s24, %s2252_s27 }
  0x1c   : > { %s75_s6 = sor.u32 %s1780_s5, %s1763_s29  ;;  %s195_s8 = sand.u32 1, %s1615_s17  }
  0x1d   : > { %p76_p8 = scmp.eq.s32.totalorder %s75_s6, 0  ;;  %s1054_s9 = sshll.u32 %s1643_s24, 1 }
  0x1e   : > { %s1052_s11 = sshll.u32 %s195_s8, 9  ;;  %s204_s26 = sadd.s32 %s1141_s4, %s1054_s9 }
  0x1f   : > { %s1788_s10 = scalar_select %p76_p8, %s1615_s17, %s78_s28  }
  0x20   : > { %s1056_s3 = sshll.u32 %s204_s26, 6  ;;  %s2200_s1 = sld [smem:[#allocation21_spill]] }
  0x21   : > { %s197_s27 = scalar_lea.vmem [#allocation6], %s1052_s11  ;;  %p1803_p9 = pnand %p2181_p7, %p1767_p3 }
  0x22   : > { %s207_s12 = sshll.u32 %s197_s27, 4  ;;  %p1060_p10 = scmp.ge.s32.totalorder %s1647_s25, 1  ;;  %s1797_s12 = int_to_ptr.vmem [resolvable:$true] %s207_s12 }
  0x23   : > { %s1808_s21 = scalar_lea.sflag [#allocation7], %s193_s7  ;;  %p1405_p12 = pneg %p1803_p9 }
  0x26   : > { %s1795_s2 = scalar_lea.hbm %s2200_s1, %s1056_s3  ;;  %s1408_s27 = scalar_lea.hbm %s2200_s1, 131072 }
  0x27   : > { %s1403_s3 = scalar_lea.hbm %s1795_s2, 8192  ;;  %p1409_p2 = scmp.lt.u32.totalorder %s1795_s2, %s2200_s1 }
  0x28   : > { %p1404_p11 = scmp.ne.s32.totalorder %s1795_s2, %s1403_s3  ;;  %p1410_p3 = scmp.lt.u32.totalorder %s1408_s27, %s1403_s3 }
  0x29   : > { %p1412_p8 = scmp.lt.u32.totalorder %s1403_s3, %s1795_s2 }
  0x2a   : > { %p1406_p13 = pnand %p1405_p12, %p1404_p11  ;;  %p1411_p4 = por %p1410_p3, %p1409_p2 }
  0x2c   : > { %p1407_p0 = pneg %p1406_p13  ;;  %p1413_p6 = por %p1412_p8, %p1411_p4 }
  0x2e   : > { %p1414_p7 = pnand %p1413_p6, %p1407_p0 }
  0x30   : > { %1417 = shalt.err (!%p1414_p7)
}
  0x31   : > { %s1418_s7 = scalar_lea.vmem %s1797_s12, 8192  ;;  %s1649_s8 = smov [#allocation6]  }
  0x32   : > { %p1419_p11 = scmp.ne.s32.totalorder %s1797_s12, %s1418_s7  ;;  %s1423_s9 = sshll.u32 %s1649_s8, 4  ;;  %s1424_s9 = int_to_ptr.vmem [resolvable:$false] %s1423_s9 }
  0x33   : > { %s1425_s11 = scalar_lea.vmem %s1424_s9, 16384  ;;  %p1426_p5 = scmp.lt.s32.totalorder %s1797_s12, %s1424_s9 }
  0x34   : > { %p1421_p13 = pnand %p1419_p11, %p1405_p12  ;;  %p1427_p2 = scmp.lt.s32.totalorder %s1425_s11, %s1418_s7 }
  0x36   : > { %p1422_p1 = pneg %p1421_p13  ;;  %p1428_p3 = por %p1427_p2, %p1426_p5 }
  0x38   : > { %p1429_p4 = pnand %p1428_p3, %p1422_p1 }
  0x3a   : > { %1432 = shalt.err (!%p1429_p4)
}
  0x3b   : > { %s2183_s3 = smov 256   ;;  %s1651_s22 = smov 128  }
  0x3c   : > { %s1652_s26 = smov 8   ;;  %p234_p1 = scmp.lt.s32.totalorder %s1647_s25, 17 }
  0x3d   : > { %1166 = dma.hbm_to_vmem [thread:$0]  (!%p1803_p9), %s1795_s2, 8192, %s1797_s12, %s1808_s21, %s2183_s3, %s1651_s22, %s1652_s26  }
  0x3e   : > { %p1840_p5 = pnand %p1060_p10, %p234_p1  ;;  %s50_s30 = sadd.s32 1, %s1627_s20 }
  0x3f   : > { %p57_p6 = scmp.ne.s32.totalorder %s1627_s20, %s1623_s19  ;;  %p2203_p7 = scmp.eq.s32.totalorder %s1763_s29, 0 }
  0x40   : > { %s2202_s27 = scalar_select %p1840_p5, 1, 0 }
  0x41   : > { %s1850_s6 = scalar_select %p2203_p7, %s1627_s20, %s50_s30  }
  0x42   : > { %p2204_p12 = scmp.eq.s32.totalorder %s1647_s25, 0  ;;  %s169_s7 = sand.u32 1, %s1627_s20  }
  0x43   : > { %s2205_s0 = sld [smem:[#allocation20_spill]]  ;;  %s1149_s12 = smul.u32 48, %s169_s7 }
  0x44   : > { %p59_p0 = por %p2204_p12, %p57_p6  ;;  %p2206_p9 = scmp.lt.s32.totalorder %s1647_s25, 16 }
  0x45   : > { %s173_s9 = scalar_lea.vmem [#allocation3], %s1149_s12  ;;  %s1872_s22 = scalar_lea.sflag [#allocation4], %s169_s7 }
  0x46   : > { %p1866_p10 = pnand %p2206_p9, %p59_p0  ;;  %s183_s11 = sshll.u32 %s173_s9, 4  ;;  %s1870_s11 = int_to_ptr.vmem [resolvable:$true] %s183_s11 }
  0x48   : > { %p1435_p13 = pneg %p1866_p10 }
  0x49   : > { %s1862_s2 = scalar_lea.hbm %s2205_s0, %s1141_s4  ;;  %s1438_s8 = scalar_lea.hbm %s2205_s0, 6144 }
  0x4a   : > { %s1433_s4 = scalar_lea.hbm %s1862_s2, 768  ;;  %p1439_p4 = scmp.lt.u32.totalorder %s1862_s2, %s2205_s0 }
  0x4b   : > { %p1434_p11 = scmp.ne.s32.totalorder %s1862_s2, %s1433_s4  ;;  %p1440_p1 = scmp.lt.u32.totalorder %s1438_s8, %s1433_s4 }
  0x4c   : > { %p1442_p7 = scmp.lt.u32.totalorder %s1433_s4, %s1862_s2 }
  0x4d   : > { %p1436_p2 = pnand %p1435_p13, %p1434_p11  ;;  %p1441_p6 = por %p1440_p1, %p1439_p4 }
  0x4f   : > { %p1437_p3 = pneg %p1436_p2  ;;  %p1443_p12 = por %p1442_p7, %p1441_p6 }
  0x51   : > { %p1444_p0 = pnand %p1443_p12, %p1437_p3 }
  0x53   : > { %1447 = shalt.err (!%p1444_p0)
}
  0x54   : > { %s1448_s7 = scalar_lea.vmem %s1870_s11, 768  ;;  %s1653_s12 = smov [#allocation3]  }
  0x55   : > { %p1449_p9 = scmp.ne.s32.totalorder %s1870_s11, %s1448_s7  ;;  %s1453_s9 = sshll.u32 %s1653_s12, 4  ;;  %s1454_s9 = int_to_ptr.vmem [resolvable:$false] %s1453_s9 }
  0x56   : > { %s1455_s3 = scalar_lea.vmem %s1454_s9, 1536  ;;  %p1456_p8 = scmp.lt.s32.totalorder %s1870_s11, %s1454_s9 }
  0x57   : > { %p1451_p11 = pnand %p1449_p9, %p1435_p13  ;;  %p1457_p4 = scmp.lt.s32.totalorder %s1455_s3, %s1448_s7 }
  0x59   : > { %p1452_p2 = pneg %p1451_p11  ;;  %p1458_p1 = por %p1457_p4, %p1456_p8 }
  0x5b   : > { %p1459_p6 = pnand %p1458_p1, %p1452_p2 }
  0x5d   : > { %1462 = shalt.err (!%p1459_p6)
}
  0x5e   : > { %s1654_s4 = smov 2048   ;;  %s2208_s26 = sld [smem:[#allocation14_spill]] }
  0x5f   : > { %s1655_s30 = smov 16   ;;  %s2209_s8 = smov 256  }
  0x60   : > { %1163 = dma.hbm_to_vmem [thread:$0]  (!%p1866_p10), %s1862_s2, 768, %s1870_s11, %s1872_s22, %s1654_s4, %s2209_s8, %s1655_s30  }
  0x61   : > { %s1902_s28 = sadd.s32 4294967295, %s1647_s25   ;;  %s1047_s7 = sadd.s32 4294967294, %s1647_s25  }
  0x62   : > { %p64_p8 = scmp.eq.s32.totalorder %s1902_s28, 0  ;;  %p102_p13 = scmp.eq.s32.totalorder %s1780_s5, 0 }
  0x63   : > { %s104_s12 = sadd.s32 1, %s1603_s14  ;;  %p2210_p3 = scmp.ne.s32.totalorder %s1623_s19, %s1619_s18 }
  0x64   : > { %p2212_p12 = scmp.ne.s32.totalorder %s1611_s16, %s1607_s15  ;;  %p111_p10 = scmp.ne.s32.totalorder %s1603_s14, %s1599_s13 }
  0x65   : > { %p1911_p7 = por %p64_p8, %p2210_p3  ;;  %p117_p9 = scmp.ne.s32.totalorder %s1599_s13, %s2208_s26 }
  0x66   : > { %p1918_p0 = por %p2212_p12, %p64_p8  ;;  %p143_p11 = scmp.eq.s32.totalorder %s1902_s28, 15 }
  0x67   : > { %s2211_s9 = scalar_select %p1911_p7, 1, 0 }
  0x68   : > { %s2213_s29 = scalar_select %p1918_p0, 1, 0 }
  0x69   : > { %s1923_s2 = scalar_select %p102_p13, %s1603_s14, %s104_s12  }
  0x6a   : > { %p149_p2 = scmp.eq.s32.totalorder %s1047_s7, 15  ;;  %p2214_p4 = scmp.eq.s32.totalorder %s1647_s25, 0 }
  0x6b   : > { %p1932_p6 = por %p117_p9, %p64_p8  ;;  %p1936_p3 = por %p143_p11, %p111_p10 }
  0x6c   : > { %p113_p1 = por %p111_p10, %p2214_p4  ;;  %p1940_p12 = por %p149_p2, %p117_p9 }
  0x6d   : > { %s2215_s18 = scalar_select %p1932_p6, 1, 0 }
  0x6e   : > { %s2216_s5 = scalar_select %p1936_p3, 1, 0 }
  0x6f   : > { %s2217_s15 = scalar_select %p1940_p12, 1, 0 }
  0x70   : > { %s219_s11 = sand.u32 1, %s1603_s14   ;;  %s1143_s22 = sshll.u32 %s1643_s24, 5 }
  0x71   : > { %s1057_s3 = sshll.u32 %s219_s11, 1  ;;  %s2218_s30 = sld [smem:[#allocation22_spill]] }
  0x72   : > { %p2219_p8 = scmp.lt.s32.totalorder %s1647_s25, 16  ;;  %s221_s12 = scalar_lea.vmem [#allocation8], %s1057_s3 }
  0x73   : > { %s229_s0 = sshll.u32 %s221_s12, 4  ;;  %s230_s0 = int_to_ptr.vmem [resolvable:$true] %s229_s0 }
  0x74   : > { %p1953_p13 = pnand %p2219_p8, %p113_p1 }
  0x76   : > { %p1465_p9 = pneg %p1953_p13 }
  0x77   : > { %s1949_s8 = scalar_lea.hbm %s2218_s30, %s1143_s22  ;;  %s1468_s26 = scalar_lea.hbm %s2218_s30, 64 }
  0x78   : > { %s1463_s11 = scalar_lea.hbm %s1949_s8, 32  ;;  %p1469_p4 = scmp.lt.u32.totalorder %s1949_s8, %s2218_s30 }
  0x79   : > { %p1464_p10 = scmp.ne.s32.totalorder %s1949_s8, %s1463_s11  ;;  %p1470_p1 = scmp.lt.u32.totalorder %s1468_s26, %s1463_s11 }
  0x7a   : > { %p1472_p12 = scmp.lt.u32.totalorder %s1463_s11, %s1949_s8 }
  0x7b   : > { %p1466_p11 = pnand %p1465_p9, %p1464_p10  ;;  %p1471_p8 = por %p1470_p1, %p1469_p4 }
  0x7d   : > { %p1467_p2 = pneg %p1466_p11  ;;  %p1473_p3 = por %p1472_p12, %p1471_p8 }
  0x7f   : > { %p1474_p6 = pnand %p1473_p3, %p1467_p2 }
  0x81   : > { %1477 = shalt.err (!%p1474_p6)
}
  0x82   : > { %s1478_s3 = scalar_lea.vmem %s230_s0, 32  ;;  %s1656_s12 = smov [#allocation8]  }
  0x83   : > { %p1479_p0 = scmp.ne.s32.totalorder %s230_s0, %s1478_s3  ;;  %s1483_s22 = sshll.u32 %s1656_s12, 4  ;;  %s1484_s22 = int_to_ptr.vmem [resolvable:$false] %s1483_s22 }
  0x84   : > { %s1485_s4 = scalar_lea.vmem %s1484_s22, 64  ;;  %p1486_p7 = scmp.lt.s32.totalorder %s230_s0, %s1484_s22 }
  0x85   : > { %p1481_p10 = pnand %p1479_p0, %p1465_p9  ;;  %p1487_p5 = scmp.lt.s32.totalorder %s1485_s4, %s1478_s3 }
  0x87   : > { %p1482_p11 = pneg %p1481_p10  ;;  %p1488_p1 = por %p1487_p5, %p1486_p7 }
  0x89   : > { %p1489_p4 = pnand %p1488_p1, %p1482_p11 }
  0x8b   : > { %1492 = shalt.err (!%p1489_p4)
}
  0x8c   : > { %1169 = dma.hbm_to_vmem [thread:$0]  (!%p1953_p13), %s1949_s8, 32, %s230_s0, %s1808_s21  }
  0x8d   : > { %p2221_p6 = scmp.ne.s32.totalorder %s2202_s27, 0 }
  0x8e   : > { %s240_s1 = sand.u32 (!%p2221_p6), 1, %s1623_s19   ;;  %p2222_p0 = scmp.ne.s32.totalorder (!%p2221_p6), %s2211_s9, 0 }
  0x8f   : > { %238 = sbr.rel (%p2221_p6) target bundleno = 506 (0x1fa), region = 32  ;;  %s241_s11 = scalar_lea.sflag (!%p2221_p6), [#allocation4], %s240_s1 }
  0x90   : > { %s1150_s24 = smul.u32 (!%p2221_p6), 48, %s240_s1 }
  0x92   : > { %s1982_s26 = scalar_lea.vmem (!%p2221_p6), [#allocation3], %s1150_s24 }
  0x96   : > { %1578 = dma.done.wait (%p2222_p0), %s241_s11, 768  }
  0x97   : > { %1580 = vsyncadd (%p2222_p0), %s241_s11, 4294966528  ;;  %s249_s7 = sand.u32 1, %s1902_s28   ;;  %s251_s0 = sand.u32 1, %s1611_s16  }
  0x98   : > { %s1061_s21 = sshll.u32 %s251_s0, 9  ;;  %s250_s27 = scalar_lea.sflag [#allocation7], %s249_s7 }
  0x99   : > { %s1990_s8 = scalar_lea.vmem [#allocation6], %s1061_s21  ;;  %p2223_p5 = scmp.ne.s32.totalorder %s2213_s29, 0 }
  0x9b   : > { %1582 = dma.done.wait (%p2223_p5), %s250_s27, 8192  }
  0x9c   : > { %1584 = vsyncadd (%p2223_p5), %s250_s27, 4294959104  ;;  %s1997_s3 = sand.u32 1, %s1599_s13   ;;  %p2224_p7 = scmp.ne.s32.totalorder %s2215_s18, 0 }
  0x9d   : > { %s1062_s9 = sshll.u32 %s1997_s3, 1 }
  0x9e   : > { %s2000_s12 = scalar_lea.vmem [#allocation8], %s1062_s9 }
  0x9f   : > { %1586 = dma.done.wait (%p2224_p7), %s250_s27, 32  }
  0xa0   : > { %1588 = vsyncadd (%p2224_p7), %s250_s27, 4294967264  ;;  %s1151_s28 = smul.u32 48, %s1997_s3  ;;  %s2225_s4 = sld [smem:[#allocation15_spill]] }
  0xa2   : > { %s2007_s22 = scalar_lea.vmem [#allocation9], %s1151_s28 }
  0xa6   : > { %p1063_p3 = scmp.ne.s32.totalorder %s2225_s4, 0 }
  0xa7   : > { %v1657_v0 = vmov (!%p1063_p3), 0.0  }
  0xa8   : > { %305 = sbr.rel (%p1063_p3) target bundleno = 175 (0xaf), region = 48  ;;  %306 = vst [vmem:[#allocation2] sm:$0xff] (!%p1063_p3), %v1657_v0  ;;  %307 = vst [vmem:[#allocation2 + $0x8] sm:$0xff] (!%p1063_p3), %v1657_v0 }
  0xa9   : > { %308 = vst [vmem:[#allocation2 + $0x10] sm:$0xff] (!%p1063_p3), %v1657_v0  ;;  %309 = vst [vmem:[#allocation2 + $0x18] sm:$0xff] (!%p1063_p3), %v1657_v0 }
  0xaa   : > { %310 = vst [vmem:[#allocation2 + $0x20] sm:$0xff] (!%p1063_p3), %v1657_v0  ;;  %311 = vst [vmem:[#allocation2 + $0x28] sm:$0xff] (!%p1063_p3), %v1657_v0 }
  0xaf PF: > { %v1297_v1 = vld [vmem:[%s1990_s8 + $0x4] ss:$8 sps:$4 sm:$0xff]   ;;  %v1301_v3 = vld [vmem:[%s1990_s8] ss:$8 sps:$4 sm:$0xff]   ;;  %v1303_v5 = vld [vmem:[%s1990_s8 + $0x14] ss:$8 sps:$4 sm:$0xff]  }
  0xb0   : > { %v1299_v2 = vld [vmem:[%s1990_s8 + $0x104] ss:$8 sps:$4 sm:$0xff]   ;;  %742 = vmatprep.subr.bf16.mxu1 %v1297_v1  ;;  %v1302_v4 = vld [vmem:[%s1990_s8 + $0x100] ss:$8 sps:$4 sm:$0xff]   ;;  %v1305_v6 = vld [vmem:[%s1990_s8 + $0x114] ss:$8 sps:$4 sm:$0xff]  }
  0xb1   : > { %793 = vmatprep.subr.bf16.mxu0 %v1299_v2  ;;  %743 = vmatpush1.bf16.msra.mxu1 %v1301_v3  ;;  %v1307_v7 = vld [vmem:[%s1990_s8 + $0x10] ss:$8 sps:$4 sm:$0xff]   ;;  %v1309_v9 = vld [vmem:[%s1990_s8 + $0x24] ss:$8 sps:$4 sm:$0xff]   ;;  %v1313_v11 = vld [vmem:[%s1990_s8 + $0x20] ss:$8 sps:$4 sm:$0xff]  }
  0xb2   : > { %794 = vmatpush1.bf16.msra.mxu0 %v1302_v4  ;;  %744 = vmatprep.subr.bf16.mxu1 %v1303_v5  ;;  %v1308_v8 = vld [vmem:[%s1990_s8 + $0x110] ss:$8 sps:$4 sm:$0xff]   ;;  %v1311_v10 = vld [vmem:[%s1990_s8 + $0x124] ss:$8 sps:$4 sm:$0xff]   ;;  %v1314_v12 = vld [vmem:[%s1990_s8 + $0x120] ss:$8 sps:$4 sm:$0xff]  }
  0xb3   : > { %795 = vmatprep.subr.bf16.mxu0 %v1305_v6  ;;  %v1315_v13 = vld [vmem:[%s1990_s8 + $0x34] ss:$8 sps:$4 sm:$0xff]   ;;  %v1319_v15 = vld [vmem:[%s1990_s8 + $0x30] ss:$8 sps:$4 sm:$0xff]   ;;  %v1321_v17 = vld [vmem:[%s1990_s8 + $0x44] ss:$8 sps:$4 sm:$0xff]  }
  0xb4   : > { %v1317_v14 = vld [vmem:[%s1990_s8 + $0x134] ss:$8 sps:$4 sm:$0xff]   ;;  %v1320_v16 = vld [vmem:[%s1990_s8 + $0x130] ss:$8 sps:$4 sm:$0xff]   ;;  %v1323_v18 = vld [vmem:[%s1990_s8 + $0x144] ss:$8 sps:$4 sm:$0xff]  }
  0xb5   : > { %745 = vmatpush1.bf16.msra.mxu1 %v1307_v7  ;;  %v1325_v19 = vld [vmem:[%s1990_s8 + $0x40] ss:$8 sps:$4 sm:$0xff]   ;;  %v1327_v21 = vld [vmem:[%s1990_s8 + $0x54] ss:$8 sps:$4 sm:$0xff]   ;;  %v1331_v23 = vld [vmem:[%s1990_s8 + $0x50] ss:$8 sps:$4 sm:$0xff]  }
  0xb6   : > { %796 = vmatpush1.bf16.msra.mxu0 %v1308_v8  ;;  %746 = vmatprep.subr.bf16.mxu1 %v1309_v9  ;;  %v1326_v20 = vld [vmem:[%s1990_s8 + $0x140] ss:$8 sps:$4 sm:$0xff]   ;;  %v1329_v22 = vld [vmem:[%s1990_s8 + $0x154] ss:$8 sps:$4 sm:$0xff]   ;;  %v1332_v24 = vld [vmem:[%s1990_s8 + $0x150] ss:$8 sps:$4 sm:$0xff]  }
  0xb7   : > { %797 = vmatprep.subr.bf16.mxu0 %v1311_v10  ;;  %v1333_v25 = vld [vmem:[%s1990_s8 + $0x64] ss:$8 sps:$4 sm:$0xff]   ;;  %v1337_v27 = vld [vmem:[%s1990_s8 + $0x60] ss:$8 sps:$4 sm:$0xff]   ;;  %v1339_v29 = vld [vmem:[%s1990_s8 + $0x74] ss:$8 sps:$4 sm:$0xff]  }
  0xb8   : > { %v1335_v26 = vld [vmem:[%s1990_s8 + $0x164] ss:$8 sps:$4 sm:$0xff]   ;;  %v1338_v28 = vld [vmem:[%s1990_s8 + $0x160] ss:$8 sps:$4 sm:$0xff]   ;;  %v1341_v30 = vld [vmem:[%s1990_s8 + $0x174] ss:$8 sps:$4 sm:$0xff]  }
  0xb9   : > { %747 = vmatpush1.bf16.msra.mxu1 %v1313_v11  ;;  %v1343_v31 = vld [vmem:[%s1990_s8 + $0x70] ss:$8 sps:$4 sm:$0xff]   ;;  %v1345_v33 = vld [vmem:[%s1990_s8 + $0x84] ss:$8 sps:$4 sm:$0xff]   ;;  %v1349_v35 = vld [vmem:[%s1990_s8 + $0x80] ss:$8 sps:$4 sm:$0xff]  }
  0xba   : > { %798 = vmatpush1.bf16.msra.mxu0 %v1314_v12  ;;  %748 = vmatprep.subr.bf16.mxu1 %v1315_v13  ;;  %v1344_v32 = vld [vmem:[%s1990_s8 + $0x170] ss:$8 sps:$4 sm:$0xff]   ;;  %v1347_v34 = vld [vmem:[%s1990_s8 + $0x184] ss:$8 sps:$4 sm:$0xff]   ;;  %v1350_v36 = vld [vmem:[%s1990_s8 + $0x180] ss:$8 sps:$4 sm:$0xff]  }
  0xbb   : > { %799 = vmatprep.subr.bf16.mxu0 %v1317_v14  ;;  %v1351_v37 = vld [vmem:[%s1990_s8 + $0x94] ss:$8 sps:$4 sm:$0xff]   ;;  %v1355_v39 = vld [vmem:[%s1990_s8 + $0x90] ss:$8 sps:$4 sm:$0xff]   ;;  %v1357_v41 = vld [vmem:[%s1990_s8 + $0xa4] ss:$8 sps:$4 sm:$0xff]  }
  0xbc   : > { %v1353_v38 = vld [vmem:[%s1990_s8 + $0x194] ss:$8 sps:$4 sm:$0xff]   ;;  %v1356_v40 = vld [vmem:[%s1990_s8 + $0x190] ss:$8 sps:$4 sm:$0xff]   ;;  %v1359_v42 = vld [vmem:[%s1990_s8 + $0x1a4] ss:$8 sps:$4 sm:$0xff]  }
  0xbd   : > { %749 = vmatpush1.bf16.msra.mxu1 %v1319_v15  ;;  %v1361_v43 = vld [vmem:[%s1990_s8 + $0xa0] ss:$8 sps:$4 sm:$0xff]   ;;  %v1363_v45 = vld [vmem:[%s1990_s8 + $0xb4] ss:$8 sps:$4 sm:$0xff]   ;;  %v1367_v47 = vld [vmem:[%s1990_s8 + $0xb0] ss:$8 sps:$4 sm:$0xff]  }
  0xbe   : > { %800 = vmatpush1.bf16.msra.mxu0 %v1320_v16  ;;  %750 = vmatprep.subr.bf16.mxu1 %v1321_v17  ;;  %v1362_v44 = vld [vmem:[%s1990_s8 + $0x1a0] ss:$8 sps:$4 sm:$0xff]   ;;  %v1365_v46 = vld [vmem:[%s1990_s8 + $0x1b4] ss:$8 sps:$4 sm:$0xff]   ;;  %v1368_v49 = vld [vmem:[%s1990_s8 + $0x1b0] ss:$8 sps:$4 sm:$0xff]  }
  0xbf   : > { %801 = vmatprep.subr.bf16.mxu0 %v1323_v18  ;;  %v1395_v48 = vld [vmem:[%s1982_s26 + $0x4] ss:$16 sps:$4 sm:$0xff]   ;;  %v1398_v52 = vld [vmem:[%s1982_s26 + $0xc] ss:$16 sps:$4 sm:$0xff]   ;;  %v1373_v53 = vld [vmem:[%s1990_s8 + $0xc0] ss:$8 sps:$4 sm:$0xff]  }
  0xc0   : > { %v1369_v50 = vld [vmem:[%s1990_s8 + $0xc4] ss:$8 sps:$4 sm:$0xff]   ;;  %774 = vmatprep.mubr.bf16.mxu1 %v1395_v48  ;;  %825 = vmatprep.mubr.bf16.mxu0 %v1398_v52  ;;  %v1374_v54 = vld [vmem:[%s1990_s8 + $0x1c0] ss:$8 sps:$4 sm:$0xff]   ;;  %v1375_v55 = vld [vmem:[%s1990_s8 + $0xd4] ss:$8 sps:$4 sm:$0xff]  }
  0xc1   : > { %751 = vmatpush1.bf16.msra.mxu1 %v1325_v19  ;;  %v1371_v51 = vld [vmem:[%s1990_s8 + $0x1c4] ss:$8 sps:$4 sm:$0xff]   ;;  %v1377_v56 = vld [vmem:[%s1990_s8 + $0x1d4] ss:$8 sps:$4 sm:$0xff]   ;;  %v1379_v57 = vld [vmem:[%s1990_s8 + $0xd0] ss:$8 sps:$4 sm:$0xff]  }
  0xc2   : > { %802 = vmatpush1.bf16.msra.mxu0 %v1326_v20  ;;  %752 = vmatprep.subr.bf16.mxu1 %v1327_v21  ;;  %v1380_v58 = vld [vmem:[%s1990_s8 + $0x1d0] ss:$8 sps:$4 sm:$0xff]   ;;  %v1381_v59 = vld [vmem:[%s1990_s8 + $0xe4] ss:$8 sps:$4 sm:$0xff]   ;;  %v1385_v61 = vld [vmem:[%s1990_s8 + $0xe0] ss:$8 sps:$4 sm:$0xff]  }
  0xc3   : > { %803 = vmatprep.subr.bf16.mxu0 %v1329_v22  ;;  %v1383_v60 = vld [vmem:[%s1990_s8 + $0x1e4] ss:$8 sps:$4 sm:$0xff]   ;;  %v1386_v62 = vld [vmem:[%s1990_s8 + $0x1e0] ss:$8 sps:$4 sm:$0xff]   ;;  %v1387_v63 = vld [vmem:[%s1990_s8 + $0xf4] ss:$8 sps:$4 sm:$0xff]  }
  0xc4   : > { %v1389_v0 = vld [vmem:[%s1990_s8 + $0x1f4] ss:$8 sps:$4 sm:$0xff]   ;;  %v1391_v1 = vld [vmem:[%s1990_s8 + $0xf0] ss:$8 sps:$4 sm:$0xff]   ;;  %v314_v20 = vld [vmem:[#allocation2 + $0x10] sm:$0xff]  ;;  %s2226_s29 = sld [smem:[#allocation15_spill]] }
  0xc5   : > { %753 = vmatpush1.bf16.msra.mxu1 %v1331_v23  ;;  %v1392_v2 = vld [vmem:[%s1990_s8 + $0x1f0] ss:$8 sps:$4 sm:$0xff]  }
  0xc6   : > { %804 = vmatpush1.bf16.msra.mxu0 %v1332_v24  ;;  %754 = vmatprep.subr.bf16.mxu1 %v1333_v25  ;;  %v322_v3 = vld [vmem:[%s1982_s26 + $0x20] sm:$0xff]  ;;  %v323_v4 = vld [vmem:[%s1982_s26 + $0x28] sm:$0xff] }
  0xc7   : > { %805 = vmatprep.subr.bf16.mxu0 %v1335_v26  ;;  %v1393_v5 = vld [vmem:[%s1982_s26] ss:$16 sps:$4 sm:$0xff]   ;;  %v1396_v6 = vld [vmem:[%s1982_s26 + $0x8] ss:$16 sps:$4 sm:$0xff]   ;;  %v1069_v7 = vcombine.high %v322_v3, %v322_v3  ;;  %v1071_v8 = vcombine.high %v323_v4, %v323_v4  ;;  %v1068_v9 = vcombine.low %v322_v3, %v322_v3  ;;  %v1070_v10 = vcombine.low %v323_v4, %v323_v4 }
  0xc8   : > { %v312_v12 = vld [vmem:[#allocation2] sm:$0xff]  ;;  %v313_v16 = vld [vmem:[#allocation2 + $0x8] sm:$0xff]  ;;  %v315_v25 = vld [vmem:[#allocation2 + $0x18] sm:$0xff] }
  0xc9   : > { %755 = vmatpush1.bf16.msra.mxu1 %v1337_v27 }
  0xca   : > { %806 = vmatpush1.bf16.msra.mxu0 %v1338_v28  ;;  %756 = vmatprep.subr.bf16.mxu1 %v1339_v29  ;;  %p1136_p12 = scmp.ne.s32.totalorder %s2226_s29, 7 }
  0xcb   : > { %807 = vmatprep.subr.bf16.mxu0 %v1341_v30 }
  0xcd   : > { %757 = vmatpush1.bf16.msra.mxu1 %v1343_v31 }
  0xce   : > { %808 = vmatpush1.bf16.msra.mxu0 %v1344_v32  ;;  %758 = vmatprep.subr.bf16.mxu1 %v1345_v33  ;;  %v316_v32 = vld [vmem:[#allocation2 + $0x20] sm:$0xff] }
  0xcf   : > { %809 = vmatprep.subr.bf16.mxu0 %v1347_v34 }
  0xd1   : > { %759 = vmatpush1.bf16.msra.mxu1 %v1349_v35 }
  0xd2   : > { %810 = vmatpush1.bf16.msra.mxu0 %v1350_v36  ;;  %760 = vmatprep.subr.bf16.mxu1 %v1351_v37  ;;  %v317_v36 = vld [vmem:[#allocation2 + $0x28] sm:$0xff] }
  0xd3   : > { %811 = vmatprep.subr.bf16.mxu0 %v1353_v38 }
  0xd5   : > { %761 = vmatpush1.bf16.msra.mxu1 %v1355_v39 }
  0xd6   : > { %812 = vmatpush1.bf16.msra.mxu0 %v1356_v40  ;;  %762 = vmatprep.subr.bf16.mxu1 %v1357_v41 }
  0xd7   : > { %813 = vmatprep.subr.bf16.mxu0 %v1359_v42 }
  0xd9   : > { %763 = vmatpush1.bf16.msra.mxu1 %v1361_v43 }
  0xda   : > { %814 = vmatpush1.bf16.msra.mxu0 %v1362_v44  ;;  %764 = vmatprep.subr.bf16.mxu1 %v1363_v45  ;;  %v868_v45 = vlaneseq (!%p1136_p12) }
  0xdb   : > { %815 = vmatprep.subr.bf16.mxu0 %v1365_v46 }
  0xdc   : > { %v869_v46 = vshrl.u32 (!%p1136_p12), %v868_v45, 7 }
  0xdd   : > { %765 = vmatpush1.bf16.msra.mxu1 %v1367_v47  ;;  %v866_v47 = vld [vmem:[%s2000_s12] sm:$0x3] (!%p1136_p12) }
  0xde   : > { %816 = vmatpush1.bf16.msra.mxu0 %v1368_v49  ;;  %766 = vmatprep.subr.bf16.mxu1 %v1369_v50  ;;  %v870_v49 = vsub.s32 (!%p1136_p12), 0, %v869_v46  ;;  %v874_v50 = vsub.s32 (!%p1136_p12), 1, %v869_v46 }
  0xdf   : > { %817 = vmatprep.subr.bf16.mxu0 %v1371_v51 }
  0xe1   : > { %767 = vmatpush1.bf16.msra.mxu1 %v1373_v53 }
  0xe2   : > { %818 = vmatpush1.bf16.msra.mxu0 %v1374_v54  ;;  %768 = vmatprep.subr.bf16.mxu1 %v1375_v55  ;;  %v871_v54 = vrot.slane (!%p1136_p12), %v866_v47, %v870_v49  ;;  %v875_v55 = vrot.slane (!%p1136_p12), %v866_v47, %v874_v50 }
  0xe3   : > { %819 = vmatprep.subr.bf16.mxu0 %v1377_v56 }
  0xe5   : > { %769 = vmatpush1.bf16.msra.mxu1 %v1379_v57 }
  0xe6   : > { %820 = vmatpush1.bf16.msra.mxu0 %v1380_v58  ;;  %770 = vmatprep.subr.bf16.mxu1 %v1381_v59 }
  0xe7   : > { %821 = vmatprep.subr.bf16.mxu0 %v1383_v60 }
  0xe9   : > { %771 = vmatpush1.bf16.msra.mxu1 %v1385_v61 }
  0xea   : > { %822 = vmatpush1.bf16.msra.mxu0 %v1386_v62  ;;  %772 = vmatprep.subr.bf16.mxu1 %v1387_v63 }
  0xeb   : > { %823 = vmatprep.subr.bf16.mxu0 %v1389_v0 }
  0xed   : > { %773 = vmatpush1.bf16.msra.mxu1 %v1391_v1 }
  0xee   : > { %824 = vmatpush1.bf16.msra.mxu0 %v1392_v2 }
  0xf0   : > { %775 = vmatmul.mubr.bf16.vlgmr.msra.gmra.mrb[0].mxu1 %v1393_v5 }
  0xf1   : > { %826 = vmatmul.mubr.bf16.vlgmr.msra.gmra.mrb[0].mxu0 %v1396_v6  ;;  %784 = vmatprep.mubr.bf16.mxu1 %v1069_v7 }
  0xf2   : > { %835 = vmatprep.mubr.bf16.mxu0 %v1071_v8 }
  0xf8   : > { %785 = vmatmul.mubr.bf16.gmra.mrb[4].mxu1 %v1068_v9 }
  0xf9   : > { %836 = vmatmul.mubr.bf16.gmra.mrb[4].mxu0 %v1070_v10 }
 0x1c3   : > { %v776_v11 = vpop.f32.mrb[0].mxu1 }
 0x1c4   : > { %v827_v13 = vpop.f32.mrb[0].mxu0  ;;  %v778_v15 = vpop.f32.mrb[1].mxu1 }
 0x1c5   : > { %v828_v14 = vadd.f32 %v827_v13, %v776_v11  ;;  %v829_v17 = vpop.f32.mrb[1].mxu0  ;;  %v780_v19 = vpop.f32.mrb[2].mxu1 }
 0x1c6   : > { %v830_v18 = vadd.f32 %v829_v17, %v778_v15  ;;  %v831_v21 = vpop.f32.mrb[2].mxu0  ;;  %v782_v24 = vpop.f32.mrb[3].mxu1 }
 0x1c7   : > { %v844_v22 = vadd.f32 %v828_v14, %v312_v12  ;;  %v832_v23 = vadd.f32 %v831_v21, %v780_v19  ;;  %v833_v26 = vpop.f32.mrb[3].mxu0 }
 0x1c8   : > { %v845_v27 = vadd.f32 %v830_v18, %v313_v16  ;;  %v834_v28 = vadd.f32 %v833_v26, %v782_v24 }
 0x1c9   : > { %850 = vst [vmem:[#allocation2] sm:$0xff] %v844_v22  ;;  %v846_v29 = vadd.f32 %v832_v23, %v314_v20 }
 0x1ca   : > { %851 = vst [vmem:[#allocation2 + $0x8] sm:$0xff] %v845_v27  ;;  %v847_v30 = vadd.f32 %v834_v28, %v315_v25 }
 0x1cb   : > { %852 = vst [vmem:[#allocation2 + $0x10] sm:$0xff] %v846_v29  ;;  %v786_v31 = vpop.f32.mrb[4].mxu1 }
 0x1cc   : > { %853 = vst [vmem:[#allocation2 + $0x18] sm:$0xff] %v847_v30  ;;  %v837_v33 = vpop.f32.mrb[4].mxu0  ;;  %v788_v35 = vpop.f32.mrb[5].mxu1  ;;  %859 = sbr.rel (%p1136_p12) target bundleno = 477 (0x1dd), region = 52 }
 0x1cd   : > { %v838_v34 = vadd.f32 %v837_v33, %v786_v31  ;;  %v839_v37 = vpop.f32.mrb[5].mxu0  ;;  %v790_v39 = vpop.f32.mrb[6].mxu1 }
 0x1ce   : > { %v840_v38 = vadd.f32 %v839_v37, %v788_v35  ;;  %v841_v40 = vpop.f32.mrb[6].mxu0  ;;  %v791_v42 = vpop.f32.mrb[7].mxu1 }
 0x1cf   : > { %v848_v41 = vadd.f32 %v838_v34, %v316_v32  ;;  %v842_v43 = vpop.f32.mrb[7].mxu0 }
 0x1d0   : > { %v849_v44 = vadd.f32 %v840_v38, %v317_v36  ;;  %v860_v48 = vld [vmem:[#allocation2] sm:$0xff] (!%p1136_p12) }
 0x1d1   : > { %854 = vst [vmem:[#allocation2 + $0x20] sm:$0xff] %v848_v41  ;;  %v861_v51 = vld [vmem:[#allocation2 + $0x8] sm:$0xff] (!%p1136_p12)  ;;  %v878_v58 = vadd.f32 (!%p1136_p12), %v871_v54, %v860_v48 }
 0x1d2   : > { %855 = vst [vmem:[#allocation2 + $0x28] sm:$0xff] %v849_v44  ;;  %v862_v52 = vld [vmem:[#allocation2 + $0x10] sm:$0xff] (!%p1136_p12)  ;;  %v879_v59 = vadd.f32 (!%p1136_p12), %v875_v55, %v861_v51 }
 0x1d3   : > { %v863_v53 = vld [vmem:[#allocation2 + $0x18] sm:$0xff]  ;;  %v880_v60 = vadd.f32 %v871_v54, %v862_v52  ;;  %884 = vst [vmem:[%s2007_s22] sm:$0xff] %v878_v58 }
 0x1d4   : > { %v881_v61 = vadd.f32 %v875_v55, %v863_v53  ;;  %885 = vst [vmem:[%s2007_s22 + $0x8] sm:$0xff] %v879_v59 }
 0x1d5   : > { %886 = vst [vmem:[%s2007_s22 + $0x10] sm:$0xff] %v880_v60 }
 0x1d6   : > { %887 = vst [vmem:[%s2007_s22 + $0x18] sm:$0xff] %v881_v61 }
 0x1d8   : > { %v864_v56 = vld [vmem:[#allocation2 + $0x20] sm:$0xff] }
 0x1d9   : > { %v865_v57 = vld [vmem:[#allocation2 + $0x28] sm:$0xff]  ;;  %v882_v62 = vadd.f32 %v871_v54, %v864_v56 }
 0x1da   : > { %v883_v63 = vadd.f32 %v875_v55, %v865_v57 }
 0x1db   : > { %888 = vst [vmem:[%s2007_s22 + $0x20] sm:$0xff] %v882_v62 }
 0x1dc   : > { %889 = vst [vmem:[%s2007_s22 + $0x28] sm:$0xff] %v883_v63 }
 0x1dd PF: > { %s2227_s18 = sld [smem:[#allocation16_spill]]  ;;  %s2228_s26 = sld [smem:[#allocation23_spill]] }
 0x1de   : > { %s907_s0 = sshll.u32 %s2007_s22, 4  ;;  %s891_s21 = scalar_lea.sflag [#allocation5], %s1997_s3  ;;  %s2095_s0 = int_to_ptr.vmem [resolvable:$true] %s907_s0 }
 0x1df   : > { %s1493_s27 = scalar_lea.vmem %s2095_s0, 768  ;;  %p2229_p9 = scmp.ne.s32.totalorder %s2216_s5, 0 }
 0x1e0   : > { %p1494_p13 = scmp.ne.s32.totalorder %s2095_s0, %s1493_s27  ;;  %s1658_s8 = smov [#allocation9]  }
 0x1e1   : > { %s1497_s9 = sshll.u32 %s1658_s8, 4  ;;  %s1498_s9 = int_to_ptr.vmem [resolvable:$false] %s1497_s9 }
 0x1e2   : > { %p1495_p2 = pnand %p1494_p13, %p2229_p9  ;;  %s1499_s12 = scalar_lea.vmem %s1498_s9, 1536 }
 0x1e3   : > { %s1144_s1 = sshll.u32 %s2227_s18, 8  ;;  %p1500_p10 = scmp.lt.s32.totalorder %s2095_s0, %s1498_s9 }
 0x1e4   : > { %s2092_s7 = scalar_lea.hbm %s2228_s26, %s1144_s1  ;;  %p1496_p8 = pneg %p1495_p2 }
 0x1e5   : > { %p1501_p11 = scmp.lt.s32.totalorder %s1499_s12, %s1493_s27 }
 0x1e7   : > { %p1502_p1 = por %p1501_p11, %p1500_p10 }
 0x1e9   : > { %p1503_p4 = pnand %p1502_p1, %p1496_p8 }
 0x1eb   : > { %1506 = shalt.err (!%p1503_p4)
}
 0x1ec   : > { %s1507_s28 = scalar_lea.hbm %s2092_s7, 768  ;;  %s1511_s29 = scalar_lea.hbm %s2228_s26, 1536 }
 0x1ed   : > { %p1508_p6 = scmp.ne.s32.totalorder %s2092_s7, %s1507_s28  ;;  %p1512_p7 = scmp.lt.u32.totalorder %s2092_s7, %s2228_s26 }
 0x1ee   : > { %p1513_p3 = scmp.lt.u32.totalorder %s1511_s29, %s1507_s28  ;;  %p1515_p13 = scmp.lt.u32.totalorder %s1507_s28, %s2092_s7 }
 0x1ef   : > { %p1509_p0 = pnand %p1508_p6, %p2229_p9 }
 0x1f0   : > { %p1514_p12 = por %p1513_p3, %p1512_p7 }
 0x1f1   : > { %p1510_p5 = pneg %p1509_p0 }
 0x1f2   : > { %p1516_p2 = por %p1515_p13, %p1514_p12 }
 0x1f4   : > { %p1517_p8 = pnand %p1516_p2, %p1510_p5 }
 0x1f6   : > { %1520 = shalt.err (!%p1517_p8)
}
 0x1f7   : > { %s1659_s24 = smov 256   ;;  %s1660_s11 = smov 512  }
 0x1f8   : > { %s1661_s27 = smov 16  }
 0x1f9   : > { %1158 = dma.vmem_to_hbm [thread:$0]  (%p2229_p9), %s2095_s0, 768, %s2092_s7, %s891_s21, %s1659_s24, %s1660_s11, %s1661_s27  }
 0x1fa PF: > { %s2230_s8 = sld [smem:[#allocation14_spill]]  ;;  %p1175_p10 = scmp.ge.s32.totalorder %s1647_s25, 2 }
 0x1fb   : > { %p2231_p11 = scmp.ne.s32.totalorder %s2217_s15, 0 }
 0x1fd   : > { %p1171_p1 = pnand %p1175_p10, %p2231_p11 }
 0x200   : > { %s922_s9 = sand.u32 1, %s2230_s8  }
 0x201   : > { %s923_s12 = scalar_lea.sflag [#allocation5], %s922_s9 }
 0x202   : > { %1590 = dma.done.wait (!%p1171_p1), %s923_s12, 768  }
 0x203   : > { %1592 = vsyncadd (!%p1171_p1), %s923_s12, 4294966528  ;;  %s22_s25 = sadd.s32 1, %s1647_s25   ;;  %s2233_s22 = sld [smem:[#allocation17_spill]] }
 0x204   : > { %p2126_p4 = scmp.ge.s32.totalorder %s22_s25, 18   ;;  %s2234_s5 = sld [smem:[#allocation18_spill]] }
 0x205   : > { %s2235_s24 = sld [smem:[#allocation19_spill]]  ;;  %s2236_s12 = smov %s1599_s13 }
 0x206   : > { %s2237_s13 = smov %s1603_s14  ;;  %s2238_s14 = smov %s1923_s2 }
 0x207   : > { %s2239_s15 = smov %s1611_s16  ;;  %s2240_s16 = smov %s1615_s17 }
 0x208   : > { %s2241_s17 = smov %s1788_s10  ;;  %s2242_s18 = smov %s1623_s19 }
 0x209   : > { %s2243_s19 = smov %s1627_s20  ;;  %s2244_s20 = smov %s1850_s6 }
 0x20a   : > { %s2245_s21 = smov %s1639_s23  ;;  %s2246_s23 = smov %s2234_s5 }
 0x20b   :  { %21 = sbr.rel (!%p2126_p4) target bundleno = 17 (0x11), region = 109 }
 0x212   :  { %928 = vsyncpa [#allocation4], 1 }
 0x213   :  { %930 = vsyncpa [#allocation4 + $0x1], 1 }
 0x214   :  { %931 = vsyncpa [#allocation7], 1 }
 0x215   :  { %933 = vsyncpa [#allocation7 + $0x1], 1 }
 0x216   :  { %934 = vsyncpa [#allocation5], 1 }
 0x217   :  { %936 = vsyncpa [#allocation5 + $0x1], 1 }

// kernel: discriminator_forward.15
= control target key start
LH: loop header
LB: loop body
LE: loop exit
PB: predicated region body
PF: predicated region fallthrough
CT: control target
= control target key end

     0   :  { %8 = vsyncpa [#allocation4], 0  ;;  %s1461_s0 = inlined_call_operand.hbm [shape: bf16[8,8192], index: 0, kind: input, shape index: {}]   ;;  %s1462_s1 = inlined_call_operand.hbm [shape: bf16[8192,128], index: 1, kind: input, shape index: {}]   ;;  %s1463_s2 = inlined_call_operand.hbm [shape: f32[1,128], index: 2, kind: input, shape index: {}]   ;;  %s1464_s3 = inlined_call_operand.hbm [shape: f32[8,128], index: 3, kind: output, shape index: {}]  }
   0x1   :  { %10 = vsyncpa [#allocation4 + $0x1], 0 }
   0x2   :  { %11 = vsyncpa [#allocation7], 0 }
   0x3   :  { %13 = vsyncpa [#allocation7 + $0x1], 0 }
   0x4   :  { %14 = vsyncpa [#allocation5], 0  ;;  %s1183_s12 = smov 0   ;;  %s1185_s13 = smov 0  }
   0x5   :  { %s1187_s14 = smov 0   ;;  %s1189_s15 = smov 0  }
   0x6   :  { %s1191_s16 = smov 0   ;;  %s1193_s17 = smov 0  }
   0x7 LB: > { %s1212_s18 = sadd.s32 4294967295, %s1154_s17   ;;  %s48_s19 = sadd.s32 1, %s1142_s14  ;;  %s1154_s17 = sphi %s1193_s17, %s20_s17   ;;  %s1150_s16 = sphi %s1191_s16, %s1485_s16   ;;  %s1146_s15 = sphi %s1189_s15, %s1484_s15   ;;  %s1142_s14 = sphi %s1187_s14, %s1483_s14   ;;  %s1138_s13 = sphi %s1185_s13, %s1482_s13   ;;  %s1134_s12 = sphi %s1183_s12, %s1481_s12  }
   0x8   : > { %p55_p0 = scmp.ne.s32.totalorder %s1142_s14, %s1138_s13  ;;  %p61_p1 = scmp.ne.s32.totalorder %s1138_s13, %s1134_s12 }
   0x9   : > { %p1465_p2 = scmp.eq.s32.totalorder %s1212_s18, 0  ;;  %p759_p3 = scmp.ge.s32.totalorder %s1154_s17, 1 }
   0xa   : > { %p154_p4 = scmp.lt.s32.totalorder %s1154_s17, 17  ;;  %s1156_s22 = smov [#allocation8]  }
   0xb   : > { %p1223_p5 = por %p1465_p2, %p61_p1  ;;  %s169_s23 = sshll.u32 %s1156_s22, 4  ;;  %s170_s23 = int_to_ptr.vmem [resolvable:$true] %s169_s23 }
   0xc   : > { %p1227_p6 = pnand %p759_p3, %p154_p4  ;;  %p56_p8 = scmp.eq.s32.totalorder %s1154_s17, 0 }
   0xd   : > { %s1468_s20 = scalar_select %p1223_p5, 1, 0 }
   0xe   : > { %s1469_s21 = scalar_select %p1227_p6, 1, 0 }
   0xf   : > { %p873_p7 = pneg %p1227_p6  ;;  %s32_s25 = sadd.s32 1, %s1150_s16 }
  0x10   : > { %p1241_p10 = scmp.ge.s32.totalorder %s32_s25, 16  ;;  %p1248_p11 = por %p56_p8, %p55_p0 }
  0x11   : > { %p1236_p9 = pnand %p873_p7, %p1465_p2  ;;  %s978_s30 = scalar_lea.hbm %s1463_s2, 16 }
  0x12   : > { %s1471_s26 = scalar_select %p1241_p10, 1, 0 }
  0x13   : > { %s1472_s27 = scalar_select %p1248_p11, 1, 0 }
  0x14   : > { %p979_p13 = scmp.ne.s32.totalorder %s1463_s2, %s978_s30  ;;  %p980_p1 = pneg %p1236_p9 }
  0x15   : > { %p985_p0 = scmp.lt.u32.totalorder %s978_s30, %s1463_s2 }
  0x16   : > { %p981_p3 = pnand %p980_p1, %p979_p13 }
  0x18   : > { %p982_p4 = pneg %p981_p3 }
  0x1a   : > { %p987_p7 = pnand %p985_p0, %p982_p4 }
  0x1c   : > { %990 = shalt.err (!%p987_p7)
}
  0x1d   : > { %s991_s8 = scalar_lea.vmem %s170_s23, 16  ;;  %s998_s9 = scalar_lea.vmem %s170_s23, 32 }
  0x1e   : > { %p992_p8 = scmp.ne.s32.totalorder %s170_s23, %s991_s8  ;;  %p999_p5 = scmp.lt.s32.totalorder %s170_s23, %s170_s23 }
  0x1f   : > { %p1000_p6 = scmp.lt.s32.totalorder %s998_s9, %s991_s8 }
  0x20   : > { %p994_p2 = pnand %p992_p8, %p980_p1 }
  0x21   : > { %p1001_p11 = por %p1000_p6, %p999_p5 }
  0x22   : > { %p995_p12 = pneg %p994_p2 }
  0x24   : > { %p1002_p10 = pnand %p1001_p11, %p995_p12 }
  0x26   : > { %1005 = shalt.err (!%p1002_p10)
}
  0x27   : > { %876 = dma.hbm_to_vmem [thread:$0]  (!%p1236_p9), %s1463_s2, 16, %s170_s23, [#allocation7]  }
  0x28   : > { %p1473_p2 = scmp.ne.s32.totalorder %s1471_s26, 0  ;;  %s1274_s12 = sand.u32 1, %s1142_s14  }
  0x29   : > { %s815_s22 = sshll.u32 %s1150_s16, 8  ;;  %s762_s28 = sshll.u32 %s1274_s12, 4 }
  0x2a   : > { %s1487_s25 = smov (%p1473_p2, %s32_s25), 0  ;;  %s1283_s4 = scalar_lea.hbm %s1461_s0, %s815_s22 }
  0x2b   : > { %s44_s24 = ssub.s32 %s1150_s16, %s1487_s25  ;;  %s184_s26 = scalar_lea.vmem [#allocation3], %s762_s28 }
  0x2c   : > { %p46_p5 = scmp.eq.s32.totalorder %s44_s24, 0  ;;  %s194_s5 = sshll.u32 %s184_s26, 4  ;;  %s1298_s5 = int_to_ptr.vmem [resolvable:$true] %s194_s5 }
  0x2d   : > { %p1474_p6 = scmp.ne.s32.totalorder %s1472_s27, 0  ;;  %p1475_p9 = scmp.lt.s32.totalorder %s1154_s17, 16 }
  0x2e   : > { %s1288_s23 = scalar_select %p46_p5, %s1142_s14, %s48_s19  }
  0x2f   : > { %p1294_p10 = pnand %p1475_p9, %p1474_p6  ;;  %s765_s7 = sshll.u32 %s1274_s12, 8 }
  0x30   : > { %s181_s8 = scalar_lea.sflag [#allocation4], %s1274_s12  ;;  %s1006_s9 = scalar_lea.hbm %s1283_s4, 256 }
  0x31   : > { %p1007_p11 = scmp.ne.s32.totalorder %s1283_s4, %s1006_s9  ;;  %p1008_p12 = pneg %p1294_p10 }
  0x32   : > { %s1011_s10 = scalar_lea.hbm %s1461_s0, 4096  ;;  %p1012_p3 = scmp.lt.u32.totalorder %s1283_s4, %s1461_s0 }
  0x33   : > { %p1009_p13 = pnand %p1008_p12, %p1007_p11  ;;  %p1013_p4 = scmp.lt.u32.totalorder %s1011_s10, %s1006_s9 }
  0x34   : > { %p1015_p7 = scmp.lt.u32.totalorder %s1006_s9, %s1283_s4 }
  0x35   : > { %p1010_p1 = pneg %p1009_p13  ;;  %p1014_p0 = por %p1013_p4, %p1012_p3 }
  0x37   : > { %p1016_p8 = por %p1015_p7, %p1014_p0 }
  0x39   : > { %p1017_p2 = pnand %p1016_p8, %p1010_p1 }
  0x3b   : > { %1020 = shalt.err (!%p1017_p2)
}
  0x3c   : > { %s1021_s24 = scalar_lea.vmem %s1298_s5, 256  ;;  %s1157_s28 = smov [#allocation3]  }
  0x3d   : > { %p1022_p5 = scmp.ne.s32.totalorder %s1298_s5, %s1021_s24  ;;  %s1026_s29 = sshll.u32 %s1157_s28, 4  ;;  %s1027_s29 = int_to_ptr.vmem [resolvable:$false] %s1026_s29 }
  0x3e   : > { %s1028_s30 = scalar_lea.vmem %s1027_s29, 512  ;;  %p1029_p11 = scmp.lt.s32.totalorder %s1298_s5, %s1027_s29 }
  0x3f   : > { %p1024_p6 = pnand %p1022_p5, %p1008_p12  ;;  %p1030_p13 = scmp.lt.s32.totalorder %s1028_s30, %s1021_s24 }
  0x41   : > { %p1025_p9 = pneg %p1024_p6  ;;  %p1031_p3 = por %p1030_p13, %p1029_p11 }
  0x43   : > { %p1032_p4 = pnand %p1031_p3, %p1025_p9 }
  0x45   : > { %1035 = shalt.err (!%p1032_p4)
}
  0x46   : > { %880 = dma.hbm_to_vmem [thread:$0]  (!%p1294_p10), %s1283_s4, 256, %s1298_s5, %s181_s8  }
  0x47   : > { %s816_s26 = sshll.u32 %s1150_s16, 12  ;;  %s205_s9 = scalar_lea.vmem [#allocation6], %s765_s7 }
  0x48   : > { %s213_s19 = sshll.u32 %s205_s9, 4  ;;  %s201_s27 = sand.u32 1, %s1154_s17   ;;  %s1330_s19 = int_to_ptr.vmem [resolvable:$true] %s213_s19 }
  0x49   : > { %s1336_s22 = scalar_lea.hbm %s1462_s1, %s816_s26  ;;  %s1338_s24 = scalar_lea.sflag [#allocation7], %s201_s27 }
  0x4a   : > { %s1036_s28 = scalar_lea.hbm %s1336_s22, 4096  ;;  %s1041_s5 = scalar_lea.hbm %s1462_s1, 65536 }
  0x4b   : > { %p1037_p1 = scmp.ne.s32.totalorder %s1336_s22, %s1036_s28  ;;  %p1042_p8 = scmp.lt.u32.totalorder %s1336_s22, %s1462_s1 }
  0x4c   : > { %p1043_p2 = scmp.lt.u32.totalorder %s1041_s5, %s1036_s28  ;;  %p1045_p6 = scmp.lt.u32.totalorder %s1036_s28, %s1336_s22 }
  0x4d   : > { %p1039_p0 = pnand %p1037_p1, %p1008_p12 }
  0x4e   : > { %p1044_p5 = por %p1043_p2, %p1042_p8 }
  0x4f   : > { %p1040_p7 = pneg %p1039_p0 }
  0x50   : > { %p1046_p9 = por %p1045_p6, %p1044_p5 }
  0x52   : > { %p1047_p11 = pnand %p1046_p9, %p1040_p7 }
  0x54   : > { %1050 = shalt.err (!%p1047_p11)
}
  0x55   : > { %s1051_s29 = scalar_lea.vmem %s1330_s19, 4096  ;;  %s1158_s30 = smov [#allocation6]  }
  0x56   : > { %p1052_p13 = scmp.ne.s32.totalorder %s1330_s19, %s1051_s29  ;;  %s1056_s26 = sshll.u32 %s1158_s30, 4  ;;  %s1057_s26 = int_to_ptr.vmem [resolvable:$false] %s1056_s26 }
  0x57   : > { %s1058_s9 = scalar_lea.vmem %s1057_s26, 8192  ;;  %p1059_p1 = scmp.lt.s32.totalorder %s1330_s19, %s1057_s26 }
  0x58   : > { %p1054_p3 = pnand %p1052_p13, %p1008_p12  ;;  %p1060_p0 = scmp.lt.s32.totalorder %s1058_s9, %s1051_s29 }
  0x5a   : > { %p1055_p4 = pneg %p1054_p3  ;;  %p1061_p8 = por %p1060_p0, %p1059_p1 }
  0x5c   : > { %p1062_p2 = pnand %p1061_p8, %p1055_p4 }
  0x5e   : > { %1065 = shalt.err (!%p1062_p2)
}
  0x5f   : > { %s1159_s27 = smov 64   ;;  %s1160_s10 = smov 4  }
  0x60   : > { %883 = dma.hbm_to_vmem [thread:$0]  (!%p1294_p10), %s1336_s22, 4096, %s1330_s19, %s1338_s24, %s1159_s27, %s1159_s27, %s1160_s10  }
  0x61   : > { %p1477_p12 = scmp.ne.s32.totalorder %s1469_s21, 0 }
  0x62   : > { %s227_s11 = sand.u32 (!%p1477_p12), 1, %s1138_s13   ;;  %p1478_p7 = scmp.ne.s32.totalorder (!%p1477_p12), %s1468_s20, 0 }
  0x63   : > { %225 = sbr.rel (%p1477_p12) target bundleno = 412 (0x19c), region = 32  ;;  %s769_s28 = sshll.u32 (!%p1477_p12), %s227_s11, 4 }
  0x64   : > { %s228_s12 = scalar_lea.sflag (!%p1477_p12), [#allocation4], %s227_s11  ;;  %s1367_s4 = scalar_lea.vmem (!%p1477_p12), [#allocation3], %s769_s28 }
  0x6a   : > { %1117 = dma.done.wait (%p1478_p7), %s228_s12, 256  }
  0x6b   : > { %1119 = vsyncadd (%p1478_p7), %s228_s12, 4294967040  ;;  %s236_s5 = sand.u32 1, %s1212_s18   ;;  %s770_s6 = sshll.u32 %s227_s11, 8 }
  0x6c   : > { %s237_s19 = scalar_lea.sflag [#allocation7], %s236_s5  ;;  %s1374_s22 = scalar_lea.vmem [#allocation6], %s770_s6 }
  0x6d   : > { %1121 = dma.done.wait (%p1478_p7), %s237_s19, 4096  }
  0x6e   : > { %1123 = vsyncadd (%p1478_p7), %s237_s19, 4294963200  ;;  %p1479_p10 = scmp.eq.s32.totalorder %s1212_s18, 0 }
  0x70   : > { %1125 = dma.done.wait (%p1479_p10), [#allocation7], 16   ;;  %p1480_p5 = pmov %p1479_p10 }
  0x71   : > { %p772_p6 = scmp.ne.s32.totalorder %s1146_s15, 0 }
  0x72   : > { %1127 = vsyncadd (%p1480_p5), [#allocation7], 4294967280  ;;  %v1161_v0 = vmov (!%p772_p6), 0.0  }
  0x73   : > { %273 = sbr.rel (%p772_p6) target bundleno = 122 (0x7a), region = 48  ;;  %274 = vst [vmem:[#allocation2] sm:$0xff] (!%p772_p6), %v1161_v0 }
  0x7a PF: > { %v942_v1 = vld [vmem:[%s1374_s22 + $0x40] sm:$0xff]   ;;  %v946_v5 = vld [vmem:[%s1374_s22 + $0x48] sm:$0xff]   ;;  %v950_v9 = vld [vmem:[%s1374_s22 + $0x50] sm:$0xff]   ;;  %p809_p9 = scmp.ne.s32.totalorder %s1146_s15, 15 }
  0x7b   : > { %v943_v2 = vld [vmem:[%s1374_s22 + $0xc0] sm:$0xff]   ;;  %817 = vmatprep.subr.bf16.mxu0 %v942_v1  ;;  %v947_v6 = vld [vmem:[%s1374_s22 + $0xc8] sm:$0xff]   ;;  %v951_v10 = vld [vmem:[%s1374_s22 + $0xd0] sm:$0xff]  }
  0x7c   : > { %v944_v3 = vld [vmem:[%s1374_s22] sm:$0xff]   ;;  %839 = vmatprep.subr.bf16.mxu1 %v943_v2  ;;  %v948_v7 = vld [vmem:[%s1374_s22 + $0x8] sm:$0xff]   ;;  %v952_v11 = vld [vmem:[%s1374_s22 + $0x10] sm:$0xff]  }
  0x7d   : > { %v945_v4 = vld [vmem:[%s1374_s22 + $0x80] sm:$0xff]   ;;  %818 = vmatpush3.bf16.msra.mxu0 %v944_v3  ;;  %v949_v8 = vld [vmem:[%s1374_s22 + $0x88] sm:$0xff]   ;;  %v953_v12 = vld [vmem:[%s1374_s22 + $0x90] sm:$0xff]  }
  0x7e   : > { %840 = vmatpush3.bf16.msra.mxu1 %v945_v4  ;;  %819 = vmatprep.subr.bf16.mxu0 %v946_v5  ;;  %v954_v13 = vld [vmem:[%s1374_s22 + $0x58] sm:$0xff]   ;;  %v958_v17 = vld [vmem:[%s1374_s22 + $0x60] sm:$0xff]   ;;  %v962_v21 = vld [vmem:[%s1374_s22 + $0x68] sm:$0xff]  }
  0x7f   : > { %841 = vmatprep.subr.bf16.mxu1 %v947_v6  ;;  %v955_v14 = vld [vmem:[%s1374_s22 + $0xd8] sm:$0xff]   ;;  %v959_v18 = vld [vmem:[%s1374_s22 + $0xe0] sm:$0xff]   ;;  %v963_v22 = vld [vmem:[%s1374_s22 + $0xe8] sm:$0xff]  }
  0x80   : > { %v956_v15 = vld [vmem:[%s1374_s22 + $0x18] sm:$0xff]   ;;  %v960_v19 = vld [vmem:[%s1374_s22 + $0x20] sm:$0xff]   ;;  %v964_v23 = vld [vmem:[%s1374_s22 + $0x28] sm:$0xff]  }
  0x81   : > { %820 = vmatpush3.bf16.msra.mxu0 %v948_v7  ;;  %v957_v16 = vld [vmem:[%s1374_s22 + $0x98] sm:$0xff]   ;;  %v961_v20 = vld [vmem:[%s1374_s22 + $0xa0] sm:$0xff]   ;;  %v965_v24 = vld [vmem:[%s1374_s22 + $0xa8] sm:$0xff]  }
  0x82   : > { %842 = vmatpush3.bf16.msra.mxu1 %v949_v8  ;;  %821 = vmatprep.subr.bf16.mxu0 %v950_v9  ;;  %v966_v25 = vld [vmem:[%s1374_s22 + $0x70] sm:$0xff]   ;;  %v970_v29 = vld [vmem:[%s1374_s22 + $0x78] sm:$0xff]   ;;  %v810_v53 = vld [vmem:[#allocation8] ss:$0 sm:$0xff] (!%p809_p9) }
  0x83   : > { %843 = vmatprep.subr.bf16.mxu1 %v951_v10  ;;  %v967_v26 = vld [vmem:[%s1374_s22 + $0xf0] sm:$0xff]   ;;  %v971_v30 = vld [vmem:[%s1374_s22 + $0xf8] sm:$0xff]  }
  0x84   : > { %v968_v27 = vld [vmem:[%s1374_s22 + $0x30] sm:$0xff]   ;;  %v972_v31 = vld [vmem:[%s1374_s22 + $0x38] sm:$0xff]  }
  0x85   : > { %822 = vmatpush3.bf16.msra.mxu0 %v952_v11  ;;  %v969_v28 = vld [vmem:[%s1374_s22 + $0xb0] sm:$0xff]   ;;  %v973_v32 = vld [vmem:[%s1374_s22 + $0xb8] sm:$0xff]  }
  0x86   : > { %844 = vmatpush3.bf16.msra.mxu1 %v953_v12  ;;  %823 = vmatprep.subr.bf16.mxu0 %v954_v13  ;;  %v276_v33 = vld [vmem:[%s1367_s4] sm:$0xff]  ;;  %v277_v34 = vld [vmem:[%s1367_s4 + $0x8] sm:$0xff] }
  0x87   : > { %845 = vmatprep.subr.bf16.mxu1 %v955_v14  ;;  %v773_v35 = vcombine.low %v276_v33, %v276_v33  ;;  %v774_v36 = vcombine.high %v276_v33, %v276_v33  ;;  %v775_v37 = vcombine.low %v277_v34, %v277_v34  ;;  %v776_v38 = vcombine.high %v277_v34, %v277_v34  ;;  %v275_v47 = vld [vmem:[#allocation2] sm:$0xff] }
  0x89   : > { %824 = vmatpush3.bf16.msra.mxu0 %v956_v15  ;;  %580 = vmatprep.mubr.bf16.mxu0 %v774_v36 }
  0x8a   : > { %846 = vmatpush3.bf16.msra.mxu1 %v957_v16  ;;  %825 = vmatprep.subr.bf16.mxu0 %v958_v17 }
  0x8b   : > { %847 = vmatprep.subr.bf16.mxu1 %v959_v18  ;;  %620 = vmatprep.mubr.bf16.mxu1 %v776_v38 }
  0x8d   : > { %826 = vmatpush3.bf16.msra.mxu0 %v960_v19 }
  0x8e   : > { %848 = vmatpush3.bf16.msra.mxu1 %v961_v20  ;;  %827 = vmatprep.subr.bf16.mxu0 %v962_v21 }
  0x8f   : > { %849 = vmatprep.subr.bf16.mxu1 %v963_v22 }
  0x91   : > { %828 = vmatpush3.bf16.msra.mxu0 %v964_v23 }
  0x92   : > { %850 = vmatpush3.bf16.msra.mxu1 %v965_v24  ;;  %829 = vmatprep.subr.bf16.mxu0 %v966_v25 }
  0x93   : > { %851 = vmatprep.subr.bf16.mxu1 %v967_v26 }
  0x95   : > { %830 = vmatpush3.bf16.msra.mxu0 %v968_v27 }
  0x96   : > { %852 = vmatpush3.bf16.msra.mxu1 %v969_v28  ;;  %831 = vmatprep.subr.bf16.mxu0 %v970_v29 }
  0x97   : > { %853 = vmatprep.subr.bf16.mxu1 %v971_v30 }
  0x99   : > { %832 = vmatpush3.bf16.msra.mxu0 %v972_v31 }
  0x9a   : > { %854 = vmatpush3.bf16.msra.mxu1 %v973_v32 }
  0x9c   : > { %581 = vmatmul.mubr.bf16.vlgmr.msra.gmra.mrb[0].mxu0 %v773_v35 }
  0x9d   : > { %621 = vmatmul.mubr.bf16.vlgmr.msra.gmra.mrb[0].mxu1 %v775_v37 }
 0x16f   : > { %v833_v39 = vpop.f32.mrb[0].mxu0 }
 0x170   : > { %v855_v40 = vpop.f32.mrb[0].mxu1  ;;  %v834_v41 = vpop.f32.mrb[1].mxu0 }
 0x171   : > { %v856_v42 = vpop.f32.mrb[1].mxu1  ;;  %v835_v43 = vadd.f32 %v834_v41, %v833_v39  ;;  %v836_v45 = vpop.f32.mrb[2].mxu0 }
 0x172   : > { %v857_v44 = vadd.f32 %v856_v42, %v855_v40  ;;  %v858_v46 = vpop.f32.mrb[2].mxu1  ;;  %v837_v48 = vpop.f32.mrb[3].mxu0  ;;  %633 = sbr.rel (%p809_p9) target bundleno = 387 (0x183), region = 52 }
 0x173   : > { %v859_v49 = vpop.f32.mrb[3].mxu1 }
 0x174   : > { %v623_v50 = vadd.f32 %v857_v44, %v835_v43 }
 0x176   : > { %v628_v51 = vadd.f32 %v623_v50, %v275_v47 }
 0x178   : > { %629 = vst [vmem:[#allocation2] sm:$0xff] %v628_v51 }
 0x17f   : > { %v634_v52 = vld [vmem:[#allocation2] sm:$0xff] }
 0x180   : > { %v642_v54 = vadd.f32 %v810_v53, %v634_v52 }
 0x182   : > { %643 = vst [vmem:[#allocation9] sm:$0xff] %v642_v54 }
 0x183 PF: > { %p887_p11 = scmp.eq.s32.totalorder %s1212_s18, 15  ;;  %s1162_s20 = smov [#allocation9]  }
 0x184   : > { %s654_s21 = sshll.u32 %s1162_s20, 4  ;;  %s655_s21 = int_to_ptr.vmem [resolvable:$true] %s654_s21 }
 0x185   : > { %s1066_s24 = scalar_lea.vmem %s655_s21, 128  ;;  %p1073_p1 = scmp.lt.s32.totalorder %s655_s21, %s655_s21 }
 0x186   : > { %p1067_p13 = scmp.ne.s32.totalorder %s655_s21, %s1066_s24  ;;  %p1074_p0 = scmp.lt.s32.totalorder %s1066_s24, %s1066_s24 }
 0x188   : > { %p1068_p3 = pnand %p1067_p13, %p887_p11  ;;  %p1075_p8 = por %p1074_p0, %p1073_p1 }
 0x18a   : > { %p1069_p4 = pneg %p1068_p3 }
 0x18c   : > { %p1076_p2 = pnand %p1075_p8, %p1069_p4 }
 0x18e   : > { %1079 = shalt.err (!%p1076_p2)
}
 0x18f   : > { %s1080_s8 = scalar_lea.hbm %s1464_s3, 128 }
 0x190   : > { %p1081_p12 = scmp.ne.s32.totalorder %s1464_s3, %s1080_s8  ;;  %p1086_p5 = scmp.lt.u32.totalorder %s1080_s8, %s1464_s3 }
 0x192   : > { %p1082_p7 = pnand %p1081_p12, %p887_p11 }
 0x194   : > { %p1083_p10 = pneg %p1082_p7 }
 0x196   : > { %p1088_p6 = pnand %p1086_p5, %p1083_p10 }
 0x198   : > { %1091 = shalt.err (!%p1088_p6)
}
 0x199   : > { %870 = dma.vmem_to_hbm [thread:$0]  (%p887_p11), %s655_s21, 128, %s1464_s3, [#allocation5]  }
 0x19a   : > { %1129 = dma.done.wait (%p887_p11), [#allocation5], 128  }
 0x19b   : > { %1131 = vsyncadd (%p887_p11), [#allocation5], 4294967168 }
 0x19c PF: > { %s20_s17 = sadd.s32 1, %s1154_s17   ;;  %s1481_s12 = smov %s1138_s13 }
 0x19d   : > { %p17_p9 = scmp.ge.s32.totalorder %s20_s17, 18   ;;  %s1482_s13 = smov %s1142_s14 }
 0x19e   : > { %s1483_s14 = smov %s1288_s23  ;;  %s1484_s15 = smov %s1150_s16 }
 0x19f   : > { %s1485_s16 = smov %s1487_s25  ;;  %19 = sbr.rel (!%p17_p9) target bundleno = 7 (0x7), region = 96 }
 0x1a6   :  { %667 = vsyncpa [#allocation4], 1 }
 0x1a7   :  { %669 = vsyncpa [#allocation4 + $0x1], 1 }
 0x1a8   :  { %670 = vsyncpa [#allocation7], 1 }
 0x1a9   :  { %672 = vsyncpa [#allocation7 + $0x1], 1 }
 0x1aa   :  { %673 = vsyncpa [#allocation5], 1 }
 0x1ab   :  { %675 = vsyncpa [#allocation5 + $0x1], 1 }

</bundles_post_ra>
